<compile_context>
chip_gen: v5e
topology: v5e:2x2
jax: 0.10.0
libtpu: 0.0.40
codegen_flags: <defaults>
</compile_context>

<pallas_src>
import functools
import math

import jax
import jax.numpy as jnp
from jax.experimental import pallas as pl
from jax.experimental.pallas import tpu as pltpu


def _ln(x, g, b, eps):
    mu = jnp.mean(x, axis=-1, keepdims=True)
    var = jnp.mean(jnp.square(x - mu), axis=-1, keepdims=True)
    return (x - mu) * jax.lax.rsqrt(var + eps) * g + b


# Packed [n, D] vector-table layouts (shared by wrapper and kernel).
def _char_vec_layout(n_hw, n_ff):
    off, i = {}, 0
    off["b0"] = i; i += 1                # combined conv+after_cnn bias
    off["hw_bp"] = i; i += n_hw
    off["hw_bt"] = i; i += n_hw
    off["hw_ln_g"] = i; i += 1
    off["hw_ln_b"] = i; i += 1
    off["ff_b2"] = i; i += n_ff
    off["ff_g"] = i; i += n_ff
    off["ff_b"] = i; i += n_ff
    return off, i


def _bert_vec_layout(nl):
    off, i = {}, 0
    off["emb_g"] = i; i += 1
    off["emb_b"] = i; i += 1
    off["bo"] = i; i += nl
    off["ln1_g"] = i; i += nl
    off["ln1_b"] = i; i += nl
    off["bo2"] = i; i += nl
    off["ln2_g"] = i; i += nl
    off["ln2_b"] = i; i += nl
    return off, i


# ------------------------------ fused kernel --------------------------------

def _encoder_kernel(taps_ref, conv_w_ref, cvec_ref, hw_w_ref,
                    ff_w1_ref, ff_b1_ref, ff_w2_ref,
                    postok_ref, bias_ref, bvec_ref,
                    wqkv_ref, bqkv_ref, wo_ref, wi_ref, bi_ref, wo2_ref,
                    out_ref, probs_ref,
                    *, B, L, Lp, window, Ls, D, n_taps, n_hw, n_ff,
                    NL, H, hd, coff, boff):
    def cv(i):
        return cvec_ref[i:i + 1, :]          # [1, D]

    def bv(i):
        return bvec_ref[i:i + 1, :]          # [1, D]

    # ---- Char CNN + after_cnn (already folded to one [E, D] weight per tap;
    #      batch folded into the M dimension of the matmuls) ----
    acc = cv(coff["b0"])                                       # [1, D]
    for j in range(n_taps):
        acc = acc + jnp.dot(taps_ref[j], conv_w_ref[j],
                            preferred_element_type=jnp.float32)
    h = jnp.maximum(acc, 0.0)                                  # [B*Lp, D]

    # ---- MaxPool1d(window, stride=window, ceil_mode=True), vectorized ----
    if Lp > L:  # padded char positions must not win the (partial) last window
        rows = jax.lax.broadcasted_iota(jnp.int32, (B * Lp, 1), 0) % Lp
        h = jnp.where(rows < L, h, -1e30)
    p = jnp.max(h.reshape(B * Ls, window, D), axis=1)          # [B*Ls, D]

    # ---- Highway layers: gate*relu(proj(x)) + (1-gate)*x ----
    for j in range(n_hw):
        proj = jnp.maximum(
            jnp.dot(p, hw_w_ref[j], preferred_element_type=jnp.float32)
            + cv(coff["hw_bp"] + j), 0.0)
        gate = jax.nn.sigmoid(
            jnp.dot(p, hw_w_ref[n_hw + j], preferred_element_type=jnp.float32)
            + cv(coff["hw_bt"] + j))
        p = gate * proj + (1.0 - gate) * p

    # ---- after_highways: ReLU -> LayerNorm ----
    p = _ln(jnp.maximum(p, 0.0), cv(coff["hw_ln_g"]), cv(coff["hw_ln_b"]), 1e-5)

    # ---- char TransformerFeedForward blocks ----
    for j in range(n_ff):
        y = jnp.maximum(
            jnp.dot(p, ff_w1_ref[j], preferred_element_type=jnp.float32)
            + ff_b1_ref[j:j + 1, :], 0.0)
        y = (jnp.dot(y, ff_w2_ref[j], preferred_element_type=jnp.float32)
             + cv(coff["ff_b2"] + j))
        p = _ln(y + p, cv(coff["ff_g"] + j), cv(coff["ff_b"] + j), 1e-5)

    # ---- BertEmbeddings: inputs_embeds + position + token_type(0) -> LN ----
    x = _ln(p + postok_ref[...], bv(boff["emb_g"]), bv(boff["emb_b"]), 1e-12)
    bias = bias_ref[...]                                       # [B, 1, Ls]
    # TODO(synk): HF uses (1-mask)*finfo.min; -1e9 is equivalent after the
    # max-subtracted softmax (fully-masked rows give a uniform distribution).
    scale = 1.0 / math.sqrt(hd)

    M = B * Ls
    probs_blocks = []
    for l in range(NL):
        qkv = (jnp.dot(x, wqkv_ref[l], preferred_element_type=jnp.float32)
               + bqkv_ref[l:l + 1, :])                         # [M, 3D]
        ctx_heads = []
        for hi in range(H):
            qh = qkv[:, hi * hd:(hi + 1) * hd].reshape(B, Ls, hd)
            kh = qkv[:, D + hi * hd:D + (hi + 1) * hd].reshape(B, Ls, hd)
            vh = qkv[:, 2 * D + hi * hd:2 * D + (hi + 1) * hd].reshape(B, Ls, hd)
            s = jnp.einsum('bqd,bkd->bqk', qh, kh,
                           preferred_element_type=jnp.float32) * scale + bias
            s = s - jnp.max(s, axis=-1, keepdims=True)
            e = jnp.exp(s)
            patt = e / jnp.sum(e, axis=-1, keepdims=True)      # exact softmax
            probs_blocks.append(patt.reshape(M, Ls))
            ctx_heads.append(
                jnp.einsum('bqk,bkd->bqd', patt, vh,
                           preferred_element_type=jnp.float32).reshape(M, hd))
        ctx = jnp.concatenate(ctx_heads, axis=1)               # [M, D]
        a_out = (jnp.dot(ctx, wo_ref[l], preferred_element_type=jnp.float32)
                 + bv(boff["bo"] + l))
        x = _ln(a_out + x, bv(boff["ln1_g"] + l), bv(boff["ln1_b"] + l), 1e-12)
        inter = jnp.maximum(
            jnp.dot(x, wi_ref[l], preferred_element_type=jnp.float32)
            + bi_ref[l:l + 1, :], 0.0)
        f_out = (jnp.dot(inter, wo2_ref[l], preferred_element_type=jnp.float32)
                 + bv(boff["bo2"] + l))
        x = _ln(f_out + x, bv(boff["ln2_g"] + l), bv(boff["ln2_b"] + l), 1e-12)

    out_ref[...] = x
    # Single lane-dense store of every layer/head attention matrix.
    probs_ref[...] = jnp.concatenate(probs_blocks, axis=1)     # [M, NL*H*Ls]


# ------------------------------- forward ------------------------------------

def encoder_forward(params, data, mask, cfg):
    B, L = data.shape
    E = cfg["char_embedding_dim"]
    D = cfg["dim"]
    window = cfg["shrink"]
    Ls = -(-L // window)
    Lp = Ls * window
    NL, H = cfg["layers"], cfg["heads"]
    hd = D // H
    n_hw = len(params["highways"])
    n_ff = len(params["char_ff"])
    max_pad = max((int(cp["w"].shape[0]) - 1) // 2 for cp in params["convs"])
    n_taps = 2 * max_pad + 1

    # --- tiny XLA-side prep: embedding gather + masking, per-tap shifts,
    #     conv->1x1 folding, weight packing, mask shrink, attention bias ---
    emb = jnp.take(params["char_emb"], data, axis=0)           # [B, L, E]
    x = emb * mask[:, :, None]
    mask_p = mask
    if Lp > L:
        x = jnp.pad(x, ((0, 0), (0, Lp - L), (0, 0)))
        mask_p = jnp.pad(mask, ((0, 0), (0, Lp - L)))
    xpad = jnp.pad(x, ((0, 0), (max_pad, max_pad), (0, 0)))
    taps = jnp.stack([xpad[:, j:j + Lp, :] for j in range(n_taps)])
    taps = taps.reshape(n_taps, B * Lp, E)                     # zero-padded shifts

    # Fold each Conv1d branch + the 1x1 after_cnn conv into one [E, D] weight
    # per tap offset (exact linear composition) and one combined bias.
    acnn_w, acnn_b = params["after_cnn"]["w"], params["after_cnn"]["b"]
    conv_w = jnp.zeros((n_taps, E, D), jnp.float32)
    b0 = acnn_b
    row0 = 0
    for cp in params["convs"]:
        w = cp["w"]                                            # [K, E, Fc]
        K, Fc = int(w.shape[0]), int(w.shape[2])
        pad = (K - 1) // 2
        blk = acnn_w[row0:row0 + Fc, :]                        # [Fc, D]
        b0 = b0 + cp["b"] @ blk
        for k in range(K):
            conv_w = conv_w.at[(k - pad) + max_pad].add(w[k] @ blk)
        row0 += Fc

    coff, n_cvec = _char_vec_layout(n_hw, n_ff)
    cvec = [None] * n_cvec
    cvec[coff["b0"]] = b0
    for j, hw in enumerate(params["highways"]):
        cvec[coff["hw_bp"] + j] = hw["bp"]
        cvec[coff["hw_bt"] + j] = hw["bt"]
    cvec[coff["hw_ln_g"]] = params["after_hw_ln"]["g"]
    cvec[coff["hw_ln_b"]] = params["after_hw_ln"]["b"]
    for j, f in enumerate(params["char_ff"]):
        cvec[coff["ff_b2"] + j] = f["b2"]
        cvec[coff["ff_g"] + j] = f["ln_g"]
        cvec[coff["ff_b"] + j] = f["ln_b"]
    cvec = jnp.stack(cvec)

    hw_w = jnp.stack([hw["wp"] for hw in params["highways"]]
                     + [hw["wt"] for hw in params["highways"]])
    ff_w1 = jnp.stack([f["w1"] for f in params["char_ff"]])
    ff_b1 = jnp.stack([f["b1"] for f in params["char_ff"]])
    ff_w2 = jnp.stack([f["w2"] for f in params["char_ff"]])

    # final_mask_shrink (MaxPool1d ceil_mode) + extended attention bias in XLA.
    enc_mask = jnp.max(mask_p.reshape(B, Ls, window), axis=2)  # [B, Ls]
    bias = (1.0 - enc_mask)[:, None, :] * (-1e9)               # [B, 1, Ls]

    bp = params["bert"]
    postok = jnp.tile(bp["pos_emb"][:Ls] + bp["tok_type_emb"][0:1], (B, 1))
    lyrs = bp["layers"]
    boff, n_bvec = _bert_vec_layout(NL)
    bvec = [None] * n_bvec
    bvec[boff["emb_g"]] = bp["emb_ln_g"]
    bvec[boff["emb_b"]] = bp["emb_ln_b"]
    for l, ly in enumerate(lyrs):
        bvec[boff["bo"] + l] = ly["bo"]
        bvec[boff["ln1_g"] + l] = ly["ln1_g"]
        bvec[boff["ln1_b"] + l] = ly["ln1_b"]
        bvec[boff["bo2"] + l] = ly["bo2"]
        bvec[boff["ln2_g"] + l] = ly["ln2_g"]
        bvec[boff["ln2_b"] + l] = ly["ln2_b"]
    bvec = jnp.stack(bvec)

    wqkv = jnp.stack([jnp.concatenate([l["wq"], l["wk"], l["wv"]], axis=1)
                      for l in lyrs])
    bqkv = jnp.stack([jnp.concatenate([l["bq"], l["bk"], l["bv"]])
                      for l in lyrs])
    wo = jnp.stack([l["wo"] for l in lyrs])
    wi = jnp.stack([l["wi"] for l in lyrs])
    bi = jnp.stack([l["bi"] for l in lyrs])
    wo2 = jnp.stack([l["wo2"] for l in lyrs])

    inputs = [taps, conv_w, cvec, hw_w, ff_w1, ff_b1, ff_w2,
              postok, bias, bvec, wqkv, bqkv, wo, wi, bi, wo2]

    kernel = functools.partial(
        _encoder_kernel, B=B, L=L, Lp=Lp, window=window, Ls=Ls, D=D,
        n_taps=n_taps, n_hw=n_hw, n_ff=n_ff, NL=NL, H=H, hd=hd,
        coff=coff, boff=boff)

    M = B * Ls
    out, probs = pl.pallas_call(
        kernel,
        in_specs=[pl.BlockSpec(memory_space=pltpu.MemorySpace.VMEM)
                  for _ in inputs],
        out_specs=(pl.BlockSpec(memory_space=pltpu.MemorySpace.VMEM),
                   pl.BlockSpec(memory_space=pltpu.MemorySpace.VMEM)),
        out_shape=(jax.ShapeDtypeStruct((M, D), jnp.float32),
                   jax.ShapeDtypeStruct((M, NL * H * Ls), jnp.float32)),
    )(*inputs)

    transformed = out.reshape(B, Ls, D)
    probs = probs.reshape(B, Ls, NL, H, Ls).transpose(0, 2, 3, 1, 4)
    attentions = tuple(probs[:, l] for l in range(NL))         # [B, H, Ls, Ls]
    # TODO(synk): BertModel's pooled output is discarded by Encoder.forward
    # ("transformed, _, attentions = ..."); it is omitted here.
    return transformed, enc_mask, attentions


# ------------------------------ parameters ----------------------------------

CFG = dict(
    vocab_size=50,
    char_embedding_dim=16,
    conv_filters=[8, 16],
    dim=32,
    ff_dim=64,
    layers=2,
    heads=4,
    highway_layers=2,
    char_ff_layers=2,
    shrink=5,
    max_position=64,
)


def _normal(key, shape, scale=0.02):
    return scale * jax.random.normal(key, shape, dtype=jnp.float32)


def init_params(key, cfg):
    E, D, F = cfg["char_embedding_dim"], cfg["dim"], cfg["ff_dim"]
    keys = iter(jax.random.split(key, 256))
    p = {}
    p["char_emb"] = _normal(next(keys), (cfg["vocab_size"], E))
    p["convs"] = [dict(w=_normal(next(keys), (2 * i + 1, E, cf)),
                       b=jnp.zeros((cf,), jnp.float32))
                  for i, cf in enumerate(cfg["conv_filters"])]
    sumF = sum(cfg["conv_filters"])
    p["after_cnn"] = dict(w=_normal(next(keys), (sumF, D)),
                          b=jnp.zeros((D,), jnp.float32))
    p["highways"] = [dict(wp=_normal(next(keys), (D, D)),
                          bp=jnp.zeros((D,), jnp.float32),
                          wt=_normal(next(keys), (D, D)),
                          bt=jnp.full((D,), -2.0, jnp.float32))  # bias.fill_(-2.0)
                     for _ in range(cfg["highway_layers"])]
    p["after_hw_ln"] = dict(g=jnp.ones((D,), jnp.float32),
                            b=jnp.zeros((D,), jnp.float32))
    p["char_ff"] = [dict(w1=_normal(next(keys), (D, 2 * D)),
                         b1=jnp.zeros((2 * D,), jnp.float32),
                         w2=_normal(next(keys), (2 * D, D)),
                         b2=jnp.zeros((D,), jnp.float32),
                         ln_g=jnp.ones((D,), jnp.float32),
                         ln_b=jnp.zeros((D,), jnp.float32))
                    for _ in range(cfg["char_ff_layers"])]
    p["bert"] = dict(
        pos_emb=_normal(next(keys), (cfg["max_position"], D)),
        tok_type_emb=_normal(next(keys), (2, D)),
        emb_ln_g=jnp.ones((D,), jnp.float32),
        emb_ln_b=jnp.zeros((D,), jnp.float32),
        layers=[dict(
            wq=_normal(next(keys), (D, D)), bq=jnp.zeros((D,), jnp.float32),
            wk=_normal(next(keys), (D, D)), bk=jnp.zeros((D,), jnp.float32),
            wv=_normal(next(keys), (D, D)), bv=jnp.zeros((D,), jnp.float32),
            wo=_normal(next(keys), (D, D)), bo=jnp.zeros((D,), jnp.float32),
            ln1_g=jnp.ones((D,), jnp.float32), ln1_b=jnp.zeros((D,), jnp.float32),
            wi=_normal(next(keys), (D, F)), bi=jnp.zeros((F,), jnp.float32),
            wo2=_normal(next(keys), (F, D)), bo2=jnp.zeros((D,), jnp.float32),
            ln2_g=jnp.ones((D,), jnp.float32), ln2_b=jnp.zeros((D,), jnp.float32),
        ) for _ in range(cfg["layers"])],
    )
    return p


@jax.jit
def run(params, data, mask):
    return encoder_forward(params, data, mask, CFG)


if __name__ == "__main__":
    key = jax.random.PRNGKey(0)
    kp, kd = jax.random.split(key)
    params = init_params(kp, CFG)

    B, L = 2, 20
    data = jax.random.randint(kd, (B, L), 0, CFG["vocab_size"], dtype=jnp.int32)
    lengths = jnp.array([20, 13])
    mask = (jnp.arange(L)[None, :] < lengths[:, None]).astype(jnp.float32)

    transformed, enc_mask, attentions = run(params, data, mask)
    jax.block_until_ready((transformed, enc_mask, attentions))

    Ls = -(-L // CFG["shrink"])
    assert transformed.shape == (B, Ls, CFG["dim"])
    assert enc_mask.shape == (B, Ls)
    assert len(attentions) == CFG["layers"]
    assert attentions[0].shape == (B, CFG["heads"], Ls, Ls)
    assert bool(jnp.isfinite(transformed).all())
    # attention rows are exact softmax distributions
    row_sums = attentions[0].sum(axis=-1)
    assert bool(jnp.allclose(row_sums, 1.0, atol=1e-3))
    print("KERNEL_OK")
</pallas_src>

<mosaic_0001>
module attributes {stable_mosaic.version = 11 : i64} {
  func.func @_encoder_kernel(%arg0: memref<3x40x16xf32, #tpu.memory_space<vmem>>, %arg1: memref<3x16x32xf32, #tpu.memory_space<vmem>>, %arg2: memref<13x32xf32, #tpu.memory_space<vmem>>, %arg3: memref<4x32x32xf32, #tpu.memory_space<vmem>>, %arg4: memref<2x32x64xf32, #tpu.memory_space<vmem>>, %arg5: memref<2x64xf32, #tpu.memory_space<vmem>>, %arg6: memref<2x64x32xf32, #tpu.memory_space<vmem>>, %arg7: memref<8x32xf32, #tpu.memory_space<vmem>>, %arg8: memref<2x1x4xf32, #tpu.memory_space<vmem>>, %arg9: memref<14x32xf32, #tpu.memory_space<vmem>>, %arg10: memref<2x32x96xf32, #tpu.memory_space<vmem>>, %arg11: memref<2x96xf32, #tpu.memory_space<vmem>>, %arg12: memref<2x32x32xf32, #tpu.memory_space<vmem>>, %arg13: memref<2x32x64xf32, #tpu.memory_space<vmem>>, %arg14: memref<2x64xf32, #tpu.memory_space<vmem>>, %arg15: memref<2x64x32xf32, #tpu.memory_space<vmem>>, %arg16: memref<8x32xf32, #tpu.memory_space<vmem>>, %arg17: memref<8x32xf32, #tpu.memory_space<vmem>>) attributes {dimension_semantics = [], scalar_prefetch = 0 : i64, scratch_operands = 0 : i64, tpu.core_type = #tpu.core_type<tc>} {
    %c0 = arith.constant 0 : index
    %c0_0 = arith.constant 0 : index
    %0 = vector.load %arg2[%c0, %c0_0] : memref<13x32xf32, #tpu.memory_space<vmem>>, vector<1x32xf32>
    %c0_1 = arith.constant 0 : index
    %c0_2 = arith.constant 0 : index
    %c0_3 = arith.constant 0 : index
    %1 = vector.load %arg0[%c0_1, %c0_2, %c0_3] : memref<3x40x16xf32, #tpu.memory_space<vmem>>, vector<1x40x16xf32>
    %2 = vector.shape_cast %1 : vector<1x40x16xf32> to vector<40x16xf32>
    %c0_4 = arith.constant 0 : index
    %c0_5 = arith.constant 0 : index
    %c0_6 = arith.constant 0 : index
    %3 = vector.load %arg1[%c0_4, %c0_5, %c0_6] : memref<3x16x32xf32, #tpu.memory_space<vmem>>, vector<1x16x32xf32>
    %4 = vector.shape_cast %3 : vector<1x16x32xf32> to vector<16x32xf32>
    %cst = arith.constant dense<0.000000e+00> : vector<40x32xf32>
    %5 = tpu.matmul %2, %4, %cst {dimension_numbers = #tpu.dot_dimension_numbers<[1], [0], [0], [1], [0, 0, 1, 1], [], []>} : vector<40x16xf32>, vector<16x32xf32>, vector<40x32xf32> -> vector<40x32xf32>
    %6 = vector.broadcast %0 : vector<1x32xf32> to vector<40x32xf32>
    %7 = arith.addf %6, %5 : vector<40x32xf32>
    %c1 = arith.constant 1 : index
    %c0_7 = arith.constant 0 : index
    %c0_8 = arith.constant 0 : index
    %8 = vector.load %arg0[%c1, %c0_7, %c0_8] : memref<3x40x16xf32, #tpu.memory_space<vmem>>, vector<1x40x16xf32>
    %9 = vector.shape_cast %8 : vector<1x40x16xf32> to vector<40x16xf32>
    %c1_9 = arith.constant 1 : index
    %c0_10 = arith.constant 0 : index
    %c0_11 = arith.constant 0 : index
    %10 = vector.load %arg1[%c1_9, %c0_10, %c0_11] : memref<3x16x32xf32, #tpu.memory_space<vmem>>, vector<1x16x32xf32>
    %11 = vector.shape_cast %10 : vector<1x16x32xf32> to vector<16x32xf32>
    %cst_12 = arith.constant dense<0.000000e+00> : vector<40x32xf32>
    %12 = tpu.matmul %9, %11, %cst_12 {dimension_numbers = #tpu.dot_dimension_numbers<[1], [0], [0], [1], [0, 0, 1, 1], [], []>} : vector<40x16xf32>, vector<16x32xf32>, vector<40x32xf32> -> vector<40x32xf32>
    %13 = arith.addf %7, %12 : vector<40x32xf32>
    %c2 = arith.constant 2 : index
    %c0_13 = arith.constant 0 : index
    %c0_14 = arith.constant 0 : index
    %14 = vector.load %arg0[%c2, %c0_13, %c0_14] : memref<3x40x16xf32, #tpu.memory_space<vmem>>, vector<1x40x16xf32>
    %15 = vector.shape_cast %14 : vector<1x40x16xf32> to vector<40x16xf32>
    %c2_15 = arith.constant 2 : index
    %c0_16 = arith.constant 0 : index
    %c0_17 = arith.constant 0 : index
    %16 = vector.load %arg1[%c2_15, %c0_16, %c0_17] : memref<3x16x32xf32, #tpu.memory_space<vmem>>, vector<1x16x32xf32>
    %17 = vector.shape_cast %16 : vector<1x16x32xf32> to vector<16x32xf32>
    %cst_18 = arith.constant dense<0.000000e+00> : vector<40x32xf32>
    %18 = tpu.matmul %15, %17, %cst_18 {dimension_numbers = #tpu.dot_dimension_numbers<[1], [0], [0], [1], [0, 0, 1, 1], [], []>} : vector<40x16xf32>, vector<16x32xf32>, vector<40x32xf32> -> vector<40x32xf32>
    %19 = arith.addf %13, %18 : vector<40x32xf32>
    %cst_19 = arith.constant 0.000000e+00 : f32
    %20 = vector.broadcast %cst_19 : f32 to vector<40x32xf32>
    %21 = arith.maximumf %19, %20 : vector<40x32xf32>
    %22 = vector.shape_cast %21 : vector<40x32xf32> to vector<8x5x32xf32>
    %cst_20 = arith.constant dense<0xFF800000> : vector<8x32xf32>
    %23 = vector.multi_reduction <maximumf>, %22, %cst_20 [1] : vector<8x5x32xf32> to vector<8x32xf32>
    %c0_21 = arith.constant 0 : index
    %c0_22 = arith.constant 0 : index
    %c0_23 = arith.constant 0 : index
    %24 = vector.load %arg3[%c0_21, %c0_22, %c0_23] : memref<4x32x32xf32, #tpu.memory_space<vmem>>, vector<1x32x32xf32>
    %25 = vector.shape_cast %24 : vector<1x32x32xf32> to vector<32x32xf32>
    %cst_24 = arith.constant dense<0.000000e+00> : vector<8x32xf32>
    %26 = tpu.matmul %23, %25, %cst_24 {dimension_numbers = #tpu.dot_dimension_numbers<[1], [0], [0], [1], [0, 0, 1, 1], [], []>} : vector<8x32xf32>, vector<32x32xf32>, vector<8x32xf32> -> vector<8x32xf32>
    %c1_25 = arith.constant 1 : index
    %c0_26 = arith.constant 0 : index
    %27 = vector.load %arg2[%c1_25, %c0_26] : memref<13x32xf32, #tpu.memory_space<vmem>>, vector<1x32xf32>
    %28 = vector.broadcast %27 : vector<1x32xf32> to vector<8x32xf32>
    %29 = arith.addf %26, %28 : vector<8x32xf32>
    %cst_27 = arith.constant 0.000000e+00 : f32
    %30 = vector.broadcast %cst_27 : f32 to vector<8x32xf32>
    %31 = arith.maximumf %29, %30 : vector<8x32xf32>
    %c2_28 = arith.constant 2 : index
    %c0_29 = arith.constant 0 : index
    %c0_30 = arith.constant 0 : index
    %32 = vector.load %arg3[%c2_28, %c0_29, %c0_30] : memref<4x32x32xf32, #tpu.memory_space<vmem>>, vector<1x32x32xf32>
    %33 = vector.shape_cast %32 : vector<1x32x32xf32> to vector<32x32xf32>
    %cst_31 = arith.constant dense<0.000000e+00> : vector<8x32xf32>
    %34 = tpu.matmul %23, %33, %cst_31 {dimension_numbers = #tpu.dot_dimension_numbers<[1], [0], [0], [1], [0, 0, 1, 1], [], []>} : vector<8x32xf32>, vector<32x32xf32>, vector<8x32xf32> -> vector<8x32xf32>
    %c3 = arith.constant 3 : index
    %c0_32 = arith.constant 0 : index
    %35 = vector.load %arg2[%c3, %c0_32] : memref<13x32xf32, #tpu.memory_space<vmem>>, vector<1x32xf32>
    %36 = vector.broadcast %35 : vector<1x32xf32> to vector<8x32xf32>
    %37 = arith.addf %34, %36 : vector<8x32xf32>
    %38 = arith.negf %37 : vector<8x32xf32>
    %39 = math.exp %38 : vector<8x32xf32>
    %cst_33 = arith.constant 1.000000e+00 : f32
    %40 = vector.broadcast %cst_33 : f32 to vector<8x32xf32>
    %41 = arith.addf %40, %39 : vector<8x32xf32>
    %42 = arith.divf %40, %41 : vector<8x32xf32>
    %43 = arith.mulf %42, %31 : vector<8x32xf32>
    %cst_34 = arith.constant 1.000000e+00 : f32
    %44 = vector.broadcast %cst_34 : f32 to vector<8x32xf32>
    %45 = arith.subf %44, %42 : vector<8x32xf32>
    %46 = arith.mulf %45, %23 : vector<8x32xf32>
    %47 = arith.addf %43, %46 : vector<8x32xf32>
    %c1_35 = arith.constant 1 : index
    %c0_36 = arith.constant 0 : index
    %c0_37 = arith.constant 0 : index
    %48 = vector.load %arg3[%c1_35, %c0_36, %c0_37] : memref<4x32x32xf32, #tpu.memory_space<vmem>>, vector<1x32x32xf32>
    %49 = vector.shape_cast %48 : vector<1x32x32xf32> to vector<32x32xf32>
    %cst_38 = arith.constant dense<0.000000e+00> : vector<8x32xf32>
    %50 = tpu.matmul %47, %49, %cst_38 {dimension_numbers = #tpu.dot_dimension_numbers<[1], [0], [0], [1], [0, 0, 1, 1], [], []>} : vector<8x32xf32>, vector<32x32xf32>, vector<8x32xf32> -> vector<8x32xf32>
    %c2_39 = arith.constant 2 : index
    %c0_40 = arith.constant 0 : index
    %51 = vector.load %arg2[%c2_39, %c0_40] : memref<13x32xf32, #tpu.memory_space<vmem>>, vector<1x32xf32>
    %52 = vector.broadcast %51 : vector<1x32xf32> to vector<8x32xf32>
    %53 = arith.addf %50, %52 : vector<8x32xf32>
    %cst_41 = arith.constant 0.000000e+00 : f32
    %54 = vector.broadcast %cst_41 : f32 to vector<8x32xf32>
    %55 = arith.maximumf %53, %54 : vector<8x32xf32>
    %c3_42 = arith.constant 3 : index
    %c0_43 = arith.constant 0 : index
    %c0_44 = arith.constant 0 : index
    %56 = vector.load %arg3[%c3_42, %c0_43, %c0_44] : memref<4x32x32xf32, #tpu.memory_space<vmem>>, vector<1x32x32xf32>
    %57 = vector.shape_cast %56 : vector<1x32x32xf32> to vector<32x32xf32>
    %cst_45 = arith.constant dense<0.000000e+00> : vector<8x32xf32>
    %58 = tpu.matmul %47, %57, %cst_45 {dimension_numbers = #tpu.dot_dimension_numbers<[1], [0], [0], [1], [0, 0, 1, 1], [], []>} : vector<8x32xf32>, vector<32x32xf32>, vector<8x32xf32> -> vector<8x32xf32>
    %c4 = arith.constant 4 : index
    %c0_46 = arith.constant 0 : index
    %59 = vector.load %arg2[%c4, %c0_46] : memref<13x32xf32, #tpu.memory_space<vmem>>, vector<1x32xf32>
    %60 = vector.broadcast %59 : vector<1x32xf32> to vector<8x32xf32>
    %61 = arith.addf %58, %60 : vector<8x32xf32>
    %62 = arith.negf %61 : vector<8x32xf32>
    %63 = math.exp %62 : vector<8x32xf32>
    %cst_47 = arith.constant 1.000000e+00 : f32
    %64 = vector.broadcast %cst_47 : f32 to vector<8x32xf32>
    %65 = arith.addf %64, %63 : vector<8x32xf32>
    %66 = arith.divf %64, %65 : vector<8x32xf32>
    %67 = arith.mulf %66, %55 : vector<8x32xf32>
    %cst_48 = arith.constant 1.000000e+00 : f32
    %68 = vector.broadcast %cst_48 : f32 to vector<8x32xf32>
    %69 = arith.subf %68, %66 : vector<8x32xf32>
    %70 = arith.mulf %69, %47 : vector<8x32xf32>
    %71 = arith.addf %67, %70 : vector<8x32xf32>
    %cst_49 = arith.constant 0.000000e+00 : f32
    %72 = vector.broadcast %cst_49 : f32 to vector<8x32xf32>
    %73 = arith.maximumf %71, %72 : vector<8x32xf32>
    %c5 = arith.constant 5 : index
    %c0_50 = arith.constant 0 : index
    %74 = vector.load %arg2[%c5, %c0_50] : memref<13x32xf32, #tpu.memory_space<vmem>>, vector<1x32xf32>
    %c6 = arith.constant 6 : index
    %c0_51 = arith.constant 0 : index
    %75 = vector.load %arg2[%c6, %c0_51] : memref<13x32xf32, #tpu.memory_space<vmem>>, vector<1x32xf32>
    %cst_52 = arith.constant dense<0.000000e+00> : vector<8xf32>
    %76 = vector.multi_reduction <add>, %73, %cst_52 [1] : vector<8x32xf32> to vector<8xf32>
    %77 = vector.shape_cast %76 : vector<8xf32> to vector<8x1xf32>
    %cst_53 = arith.constant 3.200000e+01 : f32
    %78 = vector.broadcast %cst_53 : f32 to vector<8x1xf32>
    %79 = arith.divf %77, %78 : vector<8x1xf32>
    %80 = vector.broadcast %79 : vector<8x1xf32> to vector<8x32xf32>
    %81 = arith.subf %73, %80 : vector<8x32xf32>
    %82 = arith.mulf %81, %81 : vector<8x32xf32>
    %cst_54 = arith.constant dense<0.000000e+00> : vector<8xf32>
    %83 = vector.multi_reduction <add>, %82, %cst_54 [1] : vector<8x32xf32> to vector<8xf32>
    %84 = vector.shape_cast %83 : vector<8xf32> to vector<8x1xf32>
    %cst_55 = arith.constant 3.200000e+01 : f32
    %85 = vector.broadcast %cst_55 : f32 to vector<8x1xf32>
    %86 = arith.divf %84, %85 : vector<8x1xf32>
    %87 = vector.broadcast %79 : vector<8x1xf32> to vector<8x32xf32>
    %88 = arith.subf %73, %87 : vector<8x32xf32>
    %cst_56 = arith.constant 9.99999974E-6 : f32
    %89 = vector.broadcast %cst_56 : f32 to vector<8x1xf32>
    %90 = arith.addf %86, %89 : vector<8x1xf32>
    %91 = math.rsqrt %90 : vector<8x1xf32>
    %92 = vector.broadcast %91 : vector<8x1xf32> to vector<8x32xf32>
    %93 = arith.mulf %88, %92 : vector<8x32xf32>
    %94 = vector.broadcast %74 : vector<1x32xf32> to vector<8x32xf32>
    %95 = arith.mulf %93, %94 : vector<8x32xf32>
    %96 = vector.broadcast %75 : vector<1x32xf32> to vector<8x32xf32>
    %97 = arith.addf %95, %96 : vector<8x32xf32>
    %c0_57 = arith.constant 0 : index
    %c0_58 = arith.constant 0 : index
    %c0_59 = arith.constant 0 : index
    %98 = vector.load %arg4[%c0_57, %c0_58, %c0_59] : memref<2x32x64xf32, #tpu.memory_space<vmem>>, vector<1x32x64xf32>
    %99 = vector.shape_cast %98 : vector<1x32x64xf32> to vector<32x64xf32>
    %cst_60 = arith.constant dense<0.000000e+00> : vector<8x64xf32>
    %100 = tpu.matmul %97, %99, %cst_60 {dimension_numbers = #tpu.dot_dimension_numbers<[1], [0], [0], [1], [0, 0, 1, 1], [], []>} : vector<8x32xf32>, vector<32x64xf32>, vector<8x64xf32> -> vector<8x64xf32>
    %c0_61 = arith.constant 0 : index
    %c0_62 = arith.constant 0 : index
    %101 = vector.load %arg5[%c0_61, %c0_62] : memref<2x64xf32, #tpu.memory_space<vmem>>, vector<1x64xf32>
    %102 = vector.broadcast %101 : vector<1x64xf32> to vector<8x64xf32>
    %103 = arith.addf %100, %102 : vector<8x64xf32>
    %cst_63 = arith.constant 0.000000e+00 : f32
    %104 = vector.broadcast %cst_63 : f32 to vector<8x64xf32>
    %105 = arith.maximumf %103, %104 : vector<8x64xf32>
    %c0_64 = arith.constant 0 : index
    %c0_65 = arith.constant 0 : index
    %c0_66 = arith.constant 0 : index
    %106 = vector.load %arg6[%c0_64, %c0_65, %c0_66] : memref<2x64x32xf32, #tpu.memory_space<vmem>>, vector<1x64x32xf32>
    %107 = vector.shape_cast %106 : vector<1x64x32xf32> to vector<64x32xf32>
    %cst_67 = arith.constant dense<0.000000e+00> : vector<8x32xf32>
    %108 = tpu.matmul %105, %107, %cst_67 {dimension_numbers = #tpu.dot_dimension_numbers<[1], [0], [0], [1], [0, 0, 1, 1], [], []>} : vector<8x64xf32>, vector<64x32xf32>, vector<8x32xf32> -> vector<8x32xf32>
    %c7 = arith.constant 7 : index
    %c0_68 = arith.constant 0 : index
    %109 = vector.load %arg2[%c7, %c0_68] : memref<13x32xf32, #tpu.memory_space<vmem>>, vector<1x32xf32>
    %110 = vector.broadcast %109 : vector<1x32xf32> to vector<8x32xf32>
    %111 = arith.addf %108, %110 : vector<8x32xf32>
    %112 = arith.addf %111, %97 : vector<8x32xf32>
    %c9 = arith.constant 9 : index
    %c0_69 = arith.constant 0 : index
    %113 = vector.load %arg2[%c9, %c0_69] : memref<13x32xf32, #tpu.memory_space<vmem>>, vector<1x32xf32>
    %c11 = arith.constant 11 : index
    %c0_70 = arith.constant 0 : index
    %114 = vector.load %arg2[%c11, %c0_70] : memref<13x32xf32, #tpu.memory_space<vmem>>, vector<1x32xf32>
    %cst_71 = arith.constant dense<0.000000e+00> : vector<8xf32>
    %115 = vector.multi_reduction <add>, %112, %cst_71 [1] : vector<8x32xf32> to vector<8xf32>
    %116 = vector.shape_cast %115 : vector<8xf32> to vector<8x1xf32>
    %cst_72 = arith.constant 3.200000e+01 : f32
    %117 = vector.broadcast %cst_72 : f32 to vector<8x1xf32>
    %118 = arith.divf %116, %117 : vector<8x1xf32>
    %119 = vector.broadcast %118 : vector<8x1xf32> to vector<8x32xf32>
    %120 = arith.subf %112, %119 : vector<8x32xf32>
    %121 = arith.mulf %120, %120 : vector<8x32xf32>
    %cst_73 = arith.constant dense<0.000000e+00> : vector<8xf32>
    %122 = vector.multi_reduction <add>, %121, %cst_73 [1] : vector<8x32xf32> to vector<8xf32>
    %123 = vector.shape_cast %122 : vector<8xf32> to vector<8x1xf32>
    %cst_74 = arith.constant 3.200000e+01 : f32
    %124 = vector.broadcast %cst_74 : f32 to vector<8x1xf32>
    %125 = arith.divf %123, %124 : vector<8x1xf32>
    %126 = vector.broadcast %118 : vector<8x1xf32> to vector<8x32xf32>
    %127 = arith.subf %112, %126 : vector<8x32xf32>
    %cst_75 = arith.constant 9.99999974E-6 : f32
    %128 = vector.broadcast %cst_75 : f32 to vector<8x1xf32>
    %129 = arith.addf %125, %128 : vector<8x1xf32>
    %130 = math.rsqrt %129 : vector<8x1xf32>
    %131 = vector.broadcast %130 : vector<8x1xf32> to vector<8x32xf32>
    %132 = arith.mulf %127, %131 : vector<8x32xf32>
    %133 = vector.broadcast %113 : vector<1x32xf32> to vector<8x32xf32>
    %134 = arith.mulf %132, %133 : vector<8x32xf32>
    %135 = vector.broadcast %114 : vector<1x32xf32> to vector<8x32xf32>
    %136 = arith.addf %134, %135 : vector<8x32xf32>
    %c1_76 = arith.constant 1 : index
    %c0_77 = arith.constant 0 : index
    %c0_78 = arith.constant 0 : index
    %137 = vector.load %arg4[%c1_76, %c0_77, %c0_78] : memref<2x32x64xf32, #tpu.memory_space<vmem>>, vector<1x32x64xf32>
    %138 = vector.shape_cast %137 : vector<1x32x64xf32> to vector<32x64xf32>
    %cst_79 = arith.constant dense<0.000000e+00> : vector<8x64xf32>
    %139 = tpu.matmul %136, %138, %cst_79 {dimension_numbers = #tpu.dot_dimension_numbers<[1], [0], [0], [1], [0, 0, 1, 1], [], []>} : vector<8x32xf32>, vector<32x64xf32>, vector<8x64xf32> -> vector<8x64xf32>
    %c1_80 = arith.constant 1 : index
    %c0_81 = arith.constant 0 : index
    %140 = vector.load %arg5[%c1_80, %c0_81] : memref<2x64xf32, #tpu.memory_space<vmem>>, vector<1x64xf32>
    %141 = vector.broadcast %140 : vector<1x64xf32> to vector<8x64xf32>
    %142 = arith.addf %139, %141 : vector<8x64xf32>
    %cst_82 = arith.constant 0.000000e+00 : f32
    %143 = vector.broadcast %cst_82 : f32 to vector<8x64xf32>
    %144 = arith.maximumf %142, %143 : vector<8x64xf32>
    %c1_83 = arith.constant 1 : index
    %c0_84 = arith.constant 0 : index
    %c0_85 = arith.constant 0 : index
    %145 = vector.load %arg6[%c1_83, %c0_84, %c0_85] : memref<2x64x32xf32, #tpu.memory_space<vmem>>, vector<1x64x32xf32>
    %146 = vector.shape_cast %145 : vector<1x64x32xf32> to vector<64x32xf32>
    %cst_86 = arith.constant dense<0.000000e+00> : vector<8x32xf32>
    %147 = tpu.matmul %144, %146, %cst_86 {dimension_numbers = #tpu.dot_dimension_numbers<[1], [0], [0], [1], [0, 0, 1, 1], [], []>} : vector<8x64xf32>, vector<64x32xf32>, vector<8x32xf32> -> vector<8x32xf32>
    %c8 = arith.constant 8 : index
    %c0_87 = arith.constant 0 : index
    %148 = vector.load %arg2[%c8, %c0_87] : memref<13x32xf32, #tpu.memory_space<vmem>>, vector<1x32xf32>
    %149 = vector.broadcast %148 : vector<1x32xf32> to vector<8x32xf32>
    %150 = arith.addf %147, %149 : vector<8x32xf32>
    %151 = arith.addf %150, %136 : vector<8x32xf32>
    %c10 = arith.constant 10 : index
    %c0_88 = arith.constant 0 : index
    %152 = vector.load %arg2[%c10, %c0_88] : memref<13x32xf32, #tpu.memory_space<vmem>>, vector<1x32xf32>
    %c12 = arith.constant 12 : index
    %c0_89 = arith.constant 0 : index
    %153 = vector.load %arg2[%c12, %c0_89] : memref<13x32xf32, #tpu.memory_space<vmem>>, vector<1x32xf32>
    %cst_90 = arith.constant dense<0.000000e+00> : vector<8xf32>
    %154 = vector.multi_reduction <add>, %151, %cst_90 [1] : vector<8x32xf32> to vector<8xf32>
    %155 = vector.shape_cast %154 : vector<8xf32> to vector<8x1xf32>
    %cst_91 = arith.constant 3.200000e+01 : f32
    %156 = vector.broadcast %cst_91 : f32 to vector<8x1xf32>
    %157 = arith.divf %155, %156 : vector<8x1xf32>
    %158 = vector.broadcast %157 : vector<8x1xf32> to vector<8x32xf32>
    %159 = arith.subf %151, %158 : vector<8x32xf32>
    %160 = arith.mulf %159, %159 : vector<8x32xf32>
    %cst_92 = arith.constant dense<0.000000e+00> : vector<8xf32>
    %161 = vector.multi_reduction <add>, %160, %cst_92 [1] : vector<8x32xf32> to vector<8xf32>
    %162 = vector.shape_cast %161 : vector<8xf32> to vector<8x1xf32>
    %cst_93 = arith.constant 3.200000e+01 : f32
    %163 = vector.broadcast %cst_93 : f32 to vector<8x1xf32>
    %164 = arith.divf %162, %163 : vector<8x1xf32>
    %165 = vector.broadcast %157 : vector<8x1xf32> to vector<8x32xf32>
    %166 = arith.subf %151, %165 : vector<8x32xf32>
    %cst_94 = arith.constant 9.99999974E-6 : f32
    %167 = vector.broadcast %cst_94 : f32 to vector<8x1xf32>
    %168 = arith.addf %164, %167 : vector<8x1xf32>
    %169 = math.rsqrt %168 : vector<8x1xf32>
    %170 = vector.broadcast %169 : vector<8x1xf32> to vector<8x32xf32>
    %171 = arith.mulf %166, %170 : vector<8x32xf32>
    %172 = vector.broadcast %152 : vector<1x32xf32> to vector<8x32xf32>
    %173 = arith.mulf %171, %172 : vector<8x32xf32>
    %174 = vector.broadcast %153 : vector<1x32xf32> to vector<8x32xf32>
    %175 = arith.addf %173, %174 : vector<8x32xf32>
    %c0_95 = arith.constant 0 : index
    %c0_96 = arith.constant 0 : index
    %176 = vector.load %arg7[%c0_95, %c0_96] : memref<8x32xf32, #tpu.memory_space<vmem>>, vector<8x32xf32>
    %177 = arith.addf %175, %176 : vector<8x32xf32>
    %c0_97 = arith.constant 0 : index
    %c0_98 = arith.constant 0 : index
    %178 = vector.load %arg9[%c0_97, %c0_98] : memref<14x32xf32, #tpu.memory_space<vmem>>, vector<1x32xf32>
    %c1_99 = arith.constant 1 : index
    %c0_100 = arith.constant 0 : index
    %179 = vector.load %arg9[%c1_99, %c0_100] : memref<14x32xf32, #tpu.memory_space<vmem>>, vector<1x32xf32>
    %cst_101 = arith.constant dense<0.000000e+00> : vector<8xf32>
    %180 = vector.multi_reduction <add>, %177, %cst_101 [1] : vector<8x32xf32> to vector<8xf32>
    %181 = vector.shape_cast %180 : vector<8xf32> to vector<8x1xf32>
    %cst_102 = arith.constant 3.200000e+01 : f32
    %182 = vector.broadcast %cst_102 : f32 to vector<8x1xf32>
    %183 = arith.divf %181, %182 : vector<8x1xf32>
    %184 = vector.broadcast %183 : vector<8x1xf32> to vector<8x32xf32>
    %185 = arith.subf %177, %184 : vector<8x32xf32>
    %186 = arith.mulf %185, %185 : vector<8x32xf32>
    %cst_103 = arith.constant dense<0.000000e+00> : vector<8xf32>
    %187 = vector.multi_reduction <add>, %186, %cst_103 [1] : vector<8x32xf32> to vector<8xf32>
    %188 = vector.shape_cast %187 : vector<8xf32> to vector<8x1xf32>
    %cst_104 = arith.constant 3.200000e+01 : f32
    %189 = vector.broadcast %cst_104 : f32 to vector<8x1xf32>
    %190 = arith.divf %188, %189 : vector<8x1xf32>
    %191 = vector.broadcast %183 : vector<8x1xf32> to vector<8x32xf32>
    %192 = arith.subf %177, %191 : vector<8x32xf32>
    %cst_105 = arith.constant 9.99999996E-13 : f32
    %193 = vector.broadcast %cst_105 : f32 to vector<8x1xf32>
    %194 = arith.addf %190, %193 : vector<8x1xf32>
    %195 = math.rsqrt %194 : vector<8x1xf32>
    %196 = vector.broadcast %195 : vector<8x1xf32> to vector<8x32xf32>
    %197 = arith.mulf %192, %196 : vector<8x32xf32>
    %198 = vector.broadcast %178 : vector<1x32xf32> to vector<8x32xf32>
    %199 = arith.mulf %197, %198 : vector<8x32xf32>
    %200 = vector.broadcast %179 : vector<1x32xf32> to vector<8x32xf32>
    %201 = arith.addf %199, %200 : vector<8x32xf32>
    %c0_106 = arith.constant 0 : index
    %c0_107 = arith.constant 0 : index
    %c0_108 = arith.constant 0 : index
    %202 = vector.load %arg8[%c0_106, %c0_107, %c0_108] : memref<2x1x4xf32, #tpu.memory_space<vmem>>, vector<2x1x4xf32>
    %c0_109 = arith.constant 0 : index
    %c0_110 = arith.constant 0 : index
    %c0_111 = arith.constant 0 : index
    %203 = vector.load %arg10[%c0_109, %c0_110, %c0_111] : memref<2x32x96xf32, #tpu.memory_space<vmem>>, vector<1x32x96xf32>
    %204 = vector.shape_cast %203 : vector<1x32x96xf32> to vector<32x96xf32>
    %cst_112 = arith.constant dense<0.000000e+00> : vector<8x96xf32>
    %205 = tpu.matmul %201, %204, %cst_112 {dimension_numbers = #tpu.dot_dimension_numbers<[1], [0], [0], [1], [0, 0, 1, 1], [], []>} : vector<8x32xf32>, vector<32x96xf32>, vector<8x96xf32> -> vector<8x96xf32>
    %c0_113 = arith.constant 0 : index
    %c0_114 = arith.constant 0 : index
    %206 = vector.load %arg11[%c0_113, %c0_114] : memref<2x96xf32, #tpu.memory_space<vmem>>, vector<1x96xf32>
    %207 = vector.broadcast %206 : vector<1x96xf32> to vector<8x96xf32>
    %208 = arith.addf %205, %207 : vector<8x96xf32>
    %209 = vector.extract_strided_slice %208 {offsets = [0, 0], sizes = [8, 8], strides = [1, 1]} : vector<8x96xf32> to vector<8x8xf32>
    %210 = vector.shape_cast %209 : vector<8x8xf32> to vector<2x4x8xf32>
    %211 = vector.extract_strided_slice %208 {offsets = [0, 32], sizes = [8, 8], strides = [1, 1]} : vector<8x96xf32> to vector<8x8xf32>
    %212 = vector.shape_cast %211 : vector<8x8xf32> to vector<2x4x8xf32>
    %213 = vector.extract_strided_slice %208 {offsets = [0, 64], sizes = [8, 8], strides = [1, 1]} : vector<8x96xf32> to vector<8x8xf32>
    %214 = vector.shape_cast %213 : vector<8x8xf32> to vector<2x4x8xf32>
    "tpu.trace_start"() <{level = 10 : i32, message = "bqd,bkd->bqk"}> : () -> ()
    %cst_115 = arith.constant dense<0.000000e+00> : vector<2x4x4xf32>
    %215 = tpu.matmul %210, %212, %cst_115 {dimension_numbers = #tpu.dot_dimension_numbers<[2], [2], [1], [1], [0, 0, 0, 1, 1, 1], [0], [0]>} : vector<2x4x8xf32>, vector<2x4x8xf32>, vector<2x4x4xf32> -> vector<2x4x4xf32>
    "tpu.trace_stop"() : () -> ()
    %cst_116 = arith.constant 0.353553385 : f32
    %216 = vector.broadcast %cst_116 : f32 to vector<2x4x4xf32>
    %217 = arith.mulf %215, %216 : vector<2x4x4xf32>
    %218 = vector.broadcast %202 : vector<2x1x4xf32> to vector<2x4x4xf32>
    %219 = arith.addf %217, %218 : vector<2x4x4xf32>
    %cst_117 = arith.constant dense<0xFF800000> : vector<2x4xf32>
    %220 = vector.multi_reduction <maximumf>, %219, %cst_117 [2] : vector<2x4x4xf32> to vector<2x4xf32>
    %221 = vector.shape_cast %220 : vector<2x4xf32> to vector<2x4x1xf32>
    %222 = vector.broadcast %221 : vector<2x4x1xf32> to vector<2x4x4xf32>
    %223 = arith.subf %219, %222 : vector<2x4x4xf32>
    %224 = math.exp %223 : vector<2x4x4xf32>
    %cst_118 = arith.constant dense<0.000000e+00> : vector<2x4xf32>
    %225 = vector.multi_reduction <add>, %224, %cst_118 [2] : vector<2x4x4xf32> to vector<2x4xf32>
    %226 = vector.shape_cast %225 : vector<2x4xf32> to vector<2x4x1xf32>
    %227 = vector.broadcast %226 : vector<2x4x1xf32> to vector<2x4x4xf32>
    %228 = arith.divf %224, %227 : vector<2x4x4xf32>
    %229 = vector.shape_cast %228 : vector<2x4x4xf32> to vector<8x4xf32>
    "tpu.trace_start"() <{level = 10 : i32, message = "bqk,bkd->bqd"}> : () -> ()
    %cst_119 = arith.constant dense<0.000000e+00> : vector<2x4x8xf32>
    %230 = tpu.matmul %228, %214, %cst_119 {dimension_numbers = #tpu.dot_dimension_numbers<[2], [1], [1], [2], [0, 0, 0, 1, 1, 2], [0], [0]>} : vector<2x4x4xf32>, vector<2x4x8xf32>, vector<2x4x8xf32> -> vector<2x4x8xf32>
    "tpu.trace_stop"() : () -> ()
    %231 = vector.shape_cast %230 : vector<2x4x8xf32> to vector<8x8xf32>
    %232 = vector.extract_strided_slice %208 {offsets = [0, 8], sizes = [8, 8], strides = [1, 1]} : vector<8x96xf32> to vector<8x8xf32>
    %233 = vector.shape_cast %232 : vector<8x8xf32> to vector<2x4x8xf32>
    %234 = vector.extract_strided_slice %208 {offsets = [0, 40], sizes = [8, 8], strides = [1, 1]} : vector<8x96xf32> to vector<8x8xf32>
    %235 = vector.shape_cast %234 : vector<8x8xf32> to vector<2x4x8xf32>
    %236 = vector.extract_strided_slice %208 {offsets = [0, 72], sizes = [8, 8], strides = [1, 1]} : vector<8x96xf32> to vector<8x8xf32>
    %237 = vector.shape_cast %236 : vector<8x8xf32> to vector<2x4x8xf32>
    "tpu.trace_start"() <{level = 10 : i32, message = "bqd,bkd->bqk"}> : () -> ()
    %cst_120 = arith.constant dense<0.000000e+00> : vector<2x4x4xf32>
    %238 = tpu.matmul %233, %235, %cst_120 {dimension_numbers = #tpu.dot_dimension_numbers<[2], [2], [1], [1], [0, 0, 0, 1, 1, 1], [0], [0]>} : vector<2x4x8xf32>, vector<2x4x8xf32>, vector<2x4x4xf32> -> vector<2x4x4xf32>
    "tpu.trace_stop"() : () -> ()
    %cst_121 = arith.constant 0.353553385 : f32
    %239 = vector.broadcast %cst_121 : f32 to vector<2x4x4xf32>
    %240 = arith.mulf %238, %239 : vector<2x4x4xf32>
    %241 = vector.broadcast %202 : vector<2x1x4xf32> to vector<2x4x4xf32>
    %242 = arith.addf %240, %241 : vector<2x4x4xf32>
    %cst_122 = arith.constant dense<0xFF800000> : vector<2x4xf32>
    %243 = vector.multi_reduction <maximumf>, %242, %cst_122 [2] : vector<2x4x4xf32> to vector<2x4xf32>
    %244 = vector.shape_cast %243 : vector<2x4xf32> to vector<2x4x1xf32>
    %245 = vector.broadcast %244 : vector<2x4x1xf32> to vector<2x4x4xf32>
    %246 = arith.subf %242, %245 : vector<2x4x4xf32>
    %247 = math.exp %246 : vector<2x4x4xf32>
    %cst_123 = arith.constant dense<0.000000e+00> : vector<2x4xf32>
    %248 = vector.multi_reduction <add>, %247, %cst_123 [2] : vector<2x4x4xf32> to vector<2x4xf32>
    %249 = vector.shape_cast %248 : vector<2x4xf32> to vector<2x4x1xf32>
    %250 = vector.broadcast %249 : vector<2x4x1xf32> to vector<2x4x4xf32>
    %251 = arith.divf %247, %250 : vector<2x4x4xf32>
    %252 = vector.shape_cast %251 : vector<2x4x4xf32> to vector<8x4xf32>
    "tpu.trace_start"() <{level = 10 : i32, message = "bqk,bkd->bqd"}> : () -> ()
    %cst_124 = arith.constant dense<0.000000e+00> : vector<2x4x8xf32>
    %253 = tpu.matmul %251, %237, %cst_124 {dimension_numbers = #tpu.dot_dimension_numbers<[2], [1], [1], [2], [0, 0, 0, 1, 1, 2], [0], [0]>} : vector<2x4x4xf32>, vector<2x4x8xf32>, vector<2x4x8xf32> -> vector<2x4x8xf32>
    "tpu.trace_stop"() : () -> ()
    %254 = vector.shape_cast %253 : vector<2x4x8xf32> to vector<8x8xf32>
    %255 = vector.extract_strided_slice %208 {offsets = [0, 16], sizes = [8, 8], strides = [1, 1]} : vector<8x96xf32> to vector<8x8xf32>
    %256 = vector.shape_cast %255 : vector<8x8xf32> to vector<2x4x8xf32>
    %257 = vector.extract_strided_slice %208 {offsets = [0, 48], sizes = [8, 8], strides = [1, 1]} : vector<8x96xf32> to vector<8x8xf32>
    %258 = vector.shape_cast %257 : vector<8x8xf32> to vector<2x4x8xf32>
    %259 = vector.extract_strided_slice %208 {offsets = [0, 80], sizes = [8, 8], strides = [1, 1]} : vector<8x96xf32> to vector<8x8xf32>
    %260 = vector.shape_cast %259 : vector<8x8xf32> to vector<2x4x8xf32>
    "tpu.trace_start"() <{level = 10 : i32, message = "bqd,bkd->bqk"}> : () -> ()
    %cst_125 = arith.constant dense<0.000000e+00> : vector<2x4x4xf32>
    %261 = tpu.matmul %256, %258, %cst_125 {dimension_numbers = #tpu.dot_dimension_numbers<[2], [2], [1], [1], [0, 0, 0, 1, 1, 1], [0], [0]>} : vector<2x4x8xf32>, vector<2x4x8xf32>, vector<2x4x4xf32> -> vector<2x4x4xf32>
    "tpu.trace_stop"() : () -> ()
    %cst_126 = arith.constant 0.353553385 : f32
    %262 = vector.broadcast %cst_126 : f32 to vector<2x4x4xf32>
    %263 = arith.mulf %261, %262 : vector<2x4x4xf32>
    %264 = vector.broadcast %202 : vector<2x1x4xf32> to vector<2x4x4xf32>
    %265 = arith.addf %263, %264 : vector<2x4x4xf32>
    %cst_127 = arith.constant dense<0xFF800000> : vector<2x4xf32>
    %266 = vector.multi_reduction <maximumf>, %265, %cst_127 [2] : vector<2x4x4xf32> to vector<2x4xf32>
    %267 = vector.shape_cast %266 : vector<2x4xf32> to vector<2x4x1xf32>
    %268 = vector.broadcast %267 : vector<2x4x1xf32> to vector<2x4x4xf32>
    %269 = arith.subf %265, %268 : vector<2x4x4xf32>
    %270 = math.exp %269 : vector<2x4x4xf32>
    %cst_128 = arith.constant dense<0.000000e+00> : vector<2x4xf32>
    %271 = vector.multi_reduction <add>, %270, %cst_128 [2] : vector<2x4x4xf32> to vector<2x4xf32>
    %272 = vector.shape_cast %271 : vector<2x4xf32> to vector<2x4x1xf32>
    %273 = vector.broadcast %272 : vector<2x4x1xf32> to vector<2x4x4xf32>
    %274 = arith.divf %270, %273 : vector<2x4x4xf32>
    %275 = vector.shape_cast %274 : vector<2x4x4xf32> to vector<8x4xf32>
    "tpu.trace_start"() <{level = 10 : i32, message = "bqk,bkd->bqd"}> : () -> ()
    %cst_129 = arith.constant dense<0.000000e+00> : vector<2x4x8xf32>
    %276 = tpu.matmul %274, %260, %cst_129 {dimension_numbers = #tpu.dot_dimension_numbers<[2], [1], [1], [2], [0, 0, 0, 1, 1, 2], [0], [0]>} : vector<2x4x4xf32>, vector<2x4x8xf32>, vector<2x4x8xf32> -> vector<2x4x8xf32>
    "tpu.trace_stop"() : () -> ()
    %277 = vector.shape_cast %276 : vector<2x4x8xf32> to vector<8x8xf32>
    %278 = vector.extract_strided_slice %208 {offsets = [0, 24], sizes = [8, 8], strides = [1, 1]} : vector<8x96xf32> to vector<8x8xf32>
    %279 = vector.shape_cast %278 : vector<8x8xf32> to vector<2x4x8xf32>
    %280 = vector.extract_strided_slice %208 {offsets = [0, 56], sizes = [8, 8], strides = [1, 1]} : vector<8x96xf32> to vector<8x8xf32>
    %281 = vector.shape_cast %280 : vector<8x8xf32> to vector<2x4x8xf32>
    %282 = vector.extract_strided_slice %208 {offsets = [0, 88], sizes = [8, 8], strides = [1, 1]} : vector<8x96xf32> to vector<8x8xf32>
    %283 = vector.shape_cast %282 : vector<8x8xf32> to vector<2x4x8xf32>
    "tpu.trace_start"() <{level = 10 : i32, message = "bqd,bkd->bqk"}> : () -> ()
    %cst_130 = arith.constant dense<0.000000e+00> : vector<2x4x4xf32>
    %284 = tpu.matmul %279, %281, %cst_130 {dimension_numbers = #tpu.dot_dimension_numbers<[2], [2], [1], [1], [0, 0, 0, 1, 1, 1], [0], [0]>} : vector<2x4x8xf32>, vector<2x4x8xf32>, vector<2x4x4xf32> -> vector<2x4x4xf32>
    "tpu.trace_stop"() : () -> ()
    %cst_131 = arith.constant 0.353553385 : f32
    %285 = vector.broadcast %cst_131 : f32 to vector<2x4x4xf32>
    %286 = arith.mulf %284, %285 : vector<2x4x4xf32>
    %287 = vector.broadcast %202 : vector<2x1x4xf32> to vector<2x4x4xf32>
    %288 = arith.addf %286, %287 : vector<2x4x4xf32>
    %cst_132 = arith.constant dense<0xFF800000> : vector<2x4xf32>
    %289 = vector.multi_reduction <maximumf>, %288, %cst_132 [2] : vector<2x4x4xf32> to vector<2x4xf32>
    %290 = vector.shape_cast %289 : vector<2x4xf32> to vector<2x4x1xf32>
    %291 = vector.broadcast %290 : vector<2x4x1xf32> to vector<2x4x4xf32>
    %292 = arith.subf %288, %291 : vector<2x4x4xf32>
    %293 = math.exp %292 : vector<2x4x4xf32>
    %cst_133 = arith.constant dense<0.000000e+00> : vector<2x4xf32>
    %294 = vector.multi_reduction <add>, %293, %cst_133 [2] : vector<2x4x4xf32> to vector<2x4xf32>
    %295 = vector.shape_cast %294 : vector<2x4xf32> to vector<2x4x1xf32>
    %296 = vector.broadcast %295 : vector<2x4x1xf32> to vector<2x4x4xf32>
    %297 = arith.divf %293, %296 : vector<2x4x4xf32>
    %298 = vector.shape_cast %297 : vector<2x4x4xf32> to vector<8x4xf32>
    "tpu.trace_start"() <{level = 10 : i32, message = "bqk,bkd->bqd"}> : () -> ()
    %cst_134 = arith.constant dense<0.000000e+00> : vector<2x4x8xf32>
    %299 = tpu.matmul %297, %283, %cst_134 {dimension_numbers = #tpu.dot_dimension_numbers<[2], [1], [1], [2], [0, 0, 0, 1, 1, 2], [0], [0]>} : vector<2x4x4xf32>, vector<2x4x8xf32>, vector<2x4x8xf32> -> vector<2x4x8xf32>
    "tpu.trace_stop"() : () -> ()
    %300 = vector.shape_cast %299 : vector<2x4x8xf32> to vector<8x8xf32>
    %301 = tpu.concatenate %231, %254, %277, %300 in 1 : vector<8x8xf32>, vector<8x8xf32>, vector<8x8xf32>, vector<8x8xf32> -> vector<8x32xf32>
    %c0_135 = arith.constant 0 : index
    %c0_136 = arith.constant 0 : index
    %c0_137 = arith.constant 0 : index
    %302 = vector.load %arg12[%c0_135, %c0_136, %c0_137] : memref<2x32x32xf32, #tpu.memory_space<vmem>>, vector<1x32x32xf32>
    %303 = vector.shape_cast %302 : vector<1x32x32xf32> to vector<32x32xf32>
    %cst_138 = arith.constant dense<0.000000e+00> : vector<8x32xf32>
    %304 = tpu.matmul %301, %303, %cst_138 {dimension_numbers = #tpu.dot_dimension_numbers<[1], [0], [0], [1], [0, 0, 1, 1], [], []>} : vector<8x32xf32>, vector<32x32xf32>, vector<8x32xf32> -> vector<8x32xf32>
    %c2_139 = arith.constant 2 : index
    %c0_140 = arith.constant 0 : index
    %305 = vector.load %arg9[%c2_139, %c0_140] : memref<14x32xf32, #tpu.memory_space<vmem>>, vector<1x32xf32>
    %306 = vector.broadcast %305 : vector<1x32xf32> to vector<8x32xf32>
    %307 = arith.addf %304, %306 : vector<8x32xf32>
    %308 = arith.addf %307, %201 : vector<8x32xf32>
    %c4_141 = arith.constant 4 : index
    %c0_142 = arith.constant 0 : index
    %309 = vector.load %arg9[%c4_141, %c0_142] : memref<14x32xf32, #tpu.memory_space<vmem>>, vector<1x32xf32>
    %c6_143 = arith.constant 6 : index
    %c0_144 = arith.constant 0 : index
    %310 = vector.load %arg9[%c6_143, %c0_144] : memref<14x32xf32, #tpu.memory_space<vmem>>, vector<1x32xf32>
    %cst_145 = arith.constant dense<0.000000e+00> : vector<8xf32>
    %311 = vector.multi_reduction <add>, %308, %cst_145 [1] : vector<8x32xf32> to vector<8xf32>
    %312 = vector.shape_cast %311 : vector<8xf32> to vector<8x1xf32>
    %cst_146 = arith.constant 3.200000e+01 : f32
    %313 = vector.broadcast %cst_146 : f32 to vector<8x1xf32>
    %314 = arith.divf %312, %313 : vector<8x1xf32>
    %315 = vector.broadcast %314 : vector<8x1xf32> to vector<8x32xf32>
    %316 = arith.subf %308, %315 : vector<8x32xf32>
    %317 = arith.mulf %316, %316 : vector<8x32xf32>
    %cst_147 = arith.constant dense<0.000000e+00> : vector<8xf32>
    %318 = vector.multi_reduction <add>, %317, %cst_147 [1] : vector<8x32xf32> to vector<8xf32>
    %319 = vector.shape_cast %318 : vector<8xf32> to vector<8x1xf32>
    %cst_148 = arith.constant 3.200000e+01 : f32
    %320 = vector.broadcast %cst_148 : f32 to vector<8x1xf32>
    %321 = arith.divf %319, %320 : vector<8x1xf32>
    %322 = vector.broadcast %314 : vector<8x1xf32> to vector<8x32xf32>
    %323 = arith.subf %308, %322 : vector<8x32xf32>
    %cst_149 = arith.constant 9.99999996E-13 : f32
    %324 = vector.broadcast %cst_149 : f32 to vector<8x1xf32>
    %325 = arith.addf %321, %324 : vector<8x1xf32>
    %326 = math.rsqrt %325 : vector<8x1xf32>
    %327 = vector.broadcast %326 : vector<8x1xf32> to vector<8x32xf32>
    %328 = arith.mulf %323, %327 : vector<8x32xf32>
    %329 = vector.broadcast %309 : vector<1x32xf32> to vector<8x32xf32>
    %330 = arith.mulf %328, %329 : vector<8x32xf32>
    %331 = vector.broadcast %310 : vector<1x32xf32> to vector<8x32xf32>
    %332 = arith.addf %330, %331 : vector<8x32xf32>
    %c0_150 = arith.constant 0 : index
    %c0_151 = arith.constant 0 : index
    %c0_152 = arith.constant 0 : index
    %333 = vector.load %arg13[%c0_150, %c0_151, %c0_152] : memref<2x32x64xf32, #tpu.memory_space<vmem>>, vector<1x32x64xf32>
    %334 = vector.shape_cast %333 : vector<1x32x64xf32> to vector<32x64xf32>
    %cst_153 = arith.constant dense<0.000000e+00> : vector<8x64xf32>
    %335 = tpu.matmul %332, %334, %cst_153 {dimension_numbers = #tpu.dot_dimension_numbers<[1], [0], [0], [1], [0, 0, 1, 1], [], []>} : vector<8x32xf32>, vector<32x64xf32>, vector<8x64xf32> -> vector<8x64xf32>
    %c0_154 = arith.constant 0 : index
    %c0_155 = arith.constant 0 : index
    %336 = vector.load %arg14[%c0_154, %c0_155] : memref<2x64xf32, #tpu.memory_space<vmem>>, vector<1x64xf32>
    %337 = vector.broadcast %336 : vector<1x64xf32> to vector<8x64xf32>
    %338 = arith.addf %335, %337 : vector<8x64xf32>
    %cst_156 = arith.constant 0.000000e+00 : f32
    %339 = vector.broadcast %cst_156 : f32 to vector<8x64xf32>
    %340 = arith.maximumf %338, %339 : vector<8x64xf32>
    %c0_157 = arith.constant 0 : index
    %c0_158 = arith.constant 0 : index
    %c0_159 = arith.constant 0 : index
    %341 = vector.load %arg15[%c0_157, %c0_158, %c0_159] : memref<2x64x32xf32, #tpu.memory_space<vmem>>, vector<1x64x32xf32>
    %342 = vector.shape_cast %341 : vector<1x64x32xf32> to vector<64x32xf32>
    %cst_160 = arith.constant dense<0.000000e+00> : vector<8x32xf32>
    %343 = tpu.matmul %340, %342, %cst_160 {dimension_numbers = #tpu.dot_dimension_numbers<[1], [0], [0], [1], [0, 0, 1, 1], [], []>} : vector<8x64xf32>, vector<64x32xf32>, vector<8x32xf32> -> vector<8x32xf32>
    %c8_161 = arith.constant 8 : index
    %c0_162 = arith.constant 0 : index
    %344 = vector.load %arg9[%c8_161, %c0_162] : memref<14x32xf32, #tpu.memory_space<vmem>>, vector<1x32xf32>
    %345 = vector.broadcast %344 : vector<1x32xf32> to vector<8x32xf32>
    %346 = arith.addf %343, %345 : vector<8x32xf32>
    %347 = arith.addf %346, %332 : vector<8x32xf32>
    %c10_163 = arith.constant 10 : index
    %c0_164 = arith.constant 0 : index
    %348 = vector.load %arg9[%c10_163, %c0_164] : memref<14x32xf32, #tpu.memory_space<vmem>>, vector<1x32xf32>
    %c12_165 = arith.constant 12 : index
    %c0_166 = arith.constant 0 : index
    %349 = vector.load %arg9[%c12_165, %c0_166] : memref<14x32xf32, #tpu.memory_space<vmem>>, vector<1x32xf32>
    %cst_167 = arith.constant dense<0.000000e+00> : vector<8xf32>
    %350 = vector.multi_reduction <add>, %347, %cst_167 [1] : vector<8x32xf32> to vector<8xf32>
    %351 = vector.shape_cast %350 : vector<8xf32> to vector<8x1xf32>
    %cst_168 = arith.constant 3.200000e+01 : f32
    %352 = vector.broadcast %cst_168 : f32 to vector<8x1xf32>
    %353 = arith.divf %351, %352 : vector<8x1xf32>
    %354 = vector.broadcast %353 : vector<8x1xf32> to vector<8x32xf32>
    %355 = arith.subf %347, %354 : vector<8x32xf32>
    %356 = arith.mulf %355, %355 : vector<8x32xf32>
    %cst_169 = arith.constant dense<0.000000e+00> : vector<8xf32>
    %357 = vector.multi_reduction <add>, %356, %cst_169 [1] : vector<8x32xf32> to vector<8xf32>
    %358 = vector.shape_cast %357 : vector<8xf32> to vector<8x1xf32>
    %cst_170 = arith.constant 3.200000e+01 : f32
    %359 = vector.broadcast %cst_170 : f32 to vector<8x1xf32>
    %360 = arith.divf %358, %359 : vector<8x1xf32>
    %361 = vector.broadcast %353 : vector<8x1xf32> to vector<8x32xf32>
    %362 = arith.subf %347, %361 : vector<8x32xf32>
    %cst_171 = arith.constant 9.99999996E-13 : f32
    %363 = vector.broadcast %cst_171 : f32 to vector<8x1xf32>
    %364 = arith.addf %360, %363 : vector<8x1xf32>
    %365 = math.rsqrt %364 : vector<8x1xf32>
    %366 = vector.broadcast %365 : vector<8x1xf32> to vector<8x32xf32>
    %367 = arith.mulf %362, %366 : vector<8x32xf32>
    %368 = vector.broadcast %348 : vector<1x32xf32> to vector<8x32xf32>
    %369 = arith.mulf %367, %368 : vector<8x32xf32>
    %370 = vector.broadcast %349 : vector<1x32xf32> to vector<8x32xf32>
    %371 = arith.addf %369, %370 : vector<8x32xf32>
    %c1_172 = arith.constant 1 : index
    %c0_173 = arith.constant 0 : index
    %c0_174 = arith.constant 0 : index
    %372 = vector.load %arg10[%c1_172, %c0_173, %c0_174] : memref<2x32x96xf32, #tpu.memory_space<vmem>>, vector<1x32x96xf32>
    %373 = vector.shape_cast %372 : vector<1x32x96xf32> to vector<32x96xf32>
    %cst_175 = arith.constant dense<0.000000e+00> : vector<8x96xf32>
    %374 = tpu.matmul %371, %373, %cst_175 {dimension_numbers = #tpu.dot_dimension_numbers<[1], [0], [0], [1], [0, 0, 1, 1], [], []>} : vector<8x32xf32>, vector<32x96xf32>, vector<8x96xf32> -> vector<8x96xf32>
    %c1_176 = arith.constant 1 : index
    %c0_177 = arith.constant 0 : index
    %375 = vector.load %arg11[%c1_176, %c0_177] : memref<2x96xf32, #tpu.memory_space<vmem>>, vector<1x96xf32>
    %376 = vector.broadcast %375 : vector<1x96xf32> to vector<8x96xf32>
    %377 = arith.addf %374, %376 : vector<8x96xf32>
    %378 = vector.extract_strided_slice %377 {offsets = [0, 0], sizes = [8, 8], strides = [1, 1]} : vector<8x96xf32> to vector<8x8xf32>
    %379 = vector.shape_cast %378 : vector<8x8xf32> to vector<2x4x8xf32>
    %380 = vector.extract_strided_slice %377 {offsets = [0, 32], sizes = [8, 8], strides = [1, 1]} : vector<8x96xf32> to vector<8x8xf32>
    %381 = vector.shape_cast %380 : vector<8x8xf32> to vector<2x4x8xf32>
    %382 = vector.extract_strided_slice %377 {offsets = [0, 64], sizes = [8, 8], strides = [1, 1]} : vector<8x96xf32> to vector<8x8xf32>
    %383 = vector.shape_cast %382 : vector<8x8xf32> to vector<2x4x8xf32>
    "tpu.trace_start"() <{level = 10 : i32, message = "bqd,bkd->bqk"}> : () -> ()
    %cst_178 = arith.constant dense<0.000000e+00> : vector<2x4x4xf32>
    %384 = tpu.matmul %379, %381, %cst_178 {dimension_numbers = #tpu.dot_dimension_numbers<[2], [2], [1], [1], [0, 0, 0, 1, 1, 1], [0], [0]>} : vector<2x4x8xf32>, vector<2x4x8xf32>, vector<2x4x4xf32> -> vector<2x4x4xf32>
    "tpu.trace_stop"() : () -> ()
    %cst_179 = arith.constant 0.353553385 : f32
    %385 = vector.broadcast %cst_179 : f32 to vector<2x4x4xf32>
    %386 = arith.mulf %384, %385 : vector<2x4x4xf32>
    %387 = vector.broadcast %202 : vector<2x1x4xf32> to vector<2x4x4xf32>
    %388 = arith.addf %386, %387 : vector<2x4x4xf32>
    %cst_180 = arith.constant dense<0xFF800000> : vector<2x4xf32>
    %389 = vector.multi_reduction <maximumf>, %388, %cst_180 [2] : vector<2x4x4xf32> to vector<2x4xf32>
    %390 = vector.shape_cast %389 : vector<2x4xf32> to vector<2x4x1xf32>
    %391 = vector.broadcast %390 : vector<2x4x1xf32> to vector<2x4x4xf32>
    %392 = arith.subf %388, %391 : vector<2x4x4xf32>
    %393 = math.exp %392 : vector<2x4x4xf32>
    %cst_181 = arith.constant dense<0.000000e+00> : vector<2x4xf32>
    %394 = vector.multi_reduction <add>, %393, %cst_181 [2] : vector<2x4x4xf32> to vector<2x4xf32>
    %395 = vector.shape_cast %394 : vector<2x4xf32> to vector<2x4x1xf32>
    %396 = vector.broadcast %395 : vector<2x4x1xf32> to vector<2x4x4xf32>
    %397 = arith.divf %393, %396 : vector<2x4x4xf32>
    %398 = vector.shape_cast %397 : vector<2x4x4xf32> to vector<8x4xf32>
    "tpu.trace_start"() <{level = 10 : i32, message = "bqk,bkd->bqd"}> : () -> ()
    %cst_182 = arith.constant dense<0.000000e+00> : vector<2x4x8xf32>
    %399 = tpu.matmul %397, %383, %cst_182 {dimension_numbers = #tpu.dot_dimension_numbers<[2], [1], [1], [2], [0, 0, 0, 1, 1, 2], [0], [0]>} : vector<2x4x4xf32>, vector<2x4x8xf32>, vector<2x4x8xf32> -> vector<2x4x8xf32>
    "tpu.trace_stop"() : () -> ()
    %400 = vector.shape_cast %399 : vector<2x4x8xf32> to vector<8x8xf32>
    %401 = vector.extract_strided_slice %377 {offsets = [0, 8], sizes = [8, 8], strides = [1, 1]} : vector<8x96xf32> to vector<8x8xf32>
    %402 = vector.shape_cast %401 : vector<8x8xf32> to vector<2x4x8xf32>
    %403 = vector.extract_strided_slice %377 {offsets = [0, 40], sizes = [8, 8], strides = [1, 1]} : vector<8x96xf32> to vector<8x8xf32>
    %404 = vector.shape_cast %403 : vector<8x8xf32> to vector<2x4x8xf32>
    %405 = vector.extract_strided_slice %377 {offsets = [0, 72], sizes = [8, 8], strides = [1, 1]} : vector<8x96xf32> to vector<8x8xf32>
    %406 = vector.shape_cast %405 : vector<8x8xf32> to vector<2x4x8xf32>
    "tpu.trace_start"() <{level = 10 : i32, message = "bqd,bkd->bqk"}> : () -> ()
    %cst_183 = arith.constant dense<0.000000e+00> : vector<2x4x4xf32>
    %407 = tpu.matmul %402, %404, %cst_183 {dimension_numbers = #tpu.dot_dimension_numbers<[2], [2], [1], [1], [0, 0, 0, 1, 1, 1], [0], [0]>} : vector<2x4x8xf32>, vector<2x4x8xf32>, vector<2x4x4xf32> -> vector<2x4x4xf32>
    "tpu.trace_stop"() : () -> ()
    %cst_184 = arith.constant 0.353553385 : f32
    %408 = vector.broadcast %cst_184 : f32 to vector<2x4x4xf32>
    %409 = arith.mulf %407, %408 : vector<2x4x4xf32>
    %410 = vector.broadcast %202 : vector<2x1x4xf32> to vector<2x4x4xf32>
    %411 = arith.addf %409, %410 : vector<2x4x4xf32>
    %cst_185 = arith.constant dense<0xFF800000> : vector<2x4xf32>
    %412 = vector.multi_reduction <maximumf>, %411, %cst_185 [2] : vector<2x4x4xf32> to vector<2x4xf32>
    %413 = vector.shape_cast %412 : vector<2x4xf32> to vector<2x4x1xf32>
    %414 = vector.broadcast %413 : vector<2x4x1xf32> to vector<2x4x4xf32>
    %415 = arith.subf %411, %414 : vector<2x4x4xf32>
    %416 = math.exp %415 : vector<2x4x4xf32>
    %cst_186 = arith.constant dense<0.000000e+00> : vector<2x4xf32>
    %417 = vector.multi_reduction <add>, %416, %cst_186 [2] : vector<2x4x4xf32> to vector<2x4xf32>
    %418 = vector.shape_cast %417 : vector<2x4xf32> to vector<2x4x1xf32>
    %419 = vector.broadcast %418 : vector<2x4x1xf32> to vector<2x4x4xf32>
    %420 = arith.divf %416, %419 : vector<2x4x4xf32>
    %421 = vector.shape_cast %420 : vector<2x4x4xf32> to vector<8x4xf32>
    "tpu.trace_start"() <{level = 10 : i32, message = "bqk,bkd->bqd"}> : () -> ()
    %cst_187 = arith.constant dense<0.000000e+00> : vector<2x4x8xf32>
    %422 = tpu.matmul %420, %406, %cst_187 {dimension_numbers = #tpu.dot_dimension_numbers<[2], [1], [1], [2], [0, 0, 0, 1, 1, 2], [0], [0]>} : vector<2x4x4xf32>, vector<2x4x8xf32>, vector<2x4x8xf32> -> vector<2x4x8xf32>
    "tpu.trace_stop"() : () -> ()
    %423 = vector.shape_cast %422 : vector<2x4x8xf32> to vector<8x8xf32>
    %424 = vector.extract_strided_slice %377 {offsets = [0, 16], sizes = [8, 8], strides = [1, 1]} : vector<8x96xf32> to vector<8x8xf32>
    %425 = vector.shape_cast %424 : vector<8x8xf32> to vector<2x4x8xf32>
    %426 = vector.extract_strided_slice %377 {offsets = [0, 48], sizes = [8, 8], strides = [1, 1]} : vector<8x96xf32> to vector<8x8xf32>
    %427 = vector.shape_cast %426 : vector<8x8xf32> to vector<2x4x8xf32>
    %428 = vector.extract_strided_slice %377 {offsets = [0, 80], sizes = [8, 8], strides = [1, 1]} : vector<8x96xf32> to vector<8x8xf32>
    %429 = vector.shape_cast %428 : vector<8x8xf32> to vector<2x4x8xf32>
    "tpu.trace_start"() <{level = 10 : i32, message = "bqd,bkd->bqk"}> : () -> ()
    %cst_188 = arith.constant dense<0.000000e+00> : vector<2x4x4xf32>
    %430 = tpu.matmul %425, %427, %cst_188 {dimension_numbers = #tpu.dot_dimension_numbers<[2], [2], [1], [1], [0, 0, 0, 1, 1, 1], [0], [0]>} : vector<2x4x8xf32>, vector<2x4x8xf32>, vector<2x4x4xf32> -> vector<2x4x4xf32>
    "tpu.trace_stop"() : () -> ()
    %cst_189 = arith.constant 0.353553385 : f32
    %431 = vector.broadcast %cst_189 : f32 to vector<2x4x4xf32>
    %432 = arith.mulf %430, %431 : vector<2x4x4xf32>
    %433 = vector.broadcast %202 : vector<2x1x4xf32> to vector<2x4x4xf32>
    %434 = arith.addf %432, %433 : vector<2x4x4xf32>
    %cst_190 = arith.constant dense<0xFF800000> : vector<2x4xf32>
    %435 = vector.multi_reduction <maximumf>, %434, %cst_190 [2] : vector<2x4x4xf32> to vector<2x4xf32>
    %436 = vector.shape_cast %435 : vector<2x4xf32> to vector<2x4x1xf32>
    %437 = vector.broadcast %436 : vector<2x4x1xf32> to vector<2x4x4xf32>
    %438 = arith.subf %434, %437 : vector<2x4x4xf32>
    %439 = math.exp %438 : vector<2x4x4xf32>
    %cst_191 = arith.constant dense<0.000000e+00> : vector<2x4xf32>
    %440 = vector.multi_reduction <add>, %439, %cst_191 [2] : vector<2x4x4xf32> to vector<2x4xf32>
    %441 = vector.shape_cast %440 : vector<2x4xf32> to vector<2x4x1xf32>
    %442 = vector.broadcast %441 : vector<2x4x1xf32> to vector<2x4x4xf32>
    %443 = arith.divf %439, %442 : vector<2x4x4xf32>
    %444 = vector.shape_cast %443 : vector<2x4x4xf32> to vector<8x4xf32>
    "tpu.trace_start"() <{level = 10 : i32, message = "bqk,bkd->bqd"}> : () -> ()
    %cst_192 = arith.constant dense<0.000000e+00> : vector<2x4x8xf32>
    %445 = tpu.matmul %443, %429, %cst_192 {dimension_numbers = #tpu.dot_dimension_numbers<[2], [1], [1], [2], [0, 0, 0, 1, 1, 2], [0], [0]>} : vector<2x4x4xf32>, vector<2x4x8xf32>, vector<2x4x8xf32> -> vector<2x4x8xf32>
    "tpu.trace_stop"() : () -> ()
    %446 = vector.shape_cast %445 : vector<2x4x8xf32> to vector<8x8xf32>
    %447 = vector.extract_strided_slice %377 {offsets = [0, 24], sizes = [8, 8], strides = [1, 1]} : vector<8x96xf32> to vector<8x8xf32>
    %448 = vector.shape_cast %447 : vector<8x8xf32> to vector<2x4x8xf32>
    %449 = vector.extract_strided_slice %377 {offsets = [0, 56], sizes = [8, 8], strides = [1, 1]} : vector<8x96xf32> to vector<8x8xf32>
    %450 = vector.shape_cast %449 : vector<8x8xf32> to vector<2x4x8xf32>
    %451 = vector.extract_strided_slice %377 {offsets = [0, 88], sizes = [8, 8], strides = [1, 1]} : vector<8x96xf32> to vector<8x8xf32>
    %452 = vector.shape_cast %451 : vector<8x8xf32> to vector<2x4x8xf32>
    "tpu.trace_start"() <{level = 10 : i32, message = "bqd,bkd->bqk"}> : () -> ()
    %cst_193 = arith.constant dense<0.000000e+00> : vector<2x4x4xf32>
    %453 = tpu.matmul %448, %450, %cst_193 {dimension_numbers = #tpu.dot_dimension_numbers<[2], [2], [1], [1], [0, 0, 0, 1, 1, 1], [0], [0]>} : vector<2x4x8xf32>, vector<2x4x8xf32>, vector<2x4x4xf32> -> vector<2x4x4xf32>
    "tpu.trace_stop"() : () -> ()
    %cst_194 = arith.constant 0.353553385 : f32
    %454 = vector.broadcast %cst_194 : f32 to vector<2x4x4xf32>
    %455 = arith.mulf %453, %454 : vector<2x4x4xf32>
    %456 = vector.broadcast %202 : vector<2x1x4xf32> to vector<2x4x4xf32>
    %457 = arith.addf %455, %456 : vector<2x4x4xf32>
    %cst_195 = arith.constant dense<0xFF800000> : vector<2x4xf32>
    %458 = vector.multi_reduction <maximumf>, %457, %cst_195 [2] : vector<2x4x4xf32> to vector<2x4xf32>
    %459 = vector.shape_cast %458 : vector<2x4xf32> to vector<2x4x1xf32>
    %460 = vector.broadcast %459 : vector<2x4x1xf32> to vector<2x4x4xf32>
    %461 = arith.subf %457, %460 : vector<2x4x4xf32>
    %462 = math.exp %461 : vector<2x4x4xf32>
    %cst_196 = arith.constant dense<0.000000e+00> : vector<2x4xf32>
    %463 = vector.multi_reduction <add>, %462, %cst_196 [2] : vector<2x4x4xf32> to vector<2x4xf32>
    %464 = vector.shape_cast %463 : vector<2x4xf32> to vector<2x4x1xf32>
    %465 = vector.broadcast %464 : vector<2x4x1xf32> to vector<2x4x4xf32>
    %466 = arith.divf %462, %465 : vector<2x4x4xf32>
    %467 = vector.shape_cast %466 : vector<2x4x4xf32> to vector<8x4xf32>
    "tpu.trace_start"() <{level = 10 : i32, message = "bqk,bkd->bqd"}> : () -> ()
    %cst_197 = arith.constant dense<0.000000e+00> : vector<2x4x8xf32>
    %468 = tpu.matmul %466, %452, %cst_197 {dimension_numbers = #tpu.dot_dimension_numbers<[2], [1], [1], [2], [0, 0, 0, 1, 1, 2], [0], [0]>} : vector<2x4x4xf32>, vector<2x4x8xf32>, vector<2x4x8xf32> -> vector<2x4x8xf32>
    "tpu.trace_stop"() : () -> ()
    %469 = vector.shape_cast %468 : vector<2x4x8xf32> to vector<8x8xf32>
    %470 = tpu.concatenate %400, %423, %446, %469 in 1 : vector<8x8xf32>, vector<8x8xf32>, vector<8x8xf32>, vector<8x8xf32> -> vector<8x32xf32>
    %c1_198 = arith.constant 1 : index
    %c0_199 = arith.constant 0 : index
    %c0_200 = arith.constant 0 : index
    %471 = vector.load %arg12[%c1_198, %c0_199, %c0_200] : memref<2x32x32xf32, #tpu.memory_space<vmem>>, vector<1x32x32xf32>
    %472 = vector.shape_cast %471 : vector<1x32x32xf32> to vector<32x32xf32>
    %cst_201 = arith.constant dense<0.000000e+00> : vector<8x32xf32>
    %473 = tpu.matmul %470, %472, %cst_201 {dimension_numbers = #tpu.dot_dimension_numbers<[1], [0], [0], [1], [0, 0, 1, 1], [], []>} : vector<8x32xf32>, vector<32x32xf32>, vector<8x32xf32> -> vector<8x32xf32>
    %c3_202 = arith.constant 3 : index
    %c0_203 = arith.constant 0 : index
    %474 = vector.load %arg9[%c3_202, %c0_203] : memref<14x32xf32, #tpu.memory_space<vmem>>, vector<1x32xf32>
    %475 = vector.broadcast %474 : vector<1x32xf32> to vector<8x32xf32>
    %476 = arith.addf %473, %475 : vector<8x32xf32>
    %477 = arith.addf %476, %371 : vector<8x32xf32>
    %c5_204 = arith.constant 5 : index
    %c0_205 = arith.constant 0 : index
    %478 = vector.load %arg9[%c5_204, %c0_205] : memref<14x32xf32, #tpu.memory_space<vmem>>, vector<1x32xf32>
    %c7_206 = arith.constant 7 : index
    %c0_207 = arith.constant 0 : index
    %479 = vector.load %arg9[%c7_206, %c0_207] : memref<14x32xf32, #tpu.memory_space<vmem>>, vector<1x32xf32>
    %cst_208 = arith.constant dense<0.000000e+00> : vector<8xf32>
    %480 = vector.multi_reduction <add>, %477, %cst_208 [1] : vector<8x32xf32> to vector<8xf32>
    %481 = vector.shape_cast %480 : vector<8xf32> to vector<8x1xf32>
    %cst_209 = arith.constant 3.200000e+01 : f32
    %482 = vector.broadcast %cst_209 : f32 to vector<8x1xf32>
    %483 = arith.divf %481, %482 : vector<8x1xf32>
    %484 = vector.broadcast %483 : vector<8x1xf32> to vector<8x32xf32>
    %485 = arith.subf %477, %484 : vector<8x32xf32>
    %486 = arith.mulf %485, %485 : vector<8x32xf32>
    %cst_210 = arith.constant dense<0.000000e+00> : vector<8xf32>
    %487 = vector.multi_reduction <add>, %486, %cst_210 [1] : vector<8x32xf32> to vector<8xf32>
    %488 = vector.shape_cast %487 : vector<8xf32> to vector<8x1xf32>
    %cst_211 = arith.constant 3.200000e+01 : f32
    %489 = vector.broadcast %cst_211 : f32 to vector<8x1xf32>
    %490 = arith.divf %488, %489 : vector<8x1xf32>
    %491 = vector.broadcast %483 : vector<8x1xf32> to vector<8x32xf32>
    %492 = arith.subf %477, %491 : vector<8x32xf32>
    %cst_212 = arith.constant 9.99999996E-13 : f32
    %493 = vector.broadcast %cst_212 : f32 to vector<8x1xf32>
    %494 = arith.addf %490, %493 : vector<8x1xf32>
    %495 = math.rsqrt %494 : vector<8x1xf32>
    %496 = vector.broadcast %495 : vector<8x1xf32> to vector<8x32xf32>
    %497 = arith.mulf %492, %496 : vector<8x32xf32>
    %498 = vector.broadcast %478 : vector<1x32xf32> to vector<8x32xf32>
    %499 = arith.mulf %497, %498 : vector<8x32xf32>
    %500 = vector.broadcast %479 : vector<1x32xf32> to vector<8x32xf32>
    %501 = arith.addf %499, %500 : vector<8x32xf32>
    %c1_213 = arith.constant 1 : index
    %c0_214 = arith.constant 0 : index
    %c0_215 = arith.constant 0 : index
    %502 = vector.load %arg13[%c1_213, %c0_214, %c0_215] : memref<2x32x64xf32, #tpu.memory_space<vmem>>, vector<1x32x64xf32>
    %503 = vector.shape_cast %502 : vector<1x32x64xf32> to vector<32x64xf32>
    %cst_216 = arith.constant dense<0.000000e+00> : vector<8x64xf32>
    %504 = tpu.matmul %501, %503, %cst_216 {dimension_numbers = #tpu.dot_dimension_numbers<[1], [0], [0], [1], [0, 0, 1, 1], [], []>} : vector<8x32xf32>, vector<32x64xf32>, vector<8x64xf32> -> vector<8x64xf32>
    %c1_217 = arith.constant 1 : index
    %c0_218 = arith.constant 0 : index
    %505 = vector.load %arg14[%c1_217, %c0_218] : memref<2x64xf32, #tpu.memory_space<vmem>>, vector<1x64xf32>
    %506 = vector.broadcast %505 : vector<1x64xf32> to vector<8x64xf32>
    %507 = arith.addf %504, %506 : vector<8x64xf32>
    %cst_219 = arith.constant 0.000000e+00 : f32
    %508 = vector.broadcast %cst_219 : f32 to vector<8x64xf32>
    %509 = arith.maximumf %507, %508 : vector<8x64xf32>
    %c1_220 = arith.constant 1 : index
    %c0_221 = arith.constant 0 : index
    %c0_222 = arith.constant 0 : index
    %510 = vector.load %arg15[%c1_220, %c0_221, %c0_222] : memref<2x64x32xf32, #tpu.memory_space<vmem>>, vector<1x64x32xf32>
    %511 = vector.shape_cast %510 : vector<1x64x32xf32> to vector<64x32xf32>
    %cst_223 = arith.constant dense<0.000000e+00> : vector<8x32xf32>
    %512 = tpu.matmul %509, %511, %cst_223 {dimension_numbers = #tpu.dot_dimension_numbers<[1], [0], [0], [1], [0, 0, 1, 1], [], []>} : vector<8x64xf32>, vector<64x32xf32>, vector<8x32xf32> -> vector<8x32xf32>
    %c9_224 = arith.constant 9 : index
    %c0_225 = arith.constant 0 : index
    %513 = vector.load %arg9[%c9_224, %c0_225] : memref<14x32xf32, #tpu.memory_space<vmem>>, vector<1x32xf32>
    %514 = vector.broadcast %513 : vector<1x32xf32> to vector<8x32xf32>
    %515 = arith.addf %512, %514 : vector<8x32xf32>
    %516 = arith.addf %515, %501 : vector<8x32xf32>
    %c11_226 = arith.constant 11 : index
    %c0_227 = arith.constant 0 : index
    %517 = vector.load %arg9[%c11_226, %c0_227] : memref<14x32xf32, #tpu.memory_space<vmem>>, vector<1x32xf32>
    %c13 = arith.constant 13 : index
    %c0_228 = arith.constant 0 : index
    %518 = vector.load %arg9[%c13, %c0_228] : memref<14x32xf32, #tpu.memory_space<vmem>>, vector<1x32xf32>
    %cst_229 = arith.constant dense<0.000000e+00> : vector<8xf32>
    %519 = vector.multi_reduction <add>, %516, %cst_229 [1] : vector<8x32xf32> to vector<8xf32>
    %520 = vector.shape_cast %519 : vector<8xf32> to vector<8x1xf32>
    %cst_230 = arith.constant 3.200000e+01 : f32
    %521 = vector.broadcast %cst_230 : f32 to vector<8x1xf32>
    %522 = arith.divf %520, %521 : vector<8x1xf32>
    %523 = vector.broadcast %522 : vector<8x1xf32> to vector<8x32xf32>
    %524 = arith.subf %516, %523 : vector<8x32xf32>
    %525 = arith.mulf %524, %524 : vector<8x32xf32>
    %cst_231 = arith.constant dense<0.000000e+00> : vector<8xf32>
    %526 = vector.multi_reduction <add>, %525, %cst_231 [1] : vector<8x32xf32> to vector<8xf32>
    %527 = vector.shape_cast %526 : vector<8xf32> to vector<8x1xf32>
    %cst_232 = arith.constant 3.200000e+01 : f32
    %528 = vector.broadcast %cst_232 : f32 to vector<8x1xf32>
    %529 = arith.divf %527, %528 : vector<8x1xf32>
    %530 = vector.broadcast %522 : vector<8x1xf32> to vector<8x32xf32>
    %531 = arith.subf %516, %530 : vector<8x32xf32>
    %cst_233 = arith.constant 9.99999996E-13 : f32
    %532 = vector.broadcast %cst_233 : f32 to vector<8x1xf32>
    %533 = arith.addf %529, %532 : vector<8x1xf32>
    %534 = math.rsqrt %533 : vector<8x1xf32>
    %535 = vector.broadcast %534 : vector<8x1xf32> to vector<8x32xf32>
    %536 = arith.mulf %531, %535 : vector<8x32xf32>
    %537 = vector.broadcast %517 : vector<1x32xf32> to vector<8x32xf32>
    %538 = arith.mulf %536, %537 : vector<8x32xf32>
    %539 = vector.broadcast %518 : vector<1x32xf32> to vector<8x32xf32>
    %540 = arith.addf %538, %539 : vector<8x32xf32>
    %c0_234 = arith.constant 0 : index
    %c0_235 = arith.constant 0 : index
    %541 = vector.load %arg16[%c0_234, %c0_235] : memref<8x32xf32, #tpu.memory_space<vmem>>, vector<8x32xf32>
    tpu.vector_store %arg16[%c0_234, %c0_235], %540 {strides = array<i32>} : memref<8x32xf32, #tpu.memory_space<vmem>>, vector<8x32xf32>,
    %542 = tpu.concatenate %229, %252, %275, %298, %398, %421, %444, %467 in 1 : vector<8x4xf32>, vector<8x4xf32>, vector<8x4xf32>, vector<8x4xf32>, vector<8x4xf32>, vector<8x4xf32>, vector<8x4xf32>, vector<8x4xf32> -> vector<8x32xf32>
    %c0_236 = arith.constant 0 : index
    %c0_237 = arith.constant 0 : index
    %543 = vector.load %arg17[%c0_236, %c0_237] : memref<8x32xf32, #tpu.memory_space<vmem>>, vector<8x32xf32>
    tpu.vector_store %arg17[%c0_236, %c0_237], %542 {strides = array<i32>} : memref<8x32xf32, #tpu.memory_space<vmem>>, vector<8x32xf32>,
    return
  }
}

</mosaic_0001>

<bundles_post_ra>
// kernel: run.1
= control target key start
LH: loop header
LB: loop body
LE: loop exit
PB: predicated region body
PF: predicated region fallthrough
CT: control target
= control target key end

     0   :  { %s4136_s0 = inlined_call_operand.vmem [shape: f32[3,40,16], index: 0, kind: input, shape index: {}]   ;;  %s4137_s1 = inlined_call_operand.vmem [shape: f32[3,16,32], index: 1, kind: input, shape index: {}]   ;;  %s4138_s2 = inlined_call_operand.vmem [shape: f32[13,32], index: 2, kind: input, shape index: {}]   ;;  %s4139_s3 = inlined_call_operand.vmem [shape: f32[4,32,32], index: 3, kind: input, shape index: {}]   ;;  %s4140_s4 = inlined_call_operand.vmem [shape: f32[2,32,64], index: 4, kind: input, shape index: {}]   ;;  %s4141_s5 = inlined_call_operand.vmem [shape: f32[2,64], index: 5, kind: input, shape index: {}]   ;;  %s4142_s6 = inlined_call_operand.vmem [shape: f32[2,64,32], index: 6, kind: input, shape index: {}]   ;;  %s4143_s7 = inlined_call_operand.vmem [shape: f32[8,32], index: 7, kind: input, shape index: {}]   ;;  %s4144_s8 = inlined_call_operand.vmem [shape: f32[2,1,4], index: 8, kind: input, shape index: {}]   ;;  %s4145_s9 = inlined_call_operand.vmem [shape: f32[14,32], index: 9, kind: input, shape index: {}]   ;;  %s4146_s10 = inlined_call_operand.vmem [shape: f32[2,32,96], index: 10, kind: input, shape index: {}]   ;;  %s4147_s11 = inlined_call_operand.vmem [shape: f32[2,96], index: 11, kind: input, shape index: {}]   ;;  %s4148_s12 = inlined_call_operand.vmem [shape: f32[2,32,32], index: 12, kind: input, shape index: {}]   ;;  %s4149_s13 = inlined_call_operand.vmem [shape: f32[2,32,64], index: 13, kind: input, shape index: {}]   ;;  %s4150_s14 = inlined_call_operand.vmem [shape: f32[2,64], index: 14, kind: input, shape index: {}]   ;;  %s4151_s15 = inlined_call_operand.vmem [shape: f32[2,64,32], index: 15, kind: input, shape index: {}]   ;;  %s4152_s16 = inlined_call_operand.hbm [shape: f32[8,32], index: 16, kind: output, shape index: {0}]   ;;  %s4153_s17 = inlined_call_operand.vmem [shape: f32[8,32], index: 17, kind: output, shape index: {1}]  }
   0x1   :  { %4162 = sst [smem:[#allocation5_spill]] %s4136_s0 }
   0x2   :  { %4163 = sst [smem:[#allocation6_spill]] %s4137_s1 }
   0x3   :  { %s4164_s26 = sld [smem:[#allocation6_spill]]  ;;  %vm64_vm0 = vcmask 130048  }
   0x4   :  { %s4165_s19 = sld [smem:[#allocation5_spill]] }
   0x9   :  { %v2777_v0 = vld [vmem:[%s4164_s26 + $0x28] sm:$0xff]  ;;  %v2776_v2 = vld [vmem:[%s4164_s26 + $0x20] sm:$0xff]  ;;  %v2765_v5 = vld [vmem:[%s4164_s26 + $0x18] sm:$0xff] }
   0xa   :  { %v63_v1 = vld [vmem:[%s4164_s26 + $0x8] sm:$0xff]  ;;  %217 = vmatpush.msra.mxu2 %v2777_v0  ;;  %v2771_v3 = vld [vmem:[%s4165_s19 + $0x50] sm:$0xff]  ;;  %v62_v4 = vld [vmem:[%s4164_s26] sm:$0xff]  ;;  %156 = vmatpush.msra.mxu1 %v2765_v5 }
   0xb   :  { %94 = vmatpush.msra.mxu0 %v63_v1  ;;  %v57_v6 = vld [vmem:[%s4165_s19] sm:$0xff]  ;;  %v2764_v7 = vld [vmem:[%s4164_s26 + $0x10] sm:$0xff]  ;;  %v2759_v8 = vld [vmem:[%s4165_s19 + $0x28] sm:$0xff] }
   0xc   :  { %218 = vmatpush.msra.mxu2 %v2776_v2  ;;  %157 = vmatpush.msra.mxu1 %v2764_v7  ;;  %v2772_v9 = vld [vmem:[%s4165_s19 + $0x58] sm:$0xff]  ;;  %v58_v10 = vld [vmem:[%s4165_s19 + $0x8] sm:$0xff]  ;;  %v2760_v11 = vld [vmem:[%s4165_s19 + $0x30] sm:$0xff] }
   0xd   :  { %95 = vmatpush.msra.mxu0 %v62_v4  ;;  %2778 = vmatmul.msk.f32.vlgmr.msra.gmra.mxu2 %vm64_vm0, %v2771_v3  ;;  %v2773_v12 = vld [vmem:[%s4165_s19 + $0x60] sm:$0xff]  ;;  %v59_v13 = vld [vmem:[%s4165_s19 + $0x10] sm:$0xff] }
   0xe   :  { %2754 = vmatmul.msk.f32.vlgmr.msra.gmra.mxu0 %vm64_vm0, %v57_v6  ;;  %2766 = vmatmul.msk.f32.vlgmr.msra.gmra.mxu1 %vm64_vm0, %v2759_v8 }
  0x15   :  { %2779 = vmatmul.msk.f32.gmra.mxu2 %vm64_vm0, %v2772_v9 }
  0x16   :  { %2755 = vmatmul.msk.f32.gmra.mxu0 %vm64_vm0, %v58_v10  ;;  %2767 = vmatmul.msk.f32.gmra.mxu1 %vm64_vm0, %v2760_v11 }
  0x17   :  { %23 = vsyncpa [#allocation3], 0  ;;  %v2761_v14 = vld [vmem:[%s4165_s19 + $0x38] sm:$0xff]  ;;  %v2774_v15 = vld [vmem:[%s4165_s19 + $0x68] sm:$0xff]  ;;  %vm345_vm1 = vcmask 258048   ;;  %vm416_vm2 = vcmask 1041409  }
  0x18   :  { %v60_v16 = vld [vmem:[%s4165_s19 + $0x18] sm:$0xff]  ;;  %v2762_v17 = vld [vmem:[%s4165_s19 + $0x40] sm:$0xff]  ;;  %v2775_v18 = vld [vmem:[%s4165_s19 + $0x70] sm:$0xff]  ;;  %vm418_vm3 = vcmask 1042434   ;;  %vm420_vm4 = vcmask 1043459   ;;  %vm422_vm5 = vcmask 1044484  }
  0x19   :  { %v61_v19 = vld [vmem:[%s4165_s19 + $0x20] sm:$0xff]  ;;  %v2763_v20 = vld [vmem:[%s4165_s19 + $0x48] sm:$0xff]  ;;  %vm424_vm6 = vcmask 1045509   ;;  %vm426_vm7 = vcmask 1046534   ;;  %vm428_vm8 = vcmask 1047559   ;;  %vm430_vm9 = vcmask 261120  }
  0x1a   :  { %v3273_v21 = vld [vmem:[%s4138_s2] ss:$0 sm:$0xff]  ;;  %s3086_s26 = smov 112   ;;  %s3087_s20 = smov 80  }
  0x1b   :  { %s3088_s21 = smov 104   ;;  %s3089_s22 = smov 72  }
  0x1c   :  { %s3090_s23 = smov 64   ;;  %s3091_s27 = smov 56  }
  0x1d   :  { %2780 = vmatmul.msk.f32.gmra.mxu2 %vm64_vm0, %v2773_v12  ;;  %s3092_s19 = smov 48   ;;  %s3093_s28 = smov 40  }
  0x1e   :  { %2756 = vmatmul.msk.f32.gmra.mxu0 %vm64_vm0, %v59_v13  ;;  %2768 = vmatmul.msk.f32.gmra.mxu1 %vm64_vm0, %v2761_v14  ;;  %s4160_s29 = smov 8   ;;  %s4156_s0 = smov 16  }
  0x1f   :  { %s4158_s30 = smov 24   ;;  %s3100_s1 = smov 28  }
  0x25   :  { %2781 = vmatmul.msk.f32.gmra.mxu2 %vm64_vm0, %v2774_v15 }
  0x26   :  { %2757 = vmatmul.msk.f32.gmra.mxu0 %vm64_vm0, %v60_v16  ;;  %2769 = vmatmul.msk.f32.gmra.mxu1 %vm64_vm0, %v2762_v17 }
  0x2d   :  { %2782 = vmatmul.msk.f32.gmra.mxu2 %vm64_vm0, %v2775_v18 }
  0x2e   :  { %2758 = vmatmul.msk.f32.gmra.mxu0 %vm64_vm0, %v61_v19  ;;  %2770 = vmatmul.msk.f32.gmra.mxu1 %vm64_vm0, %v2763_v20 }
  0x8b   :  { %v97_v22 = vpop.f32.mrf.mxu0  ;;  %v159_v24 = vpop.f32.mrf.mxu1 }
  0x8c   :  { %v113_v23 = vadd.f32 %v3273_v21, %v97_v22 }
  0x8e   :  { %v174_v25 = vadd.f32 %v159_v24, %v113_v23  ;;  %v405_v24 = vld [vmem:[%s4139_s3 + $0x18] sm:$0xff] }
  0x8f   :  { %445 = vmatpush.msra.mxu3 %v405_v24 }
  0x90   :  { %v220_v26 = vpop.f32.mrf.mxu2 }
  0x91   :  { %v235_v27 = vadd.f32 %v220_v26, %v174_v25  ;;  %v403_v25 = vld [vmem:[%s4139_s3 + $0x8] sm:$0xff] }
  0x93   :  { %v100_v28 = vpop.f32.mrf.mxu0  ;;  %v240_v29 = vmax.f32 %v235_v27, 0.0  ;;  %v162_v31 = vpop.f32.mrf.mxu1  ;;  %v402_v27 = vld [vmem:[%s4139_s3] sm:$0xff] }
  0x94   :  { %v114_v30 = vadd.f32 %v3273_v21, %v100_v28 }
  0x95   :  { %v250_v32 = vrot.slane %v240_v29, 1  ;;  %v251_v33 = vrot.slane %v240_v29, 2  ;;  %v252_v34 = vrot.slane %v240_v29, 3  ;;  %285 = vst [vmem:[#allocation1] ss:$9 sm:$0xff] %v240_v29  ;;  %v253_v35 = vrot.slane %v240_v29, 4 }
  0x96   :  { %v175_v36 = vadd.f32 %v162_v31, %v114_v30  ;;  %v254_v40 = vrot.slane %v240_v29, 5  ;;  %v255_v41 = vrot.slane %v240_v29, 6  ;;  %v256_v43 = vrot.slane %v240_v29, 7 }
  0x97   :  { %287 = vst [vmem:[#allocation1 + $0x1] ss:$9 sm:$0xff] %v250_v32 }
  0x98   :  { %289 = vst [vmem:[#allocation1 + $0x2] ss:$9 sm:$0xff] %v251_v33  ;;  %v223_v37 = vpop.f32.mrf.mxu2 }
  0x99   :  { %291 = vst [vmem:[#allocation1 + $0x3] ss:$9 sm:$0xff] %v252_v34  ;;  %v236_v38 = vadd.f32 %v223_v37, %v175_v36  ;;  %v2787_v37 = vld [vmem:[%s4139_s3 + $0x58] sm:$0xff] }
  0x9a   :  { %293 = vst [vmem:[#allocation1 + $0x4] ss:$9 sm:$0xff] %v253_v35 }
  0x9b   :  { %v241_v39 = vmax.f32 %v236_v38, 0.0  ;;  %v103_v45 = vpop.f32.mrf.mxu0  ;;  %v165_v47 = vpop.f32.mrf.mxu1  ;;  %v2786_v38 = vld [vmem:[%s4139_s3 + $0x50] sm:$0xff] }
  0x9c   :  { %v115_v46 = vadd.f32 %v3273_v21, %v103_v45 }
  0x9d   :  { %v257_v44 = vrot.slane %v241_v39, 1  ;;  %v258_v48 = vrot.slane %v241_v39, 2  ;;  %v259_v50 = vrot.slane %v241_v39, 3  ;;  %v260_v53 = vrot.slane %v241_v39, 4 }
  0x9e   :  { %v176_v49 = vadd.f32 %v165_v47, %v115_v46  ;;  %v261_v54 = vrot.slane %v241_v39, 5  ;;  %v262_v55 = vrot.slane %v241_v39, 6  ;;  %v263_v59 = vrot.slane %v241_v39, 7 }
  0xa0   :  { %v226_v52 = vpop.f32.mrf.mxu2 }
  0xa1   :  { %v3277_v42 = vld [vmem:[#allocation1] sm:$0xff]  ;;  %v237_v56 = vadd.f32 %v226_v52, %v176_v49 }
  0xa2   :  { %295 = vst [vmem:[#allocation1] ss:$9 sm:$0xff] %v254_v40  ;;  %v346_v35 = vsel %vm345_vm1, %v3277_v42, -inf  ;;  %v2785_v42 = vld [vmem:[%s4139_s3 + $0x48] sm:$0xff] }
  0xa3   :  { %296 = vst [vmem:[#allocation1 + $0x1] ss:$9 sm:$0xff] %v255_v41  ;;  %v242_v57 = vmax.f32 %v237_v56, 0.0  ;;  %v106_v58 = vpop.f32.mrf.mxu0  ;;  %v168_v1 = vpop.f32.mrf.mxu1 }
  0xa4   :  { %297 = vst [vmem:[#allocation1 + $0x2] ss:$9 sm:$0xff] %v256_v43  ;;  %v116_v0 = vadd.f32 %v3273_v21, %v106_v58 }
  0xa5   :  { %298 = vst [vmem:[#allocation1 + $0x3] ss:$9 sm:$0xff] %v241_v39  ;;  %v264_v60 = vrot.slane %v242_v57, 1  ;;  %v265_v62 = vrot.slane %v242_v57, 2  ;;  %v266_v63 = vrot.slane %v242_v57, 3  ;;  %v267_v5 = vrot.slane %v242_v57, 4 }
  0xa6   :  { %299 = vst [vmem:[#allocation1 + $0x4] ss:$9 sm:$0xff] %v257_v44  ;;  %v177_v2 = vadd.f32 %v168_v1, %v116_v0  ;;  %v268_v6 = vrot.slane %v242_v57, 5  ;;  %v269_v8 = vrot.slane %v242_v57, 6  ;;  %v270_v10 = vrot.slane %v242_v57, 7 }
  0xa7   :  { %v347_v44 = vrot.slane %v346_v35, 4 }
  0xa8   :  { %v229_v3 = vpop.f32.mrf.mxu2 }
  0xa9   :  { %v238_v4 = vadd.f32 %v229_v3, %v177_v2 }
  0xab   :  { %v243_v9 = vmax.f32 %v238_v4, 0.0  ;;  %v109_v11 = vpop.f32.mrf.mxu0  ;;  %v171_v13 = vpop.f32.mrf.mxu1 }
  0xac   :  { %v117_v12 = vadd.f32 %v3273_v21, %v109_v11  ;;  %v404_v21 = vld [vmem:[%s4139_s3 + $0x10] sm:$0xff] }
  0xad   :  { %v3280_v51 = vld [vmem:[#allocation1] sm:$0xff]  ;;  %v271_v14 = vrot.slane %v243_v9, 1  ;;  %v272_v15 = vrot.slane %v243_v9, 2  ;;  %v273_v18 = vrot.slane %v243_v9, 3  ;;  %v274_v20 = vrot.slane %v243_v9, 4  ;;  %446 = vmatpush.msra.mxu3 %v404_v21 }
  0xae   :  { %301 = vst [vmem:[#allocation1] ss:$9 sm:$0xff] %v258_v48  ;;  %v178_v17 = vadd.f32 %v171_v13, %v117_v12  ;;  %v275_v22 = vrot.slane %v243_v9, 5  ;;  %v276_v28 = vrot.slane %v243_v9, 6  ;;  %v277_v29 = vrot.slane %v243_v9, 7  ;;  %v2784_v48 = vld [vmem:[%s4139_s3 + $0x40] sm:$0xff] }
  0xaf   :  { %302 = vst [vmem:[#allocation1 + $0x1] ss:$9 sm:$0xff] %v259_v50  ;;  %447 = vmatpush.msra.mxu3 %v403_v25  ;;  %v353_v33 = vsel %vm345_vm1, %v3280_v51, -inf }
  0xb0   :  { %303 = vst [vmem:[#allocation1 + $0x2] ss:$9 sm:$0xff] %v260_v53  ;;  %v232_v19 = vpop.f32.mrf.mxu2  ;;  %v354_v39 = vrot.slane %v353_v33, 4 }
  0xb1   :  { %304 = vst [vmem:[#allocation1 + $0x3] ss:$9 sm:$0xff] %v261_v54  ;;  %v239_v23 = vadd.f32 %v232_v19, %v178_v17  ;;  %448 = vmatpush.msra.mxu3 %v402_v27 }
  0xb2   :  { %305 = vst [vmem:[#allocation1 + $0x4] ss:$9 sm:$0xff] %v262_v55  ;;  %v355_v51 = vmax.f32 %v353_v33, %v354_v39 }
  0xb3   :  { %v244_v26 = vmax.f32 %v239_v23, 0.0  ;;  %473 = vmatpush.msrb.mxu3 %v2787_v37 }
  0xb5   :  { %v278_v31 = vrot.slane %v244_v26, 1  ;;  %v279_v32 = vrot.slane %v244_v26, 2  ;;  %474 = vmatpush.msrb.mxu3 %v2786_v38  ;;  %v280_v46 = vrot.slane %v244_v26, 3  ;;  %v281_v49 = vrot.slane %v244_v26, 4 }
  0xb6   :  { %v282_v53 = vrot.slane %v244_v26, 5  ;;  %v283_v56 = vrot.slane %v244_v26, 6 }
  0xb7   :  { %475 = vmatpush.msrb.mxu3 %v2785_v42 }
  0xb9   :  { %v306_v61 = vld [vmem:[#allocation1] sm:$0xff]  ;;  %476 = vmatpush.msrb.mxu3 %v2784_v48 }
  0xba   :  { %307 = vst [vmem:[#allocation1] ss:$9 sm:$0xff] %v263_v59  ;;  %v360_v34 = vsel %vm345_vm1, %v306_v61, -inf  ;;  %v2790_v48 = vld [vmem:[%s4139_s3 + $0x20] sm:$0xff] }
  0xbb   :  { %308 = vst [vmem:[#allocation1 + $0x1] ss:$9 sm:$0xff] %v242_v57  ;;  %v361_v41 = vrot.slane %v360_v34, 4  ;;  %v348_v57 = vmax.f32 %v346_v35, %v347_v44  ;;  %v2793_v44 = vld [vmem:[%s4139_s3 + $0x38] sm:$0xff] }
  0xbc   :  { %309 = vst [vmem:[#allocation1 + $0x2] ss:$9 sm:$0xff] %v264_v60  ;;  %v284_v60 = vrot.slane %v244_v26, 7 }
  0xbd   :  { %310 = vst [vmem:[#allocation1 + $0x3] ss:$9 sm:$0xff] %v265_v62  ;;  %v362_v54 = vmax.f32 %v360_v34, %v361_v41  ;;  %v356_v62 = vrot.slane %v355_v51, 2  ;;  %v349_v2 = vrot.slane %v348_v57, 2 }
  0xbe   :  { %311 = vst [vmem:[#allocation1 + $0x4] ss:$9 sm:$0xff] %v266_v63 }
  0xbf   :  { %v363_v0 = vrot.slane %v362_v54, 2 }
  0xc5   :  { %v312_v7 = vld [vmem:[#allocation1] sm:$0xff] }
  0xc6   :  { %313 = vst [vmem:[#allocation1] ss:$9 sm:$0xff] %v267_v5  ;;  %v367_v36 = vsel %vm345_vm1, %v312_v7, -inf  ;;  %v357_v5 = vmax.f32 %v355_v51, %v356_v62  ;;  %v364_v7 = vmax.f32 %v362_v54, %v363_v0  ;;  %v2796_v54 = vld [vmem:[%s4139_s3 + $0x68] sm:$0xff] }
  0xc7   :  { %314 = vst [vmem:[#allocation1 + $0x1] ss:$9 sm:$0xff] %v268_v6  ;;  %v368_v45 = vrot.slane %v367_v36, 4 }
  0xc8   :  { %315 = vst [vmem:[#allocation1 + $0x2] ss:$9 sm:$0xff] %v269_v8  ;;  %v358_v13 = vrot.slane %v357_v5, 1 }
  0xc9   :  { %316 = vst [vmem:[#allocation1 + $0x3] ss:$9 sm:$0xff] %v270_v10  ;;  %v369_v58 = vmax.f32 %v367_v36, %v368_v45  ;;  %v2792_v45 = vld [vmem:[%s4139_s3 + $0x30] sm:$0xff] }
  0xca   :  { %317 = vst [vmem:[#allocation1 + $0x4] ss:$9 sm:$0xff] %v243_v9  ;;  %v350_v9 = vmax.f32 %v348_v57, %v349_v2  ;;  %v359_v23 = vmax.f32 %v357_v5, %v358_v13 }
  0xcb   :  { %v370_v3 = vrot.slane %v369_v58, 2 }
  0xcd   :  { %v371_v10 = vmax.f32 %v369_v58, %v370_v3 }
  0xcf   :  { %v372_v19 = vrot.slane %v371_v10, 1 }
  0xd1   :  { %v318_v16 = vld [vmem:[#allocation1] sm:$0xff] }
  0xd2   :  { %319 = vst [vmem:[#allocation1] ss:$9 sm:$0xff] %v271_v14  ;;  %v374_v40 = vsel %vm345_vm1, %v318_v16, -inf }
  0xd3   :  { %320 = vst [vmem:[#allocation1 + $0x1] ss:$9 sm:$0xff] %v272_v15  ;;  %v375_v47 = vrot.slane %v374_v40, 4  ;;  %v365_v15 = vrot.slane %v364_v7, 1 }
  0xd4   :  { %321 = vst [vmem:[#allocation1 + $0x2] ss:$9 sm:$0xff] %v273_v18  ;;  %v351_v18 = vrot.slane %v350_v9, 1 }
  0xd5   :  { %322 = vst [vmem:[#allocation1 + $0x3] ss:$9 sm:$0xff] %v274_v20  ;;  %v376_v61 = vmax.f32 %v374_v40, %v375_v47  ;;  %v366_v25 = vmax.f32 %v364_v7, %v365_v15  ;;  %v2791_v47 = vld [vmem:[%s4139_s3 + $0x28] sm:$0xff] }
  0xd6   :  { %323 = vst [vmem:[#allocation1 + $0x4] ss:$9 sm:$0xff] %v275_v22  ;;  %v352_v27 = vmax.f32 %v350_v9, %v351_v18 }
  0xd7   :  { %v377_v4 = vrot.slane %v376_v61, 2 }
  0xd8   :  { %v417_v33 = vsel %vm416_vm2, %v359_v23, %v352_v27 }
  0xd9   :  { %v378_v11 = vmax.f32 %v376_v61, %v377_v4  ;;  %v419_v35 = vsel %vm418_vm3, %v366_v25, %v417_v33 }
  0xdb   :  { %v379_v22 = vrot.slane %v378_v11, 1 }
  0xdd   :  { %v324_v30 = vld [vmem:[#allocation1] sm:$0xff] }
  0xde   :  { %325 = vst [vmem:[#allocation1] ss:$9 sm:$0xff] %v276_v28  ;;  %v381_v43 = vsel %vm345_vm1, %v324_v30, -inf  ;;  %v373_v28 = vmax.f32 %v371_v10, %v372_v19  ;;  %v380_v30 = vmax.f32 %v378_v11, %v379_v22 }
  0xdf   :  { %326 = vst [vmem:[#allocation1 + $0x1] ss:$9 sm:$0xff] %v277_v29  ;;  %v382_v52 = vrot.slane %v381_v43, 4 }
  0xe0   :  { %327 = vst [vmem:[#allocation1 + $0x2] ss:$9 sm:$0xff] %v244_v26  ;;  %v421_v37 = vsel %vm420_vm4, %v373_v28, %v419_v35 }
  0xe1   :  { %328 = vst [vmem:[#allocation1 + $0x3] ss:$9 sm:$0xff] %v278_v31  ;;  %v383_v63 = vmax.f32 %v381_v43, %v382_v52  ;;  %v423_v38 = vsel %vm422_vm5, %v380_v30, %v421_v37  ;;  %v2798_v52 = vld [vmem:[%s4139_s3 + $0x78] sm:$0xff]  ;;  %v3082_v37 = vmov 32.0  }
  0xe2   :  { %329 = vst [vmem:[#allocation1 + $0x4] ss:$9 sm:$0xff] %v279_v32 }
  0xe3   :  { %v384_v6 = vrot.slane %v383_v63, 2 }
  0xe5   :  { %v385_v14 = vmax.f32 %v383_v63, %v384_v6 }
  0xe7   :  { %v386_v24 = vrot.slane %v385_v14, 1 }
  0xe9   :  { %v330_v50 = vld [vmem:[#allocation1] sm:$0xff]  ;;  %v387_v31 = vmax.f32 %v385_v14, %v386_v24 }
  0xea   :  { %331 = vst [vmem:[#allocation1] ss:$9 sm:$0xff] %v280_v46  ;;  %v388_v55 = vsel %vm345_vm1, %v330_v50, -inf  ;;  %v2931_v46 = vld [vmem:[%s4138_s2 + $0x3] ss:$0 sm:$0xff] }
  0xeb   :  { %332 = vst [vmem:[#allocation1 + $0x1] ss:$9 sm:$0xff] %v281_v49  ;;  %v389_v59 = vrot.slane %v388_v55, 4  ;;  %v425_v40 = vsel %vm424_vm6, %v387_v31, %v423_v38 }
  0xec   :  { %333 = vst [vmem:[#allocation1 + $0x2] ss:$9 sm:$0xff] %v282_v53  ;;  %v2797_v53 = vld [vmem:[%s4139_s3 + $0x70] sm:$0xff] }
  0xed   :  { %334 = vst [vmem:[#allocation1 + $0x3] ss:$9 sm:$0xff] %v283_v56  ;;  %v390_v1 = vmax.f32 %v388_v55, %v389_v59  ;;  %v2795_v55 = vld [vmem:[%s4139_s3 + $0x60] sm:$0xff]  ;;  %s3098_s3 = smov 20  }
  0xee   :  { %335 = vst [vmem:[#allocation1 + $0x4] ss:$9 sm:$0xff] %v284_v60  ;;  %v2930_v60 = vld [vmem:[%s4138_s2 + $0x1] ss:$0 sm:$0xff] }
  0xef   :  { %v391_v8 = vrot.slane %v390_v1, 2 }
  0xf1   :  { %v392_v16 = vmax.f32 %v390_v1, %v391_v8 }
  0xf3   :  { %v393_v26 = vrot.slane %v392_v16, 1 }
  0xf5   :  { %v336_v12 = vld [vmem:[#allocation1] sm:$0xff]  ;;  %v394_v34 = vmax.f32 %v392_v16, %v393_v26 }
  0xf6   :  { %v395_v17 = vsel %vm345_vm1, %v336_v12, -inf  ;;  %v2933_v12 = vld [vmem:[%s4138_s2 + $0x4] ss:$0 sm:$0xff] }
  0xf7   :  { %v396_v20 = vrot.slane %v395_v17, 4  ;;  %v427_v41 = vsel %vm426_vm7, %v394_v34, %v425_v40  ;;  %vm662_vm7 = vcmask 523264  }
  0xf9   :  { %v397_v21 = vmax.f32 %v395_v17, %v396_v20  ;;  %v2932_v20 = vld [vmem:[%s4138_s2 + $0x2] ss:$0 sm:$0xff] }
  0xfb   :  { %v398_v29 = vrot.slane %v397_v21, 2 }
  0xfd   :  { %v399_v32 = vmax.f32 %v397_v21, %v398_v29 }
  0xff   :  { %v400_v36 = vrot.slane %v399_v32, 1 }
 0x101   :  { %v401_v39 = vmax.f32 %v399_v32, %v400_v36 }
 0x103   :  { %v429_v43 = vsel %vm428_vm8, %v401_v39, %v427_v41 }
 0x104   :  { %2783 = vmatmul.msk.f32.vlgmr.msra.gmra.mxu3 %vm430_vm9, %v429_v43 }
 0x105   :  { %527 = vmatpush.msra.mxu3 %v2793_v44 }
 0x107   :  { %528 = vmatpush.msra.mxu3 %v2792_v45 }
 0x109   :  { %529 = vmatpush.msra.mxu3 %v2791_v47 }
 0x10b   :  { %530 = vmatpush.msra.mxu3 %v2790_v48 }
 0x10c   :  { %2788 = vmatmul.msk.f32.vlgmr.msrb.gmra.mxu3 %vm430_vm9, %v429_v43 }
 0x10d   :  { %555 = vmatpush.msrb.mxu3 %v2798_v52  ;;  %v622_v52 = vld [vmem:[%s4140_s4] sm:$0xff] }
 0x10f   :  { %556 = vmatpush.msrb.mxu3 %v2797_v53  ;;  %v659_v53 = vld [vmem:[%s4142_s6 + $0x38] sm:$0xff] }
 0x110   :  { %674 = vmatpush.msrb.mxu0 %v659_v53  ;;  %v2808_v53 = vld [vmem:[%s4142_s6 + $0x40] sm:$0xff] }
 0x111   :  { %557 = vmatpush.msrb.mxu3 %v2796_v54  ;;  %v658_v54 = vld [vmem:[%s4142_s6 + $0x30] sm:$0xff] }
 0x112   :  { %675 = vmatpush.msrb.mxu0 %v658_v54  ;;  %v2940_v54 = vld [vmem:[%s4141_s5 + $0x1] ss:$0 sm:$0xff] }
 0x113   :  { %558 = vmatpush.msrb.mxu3 %v2795_v55  ;;  %v657_v55 = vld [vmem:[%s4142_s6 + $0x28] sm:$0xff] }
 0x114   :  { %676 = vmatpush.msrb.mxu0 %v657_v55 }
 0x187   :  { %v450_v42 = vpop.f32.mrf.mxu3 }
 0x188   :  { %v451_v1 = vadd.f32 %v2930_v60, %v450_v42  ;;  %v655_v60 = vld [vmem:[%s4142_s6 + $0x18] sm:$0xff] }
 0x18a   :  { %v453_v6 = vmax.f32 %v451_v1, 0.0 }
 0x18f   :  { %v478_v49 = vpop.f32.mrf.mxu3 }
 0x190   :  { %v479_v50 = vadd.f32 %v2931_v46, %v478_v49  ;;  %v625_v49 = vld [vmem:[%s4140_s4 + $0x18] sm:$0xff] }
 0x192   :  { %v2789_v51 = vmul.f32 -1.442695, %v479_v50  ;;  %v624_v50 = vld [vmem:[%s4140_s4 + $0x10] sm:$0xff] }
 0x194   :  { %2964 = vpow2.f32 %v2789_v51  ;;  %v623_v51 = vld [vmem:[%s4140_s4 + $0x8] sm:$0xff] }
 0x19a   :  { %v2965_v56 = vpop.eup %2964 }
 0x19b   :  { %v484_v57 = vadd.f32 1.0, %v2965_v56 }
 0x19d   :  { %2966 = vrcp.f32 %v484_v57  ;;  %v496_v62 = vand.u32 2147483648, %v484_v57  ;;  %v494_v0 = vand.u32 2147483647, %v484_v57  ;;  %vm490_vm11 = vweird.f32 %v484_v57 }
 0x19f   :  { %v497_v3 = vor.u32 1.1754944e-38, %v496_v62  ;;  %vm495_vm13 = vcmp.eq.f32.partialorder %v494_v0, 8.507059e+37 }
 0x1a3   :  { %v2967_v58 = vpop.eup %2966 }
 0x1a4   :  { %v486_v59 = vmul.f32 %v2967_v58, %v484_v57  ;;  %vm491_vm10 = vweird.f32 %v2967_v58 }
 0x1a5   :  { %vm492_vm12 = vmor %vm490_vm11, %vm491_vm10 }
 0x1a6   :  { %v487_v61 = vsub.f32 1.0, %v486_v59 }
 0x1a8   :  { %v488_v63 = vmul.f32 %v2967_v58, %v487_v61  ;;  %v654_v61 = vld [vmem:[%s4142_s6 + $0x10] sm:$0xff] }
 0x1aa   :  { %v489_v2 = vadd.f32 %v2967_v58, %v488_v63 }
 0x1ac   :  { %v493_v4 = vsel %vm492_vm12, %v2967_v58, %v489_v2  ;;  %v656_v58 = vld [vmem:[%s4142_s6 + $0x20] sm:$0xff] }
 0x1ad   :  { %v498_v5 = vsel %vm495_vm13, %v497_v3, %v493_v4  ;;  %677 = vmatpush.msrb.mxu0 %v656_v58  ;;  %v2934_v4 = vld [vmem:[%s4138_s2 + $0x5] ss:$0 sm:$0xff]  ;;  %v2941_v58 = vld [vmem:[%s4138_s2 + $0x8] ss:$0 sm:$0xff] }
 0x1ae   :  { %v501_v7 = vsub.f32 1.0, %v498_v5  ;;  %v500_v8 = vmul.f32 %v498_v5, %v453_v6 }
 0x1af   :  { %678 = vmatpush.msrb.mxu0 %v655_v60 }
 0x1b0   :  { %v503_v9 = vmul.f32 %v501_v7, %v429_v43  ;;  %v2935_v7 = vld [vmem:[%s4138_s2 + $0x6] ss:$0 sm:$0xff] }
 0x1b1   :  { %679 = vmatpush.msrb.mxu0 %v654_v61 }
 0x1b2   :  { %v504_v10 = vadd.f32 %v503_v9, %v500_v8 }
 0x1b4   :  { %2794 = vmatmul.msk.f32.vlgmr.msra.gmra.mxu3 %vm430_vm9, %v504_v10 }
 0x1b5   :  { %643 = vmatpush.msra.mxu3 %v625_v49  ;;  %v2939_v49 = vld [vmem:[%s4138_s2 + $0xb] ss:$0 sm:$0xff] }
 0x1b7   :  { %644 = vmatpush.msra.mxu3 %v624_v50 }
 0x1b9   :  { %645 = vmatpush.msra.mxu3 %v623_v51 }
 0x1bb   :  { %646 = vmatpush.msra.mxu3 %v622_v52  ;;  %v2809_v52 = vld [vmem:[%s4142_s6 + $0x48] sm:$0xff] }
 0x1bc   :  { %2799 = vmatmul.msk.f32.vlgmr.msrb.gmra.mxu3 %vm430_vm9, %v504_v10 }
 0x237   :  { %v532_v11 = vpop.f32.mrf.mxu3 }
 0x238   :  { %v533_v25 = vadd.f32 %v2932_v20, %v532_v11  ;;  %v652_v11 = vld [vmem:[%s4142_s6] sm:$0xff] }
 0x23a   :  { %v535_v30 = vmax.f32 %v533_v25, 0.0 }
 0x23f   :  { %v560_v13 = vpop.f32.mrf.mxu3 }
 0x240   :  { %v561_v14 = vadd.f32 %v2933_v12, %v560_v13  ;;  %v2936_v12 = vld [vmem:[%s4141_s5] ss:$0 sm:$0xff]  ;;  %s3084_s5 = smov 120  }
 0x242   :  { %v2800_v15 = vmul.f32 -1.442695, %v561_v14 }
 0x244   :  { %2968 = vpow2.f32 %v2800_v15 }
 0x24a   :  { %v2969_v16 = vpop.eup %2968 }
 0x24b   :  { %v566_v17 = vadd.f32 1.0, %v2969_v16  ;;  %v2937_v16 = vld [vmem:[%s4138_s2 + $0x7] ss:$0 sm:$0xff] }
 0x24d   :  { %2970 = vrcp.f32 %v566_v17  ;;  %v578_v23 = vand.u32 2147483648, %v566_v17  ;;  %v576_v21 = vand.u32 2147483647, %v566_v17  ;;  %vm572_vm15 = vweird.f32 %v566_v17 }
 0x24e   :  { %2972 = vrcp.f32 %v3082_v37  ;;  %v2811_v37 = vld [vmem:[%s4142_s6 + $0x58] sm:$0xff] }
 0x24f   :  { %v579_v27 = vor.u32 1.1754944e-38, %v578_v23  ;;  %vm577_vm2 = vcmp.eq.f32.partialorder %v576_v21, 8.507059e+37 }
 0x253   :  { %v2971_v18 = vpop.eup %2970 }
 0x254   :  { %v568_v19 = vmul.f32 %v2971_v18, %v566_v17  ;;  %vm573_vm14 = vweird.f32 %v2971_v18  ;;  %v2973_v38 = vpop.eup %2972 }
 0x255   :  { %vm574_vm1 = vmor %vm572_vm15, %vm573_vm14  ;;  %v593_v39 = vmul.f32 32.0, %v2973_v38  ;;  %vm597_vm3 = vweird.f32 %v2973_v38 }
 0x256   :  { %v569_v22 = vsub.f32 1.0, %v568_v19 }
 0x257   :  { %v594_v40 = vsub.f32 1.0, %v593_v39 }
 0x258   :  { %v570_v24 = vmul.f32 %v2971_v18, %v569_v22  ;;  %v2806_v22 = vld [vmem:[%s4140_s4 + $0x38] sm:$0xff] }
 0x259   :  { %v595_v41 = vmul.f32 %v2973_v38, %v594_v40  ;;  %737 = vmatpush.msrb.mxu1 %v2806_v22 }
 0x25a   :  { %v571_v26 = vadd.f32 %v2971_v18, %v570_v24 }
 0x25b   :  { %v596_v43 = vadd.f32 %v2973_v38, %v595_v41 }
 0x25c   :  { %v575_v28 = vsel %vm574_vm1, %v2971_v18, %v571_v26 }
 0x25d   :  { %v580_v29 = vsel %vm577_vm2, %v579_v27, %v575_v28  ;;  %v3359_v42 = vsel %vm597_vm3, %v2973_v38, %v596_v43  ;;  %v2805_v27 = vld [vmem:[%s4140_s4 + $0x30] sm:$0xff]  ;;  %v2804_v28 = vld [vmem:[%s4140_s4 + $0x28] sm:$0xff]  ;;  %vm876_vm3 = vcmask 64512  }
 0x25e   :  { %v583_v31 = vsub.f32 1.0, %v580_v29  ;;  %v582_v32 = vmul.f32 %v580_v29, %v535_v30  ;;  %738 = vmatpush.msrb.mxu1 %v2805_v27  ;;  %v2803_v29 = vld [vmem:[%s4140_s4 + $0x20] sm:$0xff]  ;;  %v2815_v30 = vld [vmem:[%s4142_s6 + $0x78] sm:$0xff]  ;;  %v2810_v38 = vld [vmem:[%s4142_s6 + $0x50] sm:$0xff]  ;;  %s3083_s4 = smov 96  }
 0x25f   :  { %768 = vmatpush.msrb.mxu2 %v2815_v30  ;;  %v844_v27 = vld [vmem:[%s4146_s10 + $0x18] sm:$0xff]  ;;  %v841_v30 = vld [vmem:[%s4146_s10] sm:$0xff] }
 0x260   :  { %v584_v33 = vmul.f32 %v583_v31, %v504_v10  ;;  %v653_v10 = vld [vmem:[%s4142_s6 + $0x8] sm:$0xff]  ;;  %739 = vmatpush.msrb.mxu1 %v2804_v28  ;;  %v2814_v31 = vld [vmem:[%s4142_s6 + $0x70] sm:$0xff] }
 0x261   :  { %680 = vmatpush.msrb.mxu0 %v653_v10  ;;  %769 = vmatpush.msrb.mxu2 %v2814_v31  ;;  %v843_v28 = vld [vmem:[%s4146_s10 + $0x10] sm:$0xff] }
 0x262   :  { %v585_v34 = vadd.f32 %v584_v33, %v582_v32  ;;  %740 = vmatpush.msrb.mxu1 %v2803_v29  ;;  %v2813_v32 = vld [vmem:[%s4142_s6 + $0x68] sm:$0xff] }
 0x263   :  { %681 = vmatpush.msrb.mxu0 %v652_v11  ;;  %770 = vmatpush.msrb.mxu2 %v2813_v32  ;;  %v842_v29 = vld [vmem:[%s4146_s10 + $0x8] sm:$0xff] }
 0x264   :  { %v586_v35 = vmax.f32 %v585_v34, 0.0 }
 0x265   :  { %862 = vmatpush.msra.mxu0 %v844_v27 }
 0x266   :  { %v589_v36 = vsel %vm430_vm9, %v586_v35, 0.0 }
 0x267   :  { %590 = vadd.xlane.f32.xlu0 %v589_v36  ;;  %863 = vmatpush.msra.mxu0 %v843_v28 }
 0x269   :  { %864 = vmatpush.msra.mxu0 %v842_v29 }
 0x26b   :  { %865 = vmatpush.msra.mxu0 %v841_v30 }
 0x2da   :  { %v591_v44 = vpop.xlane.xlu0 %590 }
 0x2db   :  { %v599_v45 = vmul.f32 %v3359_v42, %v591_v44 }
 0x2dd   :  { %v600_v46 = vsub.f32 %v586_v35, %v599_v45  ;;  %v2812_v35 = vld [vmem:[%s4142_s6 + $0x60] sm:$0xff]  ;;  %s3085_s6 = smov 88  }
 0x2de   :  { %771 = vmatpush.msrb.mxu2 %v2812_v35 }
 0x2df   :  { %v601_v47 = vmul.f32 %v600_v46, %v600_v46 }
 0x2e0   :  { %772 = vmatpush.msrb.mxu2 %v2811_v37 }
 0x2e1   :  { %v602_v48 = vsel %vm430_vm9, %v601_v47, 0.0 }
 0x2e2   :  { %603 = vadd.xlane.f32.xlu0 %v602_v48  ;;  %773 = vmatpush.msrb.mxu2 %v2810_v38 }
 0x2e4   :  { %774 = vmatpush.msrb.mxu2 %v2809_v52 }
 0x2e6   :  { %775 = vmatpush.msrb.mxu2 %v2808_v53 }
 0x355   :  { %v604_v56 = vpop.xlane.xlu0 %603 }
 0x356   :  { %v605_v57 = vmul.f32 %v604_v56, %v3359_v42 }
 0x358   :  { %v606_v59 = vadd.f32 1e-05, %v605_v57 }
 0x35a   :  { %2974 = vrsqrt.f32 %v606_v59  ;;  %vm613_vm5 = vweird.f32 %v606_v59 }
 0x360   :  { %v2975_v62 = vpop.eup %2974 }
 0x361   :  { %v608_v63 = vmul.f32 %v2975_v62, %v606_v59  ;;  %vm614_vm4 = vweird.f32 %v2975_v62 }
 0x362   :  { %vm615_vm6 = vmor %vm613_vm5, %vm614_vm4  ;;  %vm939_vm4 = vcmask 27648   ;;  %vm996_vm5 = vcmask 1043456  }
 0x363   :  { %v609_v0 = vmul.f32 %v2975_v62, %v608_v63 }
 0x365   :  { %v610_v1 = vmul.f32 0.5, %v609_v0 }
 0x367   :  { %v611_v2 = vsub.f32 1.5, %v610_v1 }
 0x369   :  { %v612_v3 = vmul.f32 %v2975_v62, %v611_v2 }
 0x36b   :  { %v616_v5 = vsel %vm615_vm6, %v2975_v62, %v612_v3 }
 0x36c   :  { %v617_v6 = vmul.f32 %v616_v5, %v600_v46  ;;  %v2938_v46 = vld [vmem:[%s4138_s2 + $0x9] ss:$0 sm:$0xff] }
 0x36e   :  { %v619_v8 = vmul.f32 %v2934_v4, %v617_v6 }
 0x370   :  { %v621_v9 = vadd.f32 %v2935_v7, %v619_v8 }
 0x372   :  { %2801 = vmatmul.msk.f32.vlgmr.msra.gmra.mxu3 %vm430_vm9, %v621_v9 }
 0x3f5   :  { %v648_v13 = vpop.f32.mrf.mxu3 }
 0x3f6   :  { %v649_v14 = vadd.f32 %v2936_v12, %v648_v13  ;;  %v2942_v13 = vld [vmem:[%s4138_s2 + $0xa] ss:$0 sm:$0xff] }
 0x3f8   :  { %v651_v15 = vmax.f32 %v649_v14, 0.0 }
 0x3fa   :  { %2802 = vmatmul.msk.f32.vlgmr.msrb.gmra.mxu0 %vm662_vm7, %v651_v15 }
 0x477   :  { %v683_v17 = vpop.f32.mrf.mxu0 }
 0x478   :  { %v684_v18 = vadd.f32 %v2937_v16, %v683_v17  ;;  %v2943_v16 = vld [vmem:[%s4138_s2 + $0xc] ss:$0 sm:$0xff] }
 0x47a   :  { %v686_v19 = vadd.f32 %v684_v18, %v621_v9  ;;  %v809_v18 = vld [vmem:[%s4143_s7] sm:$0xff] }
 0x47c   :  { %v689_v20 = vsel %vm430_vm9, %v686_v19, 0.0 }
 0x47d   :  { %690 = vadd.xlane.f32.xlu1 %v689_v20 }
 0x4f0   :  { %v691_v23 = vpop.xlane.xlu1 %690 }
 0x4f1   :  { %v692_v24 = vmul.f32 %v691_v23, %v3359_v42 }
 0x4f3   :  { %v693_v21 = vsub.f32 %v686_v19, %v692_v24 }
 0x4f5   :  { %v694_v25 = vmul.f32 %v693_v21, %v693_v21 }
 0x4f7   :  { %v695_v26 = vsel %vm430_vm9, %v694_v25, 0.0 }
 0x4f8   :  { %696 = vadd.xlane.f32.xlu1 %v695_v26 }
 0x56b   :  { %v697_v33 = vpop.xlane.xlu1 %696 }
 0x56c   :  { %v698_v34 = vmul.f32 %v697_v33, %v3359_v42 }
 0x56e   :  { %v699_v36 = vadd.f32 1e-05, %v698_v34 }
 0x570   :  { %2976 = vrsqrt.f32 %v699_v36  ;;  %vm706_vm10 = vweird.f32 %v699_v36 }
 0x576   :  { %v2977_v39 = vpop.eup %2976 }
 0x577   :  { %v701_v40 = vmul.f32 %v2977_v39, %v699_v36  ;;  %vm707_vm8 = vweird.f32 %v2977_v39 }
 0x578   :  { %vm708_vm11 = vmor %vm706_vm10, %vm707_vm8 }
 0x579   :  { %v702_v41 = vmul.f32 %v2977_v39, %v701_v40  ;;  %v2944_v40 = vld [vmem:[%s4145_s9] ss:$0 sm:$0xff] }
 0x57b   :  { %v703_v43 = vmul.f32 0.5, %v702_v41 }
 0x57d   :  { %v704_v44 = vsub.f32 1.5, %v703_v43 }
 0x57f   :  { %v705_v45 = vmul.f32 %v2977_v39, %v704_v44  ;;  %v2945_v44 = vld [vmem:[%s4145_s9 + $0x1] ss:$0 sm:$0xff] }
 0x581   :  { %v709_v47 = vsel %vm708_vm11, %v2977_v39, %v705_v45 }
 0x582   :  { %v710_v48 = vmul.f32 %v709_v47, %v693_v21  ;;  %v2946_v47 = vld [vmem:[%s4147_s11] ss:$0 sm:$0xff] }
 0x584   :  { %v712_v50 = vmul.f32 %v2938_v46, %v710_v48 }
 0x586   :  { %v714_v51 = vadd.f32 %v2939_v49, %v712_v50 }
 0x588   :  { %2807 = vmatmul.msk.f32.vlgmr.msrb.gmra.mxu1 %vm430_vm9, %v714_v51 }
 0x605   :  { %v742_v55 = vpop.f32.mrf.mxu1 }
 0x606   :  { %v743_v56 = vadd.f32 %v2940_v54, %v742_v55 }
 0x608   :  { %v745_v57 = vmax.f32 %v743_v56, 0.0 }
 0x60a   :  { %2816 = vmatmul.msk.f32.vlgmr.msrb.gmra.mxu2 %vm662_vm7, %v745_v57 }
 0x68d   :  { %v777_v59 = vpop.f32.mrf.mxu2 }
 0x68e   :  { %v778_v60 = vadd.f32 %v2941_v58, %v777_v59 }
 0x690   :  { %v780_v61 = vadd.f32 %v778_v60, %v714_v51 }
 0x692   :  { %v783_v62 = vsel %vm430_vm9, %v780_v61, 0.0 }
 0x693   :  { %784 = vadd.xlane.f32.xlu2 %v783_v62 }
 0x706   :  { %v785_v63 = vpop.xlane.xlu2 %784 }
 0x707   :  { %v786_v0 = vmul.f32 %v785_v63, %v3359_v42 }
 0x709   :  { %v787_v1 = vsub.f32 %v780_v61, %v786_v0 }
 0x70b   :  { %v788_v2 = vmul.f32 %v787_v1, %v787_v1 }
 0x70d   :  { %v789_v3 = vsel %vm430_vm9, %v788_v2, 0.0 }
 0x70e   :  { %790 = vadd.xlane.f32.xlu2 %v789_v3 }
 0x781   :  { %v791_v4 = vpop.xlane.xlu2 %790 }
 0x782   :  { %v792_v5 = vmul.f32 %v791_v4, %v3359_v42 }
 0x784   :  { %v793_v6 = vadd.f32 1e-05, %v792_v5 }
 0x786   :  { %2978 = vrsqrt.f32 %v793_v6  ;;  %vm800_vm13 = vweird.f32 %v793_v6 }
 0x78c   :  { %v2979_v7 = vpop.eup %2978 }
 0x78d   :  { %v795_v8 = vmul.f32 %v2979_v7, %v793_v6  ;;  %vm801_vm12 = vweird.f32 %v2979_v7 }
 0x78e   :  { %vm802_vm14 = vmor %vm800_vm13, %vm801_vm12  ;;  %vm992_vm12 = vcmask 31744  }
 0x78f   :  { %v796_v9 = vmul.f32 %v2979_v7, %v795_v8 }
 0x791   :  { %v797_v10 = vmul.f32 0.5, %v796_v9 }
 0x793   :  { %v798_v11 = vsub.f32 1.5, %v797_v10 }
 0x795   :  { %v799_v12 = vmul.f32 %v2979_v7, %v798_v11 }
 0x797   :  { %v803_v14 = vsel %vm802_vm14, %v2979_v7, %v799_v12 }
 0x798   :  { %v804_v15 = vmul.f32 %v803_v14, %v787_v1 }
 0x79a   :  { %v806_v17 = vmul.f32 %v2942_v13, %v804_v15 }
 0x79c   :  { %v808_v19 = vadd.f32 %v2943_v16, %v806_v17  ;;  %v3582_v17 = vld [vmem:[%s4144_s8] ss:$0 sm:$0xff] }
 0x79e   :  { %v810_v20 = vadd.f32 %v809_v18, %v808_v19 }
 0x7a0   :  { %v813_v22 = vsel %vm430_vm9, %v810_v20, 0.0 }
 0x7a1   :  { %814 = vadd.xlane.f32.xlu0 %v813_v22 }
 0x814   :  { %v815_v23 = vpop.xlane.xlu0 %814 }
 0x815   :  { %v816_v24 = vmul.f32 %v815_v23, %v3359_v42 }
 0x817   :  { %v817_v21 = vsub.f32 %v810_v20, %v816_v24 }
 0x819   :  { %v818_v25 = vmul.f32 %v817_v21, %v817_v21 }
 0x81b   :  { %v819_v26 = vsel %vm430_vm9, %v818_v25, 0.0  ;;  %v3592_v25 = vld [vmem:[%s4144_s8 + $0x1] ss:$0 sm:$0xff] }
 0x81c   :  { %820 = vadd.xlane.f32.xlu1 %v819_v26 }
 0x88f   :  { %v821_v31 = vpop.xlane.xlu1 %820 }
 0x890   :  { %v822_v32 = vmul.f32 %v821_v31, %v3359_v42 }
 0x892   :  { %v823_v33 = vadd.f32 1e-12, %v822_v32 }
 0x894   :  { %2980 = vrsqrt.f32 %v823_v33  ;;  %vm830_vm1 = vweird.f32 %v823_v33 }
 0x89a   :  { %v2981_v34 = vpop.eup %2980 }
 0x89b   :  { %v825_v35 = vmul.f32 %v2981_v34, %v823_v33  ;;  %vm831_vm15 = vweird.f32 %v2981_v34 }
 0x89c   :  { %vm832_vm2 = vmor %vm830_vm1, %vm831_vm15 }
 0x89d   :  { %v826_v36 = vmul.f32 %v2981_v34, %v825_v35 }
 0x89f   :  { %v827_v37 = vmul.f32 0.5, %v826_v36 }
 0x8a1   :  { %v828_v38 = vsub.f32 1.5, %v827_v37 }
 0x8a3   :  { %v829_v39 = vmul.f32 %v2981_v34, %v828_v38 }
 0x8a5   :  { %v833_v41 = vsel %vm832_vm2, %v2981_v34, %v829_v39 }
 0x8a6   :  { %v834_v43 = vmul.f32 %v833_v41, %v817_v21 }
 0x8a8   :  { %v836_v45 = vmul.f32 %v2944_v40, %v834_v43 }
 0x8aa   :  { %v3503_v46 = vadd.f32 %v2945_v44, %v836_v45 }
 0x8ac   :  { %2817 = vmatmul.msk.f32.vlgmr.msra.gmra.mxu0 %vm430_vm9, %v3503_v46 }
 0x929   :  { %v867_v48 = vpop.f32.mrf.mxu0 }
 0x92a   :  { %v3510_v49 = vadd.f32 %v2946_v47, %v867_v48 }
 0x92c   :  { %872 = vst [vmem:[#allocation1] ss:$2 sm:$0xff] %v3510_v49  ;;  %v3514_v50 = vrot.slane %v3510_v49, 4 }
 0x933   :  { %v873_v51 = vld.sshfl [vmem:[#allocation1] sm:$0xff pattern:$0x75316420] }
 0x934   :  { %901 = vst [vmem:[#allocation1] ss:$2 sm:$0xff] %v3514_v50  ;;  %874 = vrot.lane.b32.xlu2 %v873_v51, %s3083_s4 }
 0x93b   :  { %v902_v52 = vld.sshfl [vmem:[#allocation1] sm:$0xff pattern:$0x75316420] }
 0x93c   :  { %988 = vst [vmem:[#allocation1] ss:$2 sm:$0xff] %v3510_v49  ;;  %903 = vrot.lane.b32.xlu0 %v902_v52, %s3083_s4 }
 0x943   :  { %v3520_v53 = vld.sshfl [vmem:[#allocation1] sm:$0xff pattern:$0x75316420] }
 0x944   :  { %1019 = vst [vmem:[#allocation1] ss:$2 sm:$0xff] %v3514_v50 }
 0x94b   :  { %v3523_v54 = vld.sshfl [vmem:[#allocation1] sm:$0xff pattern:$0x75316420] }
 0x94c   :  { %1048 = vst [vmem:[#allocation1] ss:$2 sm:$0xff] %v3510_v49 }
 0x953   :  { %v1049_v55 = vld.sshfl [vmem:[#allocation1] sm:$0xff pattern:$0x75316420] }
 0x954   :  { %1052 = vst [vmem:[#allocation1] ss:$2 sm:$0xff] %v3510_v49  ;;  %1050 = vrot.lane.b32.xlu0 %v1049_v55, %s3084_s5 }
 0x95b   :  { %v1053_v56 = vld.sshfl [vmem:[#allocation1] sm:$0xff pattern:$0x75316420] }
 0x95c   :  { %1080 = vst [vmem:[#allocation1] ss:$2 sm:$0xff] %v3514_v50  ;;  %1054 = vrot.lane.b32.xlu1 %v1053_v56, %s3085_s6 }
 0x963   :  { %v1081_v57 = vld.sshfl [vmem:[#allocation1] sm:$0xff pattern:$0x75316420] }
 0x964   :  { %1084 = vst [vmem:[#allocation1] ss:$2 sm:$0xff] %v3514_v50  ;;  %1082 = vrot.lane.b32.xlu2 %v1081_v57, %s3084_s5 }
 0x96b   :  { %v1085_v58 = vld.sshfl [vmem:[#allocation1] sm:$0xff pattern:$0x75316420] }
 0x96c   :  { %1164 = vst [vmem:[#allocation1] ss:$2 sm:$0xff] %v3510_v49  ;;  %1086 = vrot.lane.b32.xlu2 %v1085_v58, %s3085_s6 }
 0x973   :  { %v3534_v59 = vld.sshfl [vmem:[#allocation1] sm:$0xff pattern:$0x75316420] }
 0x974   :  { %1193 = vst [vmem:[#allocation1] ss:$2 sm:$0xff] %v3514_v50 }
 0x97b   :  { %v3537_v60 = vld.sshfl [vmem:[#allocation1] sm:$0xff pattern:$0x75316420] }
 0x97c   :  { %1222 = vst [vmem:[#allocation1] ss:$2 sm:$0xff] %v3510_v49 }
 0x983   :  { %v1223_v61 = vld.sshfl [vmem:[#allocation1] sm:$0xff pattern:$0x75316420] }
 0x984   :  { %1226 = vst [vmem:[#allocation1] ss:$2 sm:$0xff] %v3510_v49  ;;  %1224 = vrot.lane.b32.xlu2 %v1223_v61, %s3086_s26 }
 0x98b   :  { %v1227_v62 = vld.sshfl [vmem:[#allocation1] sm:$0xff pattern:$0x75316420] }
 0x98c   :  { %1254 = vst [vmem:[#allocation1] ss:$2 sm:$0xff] %v3514_v50  ;;  %1228 = vrot.lane.b32.xlu1 %v1227_v62, %s3087_s20 }
 0x98e   :  { %v875_v63 = vpop.permute.xlu2 %874 }
 0x98f   :  { %2818 = vmatpush.xpose.msk.msrb.mxu0 %vm876_vm3, %v875_v63 }
 0x992   :  { %2819 = vmatmul.msk.f32.vlgmr.msrb.gmra.mxu0 %vm876_vm3, %v3510_v49 }
 0x993   :  { %v1255_v0 = vld.sshfl [vmem:[#allocation1] sm:$0xff pattern:$0x75316420] }
 0x994   :  { %1258 = vst [vmem:[#allocation1] ss:$2 sm:$0xff] %v3514_v50  ;;  %1256 = vrot.lane.b32.xlu1 %v1255_v0, %s3086_s26 }
 0x99b   :  { %v1259_v1 = vld.sshfl [vmem:[#allocation1] sm:$0xff pattern:$0x75316420] }
 0x99c   :  { %1338 = vst [vmem:[#allocation1] ss:$2 sm:$0xff] %v3510_v49  ;;  %1260 = vrot.lane.b32.xlu0 %v1259_v1, %s3087_s20 }
 0x9a3   :  { %v3551_v2 = vld.sshfl [vmem:[#allocation1] sm:$0xff pattern:$0x75316420] }
 0x9a4   :  { %1367 = vst [vmem:[#allocation1] ss:$2 sm:$0xff] %v3514_v50 }
 0x9ab   :  { %v3554_v3 = vld.sshfl [vmem:[#allocation1] sm:$0xff pattern:$0x75316420] }
 0x9ac   :  { %1396 = vst [vmem:[#allocation1] ss:$2 sm:$0xff] %v3510_v49 }
 0x9ae   :  { %v904_v4 = vpop.permute.xlu0 %903 }
 0x9af   :  { %2820 = vmatpush.xpose.msk.msra.mxu1 %vm876_vm3, %v904_v4 }
 0x9b2   :  { %2821 = vmatmul.msk.f32.vlgmr.msra.gmra.mxu1 %vm876_vm3, %v3514_v50 }
 0x9b3   :  { %v1397_v5 = vld.sshfl [vmem:[#allocation1] sm:$0xff pattern:$0x75316420] }
 0x9b4   :  { %1400 = vst [vmem:[#allocation1] ss:$2 sm:$0xff] %v3510_v49  ;;  %1398 = vrot.lane.b32.xlu1 %v1397_v5, %s3088_s21 }
 0x9bb   :  { %v1401_v6 = vld.sshfl [vmem:[#allocation1] sm:$0xff pattern:$0x75316420] }
 0x9bc   :  { %1428 = vst [vmem:[#allocation1] ss:$2 sm:$0xff] %v3514_v50  ;;  %1402 = vrot.lane.b32.xlu0 %v1401_v6, %s3089_s22 }
 0x9be   :  { %v1083_v7 = vpop.permute.xlu2 %1082 }
 0x9c3   :  { %v1429_v8 = vld.sshfl [vmem:[#allocation1] sm:$0xff pattern:$0x75316420] }
 0x9c4   :  { %1432 = vst [vmem:[#allocation1] ss:$2 sm:$0xff] %v3514_v50  ;;  %1430 = vrot.lane.b32.xlu0 %v1429_v8, %s3088_s21 }
 0x9c6   :  { %v1087_v9 = vpop.permute.xlu2 %1086  ;;  %v1051_v12 = vpop.permute.xlu0 %1050 }
 0x9c7   :  { %2828 = vmatpush.xpose.msk.msrb.mxu1 %vm876_vm3, %v1087_v9 }
 0x9ca   :  { %2829 = vmatmul.msk.f32.vlgmr.msrb.gmra.mxu1 %vm876_vm3, %v1083_v7 }
 0x9cb   :  { %v1433_v10 = vld.sshfl [vmem:[#allocation1] sm:$0xff pattern:$0x75316420] }
 0x9cc   :  { %1512 = vst [vmem:[#allocation1] ss:$2 sm:$0xff] %v3510_v49  ;;  %990 = vrot.lane.b32.xlu0 %v3520_v53, %s3090_s23  ;;  %1434 = vrot.lane.b32.xlu2 %v1433_v10, %s3089_s22 }
 0x9ce   :  { %v1055_v11 = vpop.permute.xlu1 %1054 }
 0x9cf   :  { %2826 = vmatpush.xpose.msk.msra.mxu0 %vm876_vm3, %v1055_v11 }
 0x9d2   :  { %2827 = vmatmul.msk.f32.vlgmr.msra.gmra.mxu0 %vm876_vm3, %v1051_v12 }
 0x9d3   :  { %v3574_v13 = vld.sshfl [vmem:[#allocation1] sm:$0xff pattern:$0x75316420] }
 0x9d4   :  { %1541 = vst [vmem:[#allocation1] ss:$2 sm:$0xff] %v3514_v50 }
 0x9de   :  { %v1225_v15 = vpop.permute.xlu2 %1224 }
 0x9fe   :  { %v1229_v14 = vpop.permute.xlu1 %1228 }
 0x9ff   :  { %2834 = vmatpush.xpose.msk.msrb.mxu0 %vm876_vm3, %v1229_v14 }
 0xa02   :  { %2835 = vmatmul.msk.f32.vlgmr.msrb.gmra.mxu0 %vm876_vm3, %v1225_v15 }
 0xa06   :  { %v1257_v20 = vpop.permute.xlu1 %1256 }
 0xa0e   :  { %v1261_v16 = vpop.permute.xlu0 %1260 }
 0xa0f   :  { %v898_v18 = vpop.f32.mrf.mxu0  ;;  %2836 = vmatpush.xpose.msk.msra.mxu1 %vm876_vm3, %v1261_v16 }
 0xa10   :  { %v929_v19 = vmul.f32 0.35355338, %v898_v18 }
 0xa12   :  { %2837 = vmatmul.msk.f32.vlgmr.msra.gmra.mxu1 %vm876_vm3, %v1257_v20  ;;  %v937_v22 = vadd.f32 %v3582_v17, %v929_v19  ;;  %v1542_v20 = vld.sshfl [vmem:[#allocation1] sm:$0xff pattern:$0x75316420] }
 0xa14   :  { %v940_v23 = vsel %vm939_vm4, %v937_v22, -inf }
 0xa15   :  { %941 = vmax.xlane.f32.xlu2 %v940_v23 }
 0xa26   :  { %v1435_v24 = vpop.permute.xlu2 %1434  ;;  %v1399_v28 = vpop.permute.xlu1 %1398 }
 0xa27   :  { %2844 = vmatpush.xpose.msk.msrb.mxu1 %vm876_vm3, %v1435_v24 }
 0xa2e   :  { %v1403_v21 = vpop.permute.xlu0 %1402 }
 0xa2f   :  { %v926_v26 = vpop.f32.mrf.mxu1  ;;  %2842 = vmatpush.xpose.msk.msra.mxu0 %vm876_vm3, %v1403_v21 }
 0xa30   :  { %v930_v27 = vmul.f32 0.35355338, %v926_v26 }
 0xa32   :  { %2843 = vmatmul.msk.f32.vlgmr.msra.gmra.mxu0 %vm876_vm3, %v1399_v28  ;;  %v3597_v29 = vadd.f32 %v3592_v25, %v930_v27 }
 0xa34   :  { %v943_v30 = vsel %vm939_vm4, %v3597_v29, -inf }
 0xa35   :  { %944 = vmax.xlane.f32.xlu1 %v943_v30 }
 0xa36   :  { %v1431_v31 = vpop.permute.xlu0 %1430 }
 0xa37   :  { %2845 = vmatmul.msk.f32.vlgmr.msrb.gmra.mxu1 %vm876_vm3, %v1431_v31 }
 0xa3e   :  { %v991_v32 = vpop.permute.xlu0 %990 }
 0xa3f   :  { %2822 = vmatpush.msk.msra.mxu2 %vm996_vm5, %v991_v32 }
 0xa47   :  { %v1109_v33 = vpop.f32.mrf.mxu1 }
 0xa48   :  { %v1113_v34 = vmul.f32 0.35355338, %v1109_v33 }
 0xa4a   :  { %v1115_v35 = vadd.f32 %v3592_v25, %v1113_v34 }
 0xa4c   :  { %v1119_v36 = vsel %vm939_vm4, %v1115_v35, -inf }
 0xa4d   :  { %1120 = vmax.xlane.f32.xlu2 %v1119_v36 }
 0xa4f   :  { %v1077_v37 = vpop.f32.mrf.mxu0 }
 0xa50   :  { %v1112_v38 = vmul.f32 0.35355338, %v1077_v37 }
 0xa52   :  { %v1114_v39 = vadd.f32 %v3582_v17, %v1112_v38 }
 0xa54   :  { %v1116_v40 = vsel %vm939_vm4, %v1114_v39, -inf }
 0xa55   :  { %1117 = vmax.xlane.f32.xlu0 %v1116_v40 }
 0xa7f   :  { %v1251_v41 = vpop.f32.mrf.mxu0 }
 0xa80   :  { %v1286_v43 = vmul.f32 0.35355338, %v1251_v41 }
 0xa82   :  { %v1288_v44 = vadd.f32 %v3582_v17, %v1286_v43 }
 0xa84   :  { %v1290_v45 = vsel %vm939_vm4, %v1288_v44, -inf }
 0xa85   :  { %1291 = vmax.xlane.f32.xlu1 %v1290_v45 }
 0xa88   :  { %v942_v47 = vpop.xlane.xlu2 %941 }
 0xa89   :  { %v946_v48 = vsub.f32 %v937_v22, %v942_v47 }
 0xa8b   :  { %v948_v49 = vmul.f32 1.442695, %v946_v48 }
 0xa8d   :  { %2982 = vpow2.f32 %v948_v49 }
 0xa8f   :  { %v1283_v50 = vpop.f32.mrf.mxu1 }
 0xa90   :  { %v1287_v51 = vmul.f32 0.35355338, %v1283_v50 }
 0xa92   :  { %v1289_v52 = vadd.f32 %v3592_v25, %v1287_v51 }
 0xa93   :  { %v3611_v55 = vpop.eup %2982 }
 0xa94   :  { %v1293_v53 = vsel %vm939_vm4, %v1289_v52, -inf  ;;  %v952_v56 = vsel %vm939_vm4, %v3611_v55, 0.0 }
 0xa95   :  { %1294 = vmax.xlane.f32.xlu0 %v1293_v53 }
 0xa9d   :  { %953 = vadd.xlane.f32.xlu0 %v952_v56 }
 0xaa8   :  { %v945_v15 = vpop.xlane.xlu1 %944 }
 0xaa9   :  { %v947_v16 = vsub.f32 %v3597_v29, %v945_v15 }
 0xaab   :  { %v950_v18 = vmul.f32 1.442695, %v947_v16 }
 0xaaf   :  { %v1425_v57 = vpop.f32.mrf.mxu0 }
 0xab0   :  { %v1460_v58 = vmul.f32 0.35355338, %v1425_v57 }
 0xab1   :  { %1166 = vrot.lane.b32.xlu0 %v3534_v59, %s3091_s27 }
 0xab2   :  { %v3618_v61 = vadd.f32 %v3582_v17, %v1460_v58 }
 0xab4   :  { %v1457_v62 = vpop.f32.mrf.mxu1  ;;  %v1464_v63 = vsel %vm939_vm4, %v3618_v61, -inf }
 0xab5   :  { %v1461_v0 = vmul.f32 0.35355338, %v1457_v62  ;;  %1465 = vmax.xlane.f32.xlu2 %v1464_v63 }
 0xab7   :  { %v3623_v1 = vadd.f32 %v3592_v25, %v1461_v0 }
 0xab9   :  { %v1467_v4 = vsel %vm939_vm4, %v3623_v1, -inf }
 0xaba   :  { %1468 = vmax.xlane.f32.xlu1 %v1467_v4 }
 0xac0   :  { %v1121_v5 = vpop.xlane.xlu2 %1120 }
 0xac1   :  { %v1123_v7 = vsub.f32 %v1115_v35, %v1121_v5 }
 0xac3   :  { %v1126_v9 = vmul.f32 1.442695, %v1123_v7 }
 0xac8   :  { %v1118_v6 = vpop.xlane.xlu0 %1117 }
 0xac9   :  { %v1122_v59 = vsub.f32 %v1114_v39, %v1118_v6 }
 0xacb   :  { %v1124_v8 = vmul.f32 1.442695, %v1122_v59 }
 0xacd   :  { %2984 = vpow2.f32 %v1124_v8  ;;  %1021 = vrot.lane.b32.xlu2 %v3523_v54, %s3090_s23 }
 0xace   :  { %2986 = vpow2.f32 %v1126_v9 }
 0xacf   :  { %2988 = vpow2.f32 %v950_v18 }
 0xad3   :  { %v3629_v10 = vpop.eup %2984 }
 0xad4   :  { %v1128_v11 = vsel %vm939_vm4, %v3629_v10, 0.0  ;;  %v3633_v12 = vpop.eup %2986 }
 0xad5   :  { %1129 = vadd.xlane.f32.xlu1 %v1128_v11  ;;  %v1131_v14 = vsel %vm939_vm4, %v3633_v12, 0.0  ;;  %v3640_v54 = vpop.eup %2988 }
 0xad6   :  { %v955_v19 = vsel %vm939_vm4, %v3640_v54, 0.0 }
 0xadb   :  { %1132 = vadd.xlane.f32.xlu0 %v1131_v14 }
 0xaef   :  { %1369 = vrot.lane.b32.xlu0 %v3554_v3, %s3092_s19 }
 0xaf6   :  { %956 = vadd.xlane.f32.xlu2 %v955_v19 }
 0xaf7   :  { %1543 = vrot.lane.b32.xlu0 %v1542_v20, %s3093_s28 }
 0xaf8   :  { %v1292_v22 = vpop.xlane.xlu1 %1291 }
 0xaf9   :  { %v1296_v23 = vsub.f32 %v1288_v44, %v1292_v22 }
 0xafb   :  { %v1298_v24 = vmul.f32 1.442695, %v1296_v23 }
 0xafd   :  { %2990 = vpow2.f32 %v1298_v24 }
 0xb03   :  { %v3645_v21 = vpop.eup %2990 }
 0xb04   :  { %v1302_v26 = vsel %vm939_vm4, %v3645_v21, 0.0 }
 0xb05   :  { %1303 = vadd.xlane.f32.xlu2 %v1302_v26 }
 0xb08   :  { %v1295_v3 = vpop.xlane.xlu0 %1294 }
 0xb09   :  { %v1297_v27 = vsub.f32 %v1289_v52, %v1295_v3 }
 0xb0b   :  { %v1300_v28 = vmul.f32 1.442695, %v1297_v27 }
 0xb0d   :  { %2992 = vpow2.f32 %v1300_v28 }
 0xb10   :  { %v954_v29 = vpop.xlane.xlu0 %953 }
 0xb11   :  { %2994 = vrcp.f32 %v954_v29  ;;  %v969_v35 = vand.u32 2147483648, %v954_v29  ;;  %v967_v37 = vand.u32 2147483647, %v954_v29  ;;  %vm963_vm8 = vweird.f32 %v954_v29 }
 0xb13   :  { %v3649_v30 = vpop.eup %2992  ;;  %v970_v39 = vor.u32 1.1754944e-38, %v969_v35  ;;  %vm968_vm11 = vcmp.eq.f32.partialorder %v967_v37, 8.507059e+37 }
 0xb14   :  { %v1305_v31 = vsel %vm939_vm4, %v3649_v30, 0.0 }
 0xb15   :  { %1306 = vadd.xlane.f32.xlu1 %v1305_v31 }
 0xb17   :  { %v2995_v32 = vpop.eup %2994 }
 0xb18   :  { %v959_v33 = vmul.f32 %v2995_v32, %v954_v29  ;;  %vm964_vm6 = vweird.f32 %v2995_v32 }
 0xb19   :  { %vm965_vm10 = vmor %vm963_vm8, %vm964_vm6 }
 0xb1a   :  { %v960_v34 = vsub.f32 1.0, %v959_v33 }
 0xb1c   :  { %v961_v36 = vmul.f32 %v2995_v32, %v960_v34 }
 0xb1d   :  { %1340 = vrot.lane.b32.xlu2 %v3551_v2, %s3092_s19 }
 0xb1e   :  { %v962_v38 = vadd.f32 %v2995_v32, %v961_v36 }
 0xb20   :  { %v966_v40 = vsel %vm965_vm10, %v2995_v32, %v962_v38 }
 0xb21   :  { %v971_v41 = vsel %vm968_vm11, %v970_v39, %v966_v40 }
 0xb22   :  { %v3656_v43 = vmul.f32 %v3611_v55, %v971_v41 }
 0xb23   :  { %v1167_v44 = vpop.permute.xlu0 %1166 }
 0xb24   :  { %2823 = vmatmul.msk.f32.vlgmr.msra.gmra.mxu2 %vm992_vm12, %v3656_v43 }
 0xb25   :  { %2830 = vmatpush.msk.msrb.mxu2 %vm996_vm5, %v1167_v44  ;;  %1514 = vrot.lane.b32.xlu2 %v3574_v13, %s3093_s28 }
 0xb28   :  { %v1466_v2 = vpop.xlane.xlu2 %1465 }
 0xb29   :  { %v1470_v45 = vsub.f32 %v3618_v61, %v1466_v2 }
 0xb2b   :  { %v1472_v47 = vmul.f32 1.442695, %v1470_v45 }
 0xb2d   :  { %2996 = vpow2.f32 %v1472_v47  ;;  %v1469_v48 = vpop.xlane.xlu1 %1468 }
 0xb2e   :  { %v1471_v49 = vsub.f32 %v3623_v1, %v1469_v48 }
 0xb30   :  { %v1474_v50 = vmul.f32 1.442695, %v1471_v49  ;;  %v1022_v51 = vpop.permute.xlu2 %1021 }
 0xb31   :  { %2824 = vmatpush.msk.msrb.mxu3 %vm996_vm5, %v1022_v51 }
 0xb32   :  { %2998 = vpow2.f32 %v1474_v50 }
 0xb33   :  { %v3666_v52 = vpop.eup %2996 }
 0xb34   :  { %v1476_v53 = vsel %vm939_vm4, %v3666_v52, 0.0 }
 0xb35   :  { %1477 = vadd.xlane.f32.xlu1 %v1476_v53 }
 0xb38   :  { %v3670_v13 = vpop.eup %2998 }
 0xb39   :  { %v1479_v55 = vsel %vm939_vm4, %v3670_v13, 0.0 }
 0xb3d   :  { %1480 = vadd.xlane.f32.xlu1 %v1479_v55 }
 0xb48   :  { %v1130_v56 = vpop.xlane.xlu1 %1129 }
 0xb49   :  { %3000 = vrcp.f32 %v1130_v56  ;;  %v1145_v62 = vand.u32 2147483648, %v1130_v56  ;;  %v1143_v0 = vand.u32 2147483647, %v1130_v56  ;;  %vm1139_vm14 = vweird.f32 %v1130_v56 }
 0xb4b   :  { %v1146_v4 = vor.u32 1.1754944e-38, %v1145_v62  ;;  %vm1144_vm1 = vcmp.eq.f32.partialorder %v1143_v0, 8.507059e+37 }
 0xb4e   :  { %v1133_v37 = vpop.xlane.xlu0 %1132 }
 0xb4f   :  { %v3001_v57 = vpop.eup %3000 }
 0xb50   :  { %v1135_v58 = vmul.f32 %v3001_v57, %v1130_v56  ;;  %vm1140_vm13 = vweird.f32 %v3001_v57 }
 0xb51   :  { %vm1141_vm15 = vmor %vm1139_vm14, %vm1140_vm13 }
 0xb52   :  { %v1136_v61 = vsub.f32 1.0, %v1135_v58 }
 0xb54   :  { %v1137_v63 = vmul.f32 %v3001_v57, %v1136_v61 }
 0xb56   :  { %v1138_v1 = vadd.f32 %v3001_v57, %v1137_v63  ;;  %1195 = vrot.lane.b32.xlu1 %v3537_v60, %s3091_s27 }
 0xb58   :  { %v1142_v5 = vsel %vm1141_vm15, %v3001_v57, %v1138_v1 }
 0xb59   :  { %v1147_v6 = vsel %vm1144_vm1, %v1146_v4, %v1142_v5  ;;  %v1160_v4 = vand.u32 2147483648, %v1133_v37  ;;  %v1158_v5 = vand.u32 2147483647, %v1133_v37 }
 0xb5a   :  { %v3677_v7 = vmul.f32 %v3629_v10, %v1147_v6 }
 0xb5c   :  { %2831 = vmatmul.msk.f32.vlgmr.msrb.gmra.mxu2 %vm992_vm12, %v3677_v7 }
 0xb61   :  { %v1370_v6 = vpop.permute.xlu0 %1369 }
 0xb69   :  { %v957_v59 = vpop.xlane.xlu2 %956 }
 0xb6a   :  { %3002 = vrcp.f32 %v957_v59  ;;  %v984_v14 = vand.u32 2147483648, %v957_v59  ;;  %v982_v60 = vand.u32 2147483647, %v957_v59  ;;  %vm978_vm6 = vweird.f32 %v957_v59 }
 0xb6c   :  { %v985_v18 = vor.u32 1.1754944e-38, %v984_v14  ;;  %vm983_vm10 = vcmp.eq.f32.partialorder %v982_v60, 8.507059e+37 }
 0xb70   :  { %v3003_v8 = vpop.eup %3002 }
 0xb71   :  { %v974_v9 = vmul.f32 %v3003_v8, %v957_v59  ;;  %vm979_vm2 = vweird.f32 %v3003_v8 }
 0xb72   :  { %vm980_vm8 = vmor %vm978_vm6, %vm979_vm2 }
 0xb73   :  { %v975_v11 = vsub.f32 1.0, %v974_v9 }
 0xb75   :  { %v976_v15 = vmul.f32 %v3003_v8, %v975_v11  ;;  %v1161_v11 = vor.u32 1.1754944e-38, %v1160_v4 }
 0xb77   :  { %v977_v16 = vadd.f32 %v3003_v8, %v976_v15 }
 0xb78   :  { %v1304_v19 = vpop.xlane.xlu2 %1303 }
 0xb79   :  { %v981_v20 = vsel %vm980_vm8, %v3003_v8, %v977_v16  ;;  %3004 = vrcp.f32 %v1304_v19  ;;  %v1319_v27 = vand.u32 2147483648, %v1304_v19  ;;  %v1317_v29 = vand.u32 2147483647, %v1304_v19 }
 0xb7a   :  { %v986_v10 = vsel %vm983_vm10, %v985_v18, %v981_v20  ;;  %vm1313_vm13 = vweird.f32 %v1304_v19  ;;  %3006 = vrcp.f32 %v1133_v37 }
 0xb7b   :  { %v3682_v22 = vmul.f32 %v3640_v54, %v986_v10  ;;  %v1320_v32 = vor.u32 1.1754944e-38, %v1319_v27  ;;  %vm1318_vm15 = vcmp.eq.f32.partialorder %v1317_v29, 8.507059e+37 }
 0xb7d   :  { %2825 = vmatmul.msk.f32.vlgmr.msrb.gmra.mxu3 %vm992_vm12, %v3682_v22 }
 0xb7f   :  { %v3005_v23 = vpop.eup %3004 }
 0xb80   :  { %v1309_v24 = vmul.f32 %v3005_v23, %v1304_v19  ;;  %v1341_v26 = vpop.permute.xlu2 %1340  ;;  %vm1314_vm11 = vweird.f32 %v3005_v23  ;;  %v3007_v40 = vpop.eup %3006 }
 0xb81   :  { %2838 = vmatpush.msk.msra.mxu2 %vm996_vm5, %v1341_v26  ;;  %vm1315_vm14 = vmor %vm1313_vm13, %vm1314_vm11  ;;  %v1150_v2 = vmul.f32 %v3007_v40, %v1133_v37  ;;  %vm1155_vm10 = vweird.f32 %v3007_v40  ;;  %vm1154_vm11 = vweird.f32 %v1133_v37 }
 0xb82   :  { %v1310_v3 = vsub.f32 1.0, %v1309_v24  ;;  %vm1156_vm13 = vmor %vm1154_vm11, %vm1155_vm10 }
 0xb83   :  { %v1151_v49 = vsub.f32 1.0, %v1150_v2  ;;  %v1611_v2 = vld [vmem:[%s4148_s12 + $0x18] sm:$0xff] }
 0xb84   :  { %v1311_v28 = vmul.f32 %v3005_v23, %v1310_v3  ;;  %1629 = vmatpush.msrb.mxu0 %v1611_v2 }
 0xb85   :  { %v1152_v58 = vmul.f32 %v3007_v40, %v1151_v49 }
 0xb86   :  { %v1312_v31 = vadd.f32 %v3005_v23, %v1311_v28 }
 0xb87   :  { %v1153_v63 = vadd.f32 %v3007_v40, %v1152_v58 }
 0xb88   :  { %v1316_v33 = vsel %vm1315_vm14, %v3005_v23, %v1312_v31  ;;  %v1515_v54 = vpop.permute.xlu2 %1514  ;;  %v3693_v36 = vpop.xlane.xlu1 %1306  ;;  %vm1159_vm14 = vcmp.eq.f32.partialorder %v1158_v5, 8.507059e+37 }
 0xb89   :  { %v1321_v34 = vsel %vm1318_vm15, %v1320_v32, %v1316_v33  ;;  %2846 = vmatpush.msk.msrb.mxu2 %vm996_vm5, %v1515_v54  ;;  %v1157_v59 = vsel %vm1156_vm13, %v3007_v40, %v1153_v63  ;;  %v1334_v60 = vand.u32 2147483648, %v3693_v36  ;;  %v1332_v16 = vand.u32 2147483647, %v3693_v36  ;;  %v1544_v23 = vpop.permute.xlu0 %1543 }
 0xb8a   :  { %v3689_v35 = vmul.f32 %v3645_v21, %v1321_v34  ;;  %v1162_v14 = vsel %vm1159_vm14, %v1161_v11, %v1157_v59  ;;  %vm1606_vm14 = vcmask 195584   ;;  %v1669_v59 = vld [vmem:[%s4149_s13 + $0x18] sm:$0xff] }
 0xb8b   :  { %v3706_v19 = vmul.f32 %v3633_v12, %v1162_v14  ;;  %v1335_v24 = vor.u32 1.1754944e-38, %v1334_v60  ;;  %1687 = vmatpush.msra.mxu1 %v1669_v59  ;;  %v1703_v11 = vld [vmem:[%s4151_s15 + $0x38] sm:$0xff]  ;;  %v1702_v14 = vld [vmem:[%s4151_s15 + $0x30] sm:$0xff] }
 0xb8c   :  { %2839 = vmatmul.msk.f32.vlgmr.msra.gmra.mxu2 %vm992_vm12, %v3689_v35 }
 0xb8d   :  { %1717 = vmatpush.msra.mxu2 %v1703_v11  ;;  %v2955_v11 = vld [vmem:[%s4145_s9 + $0xc] ss:$0 sm:$0xff] }
 0xb8f   :  { %1718 = vmatpush.msra.mxu2 %v1702_v14 }
 0xba7   :  { %v1016_v38 = vpop.f32.mrf.mxu2 }
 0xba8   :  { %1572 = vst [vmem:[#allocation1] ss:$2 sm:$0xff] %v1016_v38  ;;  %v1478_v39 = vpop.xlane.xlu1 %1477 }
 0xba9   :  { %3008 = vrcp.f32 %v1478_v39  ;;  %v1493_v21 = vand.u32 2147483648, %v1478_v39  ;;  %v1491_v48 = vand.u32 2147483647, %v1478_v39  ;;  %vm1487_vm2 = vweird.f32 %v1478_v39 }
 0xbaa   :  { %3010 = vrcp.f32 %v3693_v36 }
 0xbab   :  { %v1494_v55 = vor.u32 1.1754944e-38, %v1493_v21  ;;  %vm1492_vm8 = vcmp.eq.f32.partialorder %v1491_v48, 8.507059e+37  ;;  %v1609_v21 = vld [vmem:[%s4148_s12 + $0x8] sm:$0xff] }
 0xbaf   :  { %v3009_v41 = vpop.eup %3008 }
 0xbb0   :  { %v1483_v44 = vmul.f32 %v3009_v41, %v1478_v39  ;;  %vm1488_vm1 = vweird.f32 %v3009_v41  ;;  %v1481_v51 = vpop.xlane.xlu1 %1480  ;;  %v3011_v53 = vpop.eup %3010 }
 0xbb1   :  { %vm1489_vm6 = vmor %vm1487_vm2, %vm1488_vm1  ;;  %3012 = vrcp.f32 %v1481_v51  ;;  %v1324_v61 = vmul.f32 %v3011_v53, %v3693_v36  ;;  %vm1329_vm15 = vweird.f32 %v3011_v53  ;;  %vm1328_vm1 = vweird.f32 %v3693_v36 }
 0xbb2   :  { %v1484_v45 = vsub.f32 1.0, %v1483_v44  ;;  %vm1330_vm2 = vmor %vm1328_vm1, %vm1329_vm15  ;;  %v1508_v12 = vand.u32 2147483648, %v1481_v51  ;;  %vm1502_vm10 = vweird.f32 %v1481_v51  ;;  %v1506_v27 = vand.u32 2147483647, %v1481_v51 }
 0xbb3   :  { %v1325_v0 = vsub.f32 1.0, %v1324_v61 }
 0xbb4   :  { %v1485_v47 = vmul.f32 %v3009_v41, %v1484_v45  ;;  %v1509_v31 = vor.u32 1.1754944e-38, %v1508_v12  ;;  %vm1507_vm13 = vcmp.eq.f32.partialorder %v1506_v27, 8.507059e+37  ;;  %v1610_v45 = vld [vmem:[%s4148_s12 + $0x10] sm:$0xff]  ;;  %v2950_v27 = vld [vmem:[%s4145_s9 + $0x4] ss:$0 sm:$0xff] }
 0xbb5   :  { %v1326_v8 = vmul.f32 %v3011_v53, %v1325_v0  ;;  %1630 = vmatpush.msrb.mxu0 %v1610_v45 }
 0xbb6   :  { %v1486_v50 = vadd.f32 %v3009_v41, %v1485_v47  ;;  %v1608_v47 = vld [vmem:[%s4148_s12] sm:$0xff] }
 0xbb7   :  { %v3013_v1 = vpop.eup %3012  ;;  %1631 = vmatpush.msrb.mxu0 %v1609_v21 }
 0xbb8   :  { %v1490_v56 = vsel %vm1489_vm6, %v3009_v41, %v1486_v50  ;;  %v1498_v9 = vmul.f32 %v3013_v1, %v1481_v51  ;;  %vm1333_vm6 = vcmp.eq.f32.partialorder %v1332_v16, 8.507059e+37  ;;  %v1700_v16 = vld [vmem:[%s4151_s15 + $0x20] sm:$0xff] }
 0xbb9   :  { %v1495_v57 = vsel %vm1492_vm8, %v1494_v55, %v1490_v56  ;;  %vm1503_vm8 = vweird.f32 %v3013_v1  ;;  %1632 = vmatpush.msrb.mxu0 %v1608_v47  ;;  %v2949_v56 = vld [vmem:[%s4145_s9 + $0x2] ss:$0 sm:$0xff] }
 0xbba   :  { %v3698_v62 = vmul.f32 %v3666_v52, %v1495_v57  ;;  %v1327_v52 = vadd.f32 %v3011_v53, %v1326_v8  ;;  %v1499_v15 = vsub.f32 1.0, %v1498_v9  ;;  %vm1504_vm11 = vmor %vm1502_vm10, %vm1503_vm8  ;;  %v1667_v8 = vld [vmem:[%s4149_s13 + $0x8] sm:$0xff]  ;;  %v1666_v9 = vld [vmem:[%s4149_s13] sm:$0xff] }
 0xbbc   :  { %2847 = vmatmul.msk.f32.vlgmr.msrb.gmra.mxu2 %vm992_vm12, %v3698_v62  ;;  %v1331_v20 = vsel %vm1330_vm2, %v3011_v53, %v1327_v52  ;;  %v1500_v10 = vmul.f32 %v3013_v1, %v1499_v15  ;;  %v1701_v52 = vld [vmem:[%s4151_s15 + $0x28] sm:$0xff] }
 0xbbd   :  { %v1336_v26 = vsel %vm1333_vm6, %v1335_v24, %v1331_v20  ;;  %1719 = vmatpush.msra.mxu2 %v1701_v52  ;;  %v1699_v20 = vld [vmem:[%s4151_s15 + $0x18] sm:$0xff] }
 0xbbe   :  { %v1501_v3 = vadd.f32 %v3013_v1, %v1500_v10  ;;  %v3714_v28 = vmul.f32 %v3649_v30, %v1336_v26 }
 0xbbf   :  { %1720 = vmatpush.msra.mxu2 %v1700_v16 }
 0xbc0   :  { %v1505_v29 = vsel %vm1504_vm11, %v3013_v1, %v1501_v3 }
 0xbc1   :  { %v1510_v32 = vsel %vm1507_vm13, %v1509_v31, %v1505_v29  ;;  %1721 = vmatpush.msra.mxu2 %v1699_v20 }
 0xbc2   :  { %v3719_v33 = vmul.f32 %v3670_v13, %v1510_v32  ;;  %v2951_v32 = vld [vmem:[%s4145_s9 + $0x6] ss:$0 sm:$0xff] }
 0xbc8   :  { %v1196_v18 = vpop.permute.xlu1 %1195 }
 0xbc9   :  { %2832 = vmatpush.msk.msra.mxu3 %vm996_vm5, %v1196_v18 }
 0xbca   :  { %2833 = vmatmul.msk.f32.vlgmr.msra.gmra.mxu3 %vm992_vm12, %v3706_v19 }
 0xbcb   :  { %2840 = vmatpush.msk.msrb.mxu3 %vm996_vm5, %v1370_v6 }
 0xbcd   :  { %2848 = vmatpush.msk.msra.mxu3 %vm996_vm5, %v1544_v23 }
 0xbd2   :  { %2841 = vmatmul.msk.f32.vlgmr.msrb.gmra.mxu3 %vm992_vm12, %v3714_v28 }
 0xbda   :  { %2849 = vmatmul.msk.f32.vlgmr.msra.gmra.mxu3 %vm992_vm12, %v3719_v33 }
 0xbdf   :  { %v1190_v34 = vpop.f32.mrf.mxu2 }
 0xc00   :  { %v1045_v54 = vpop.f32.mrf.mxu3 }
 0xc01   :  { %1574 = vst [vmem:[#allocation1 + $0x1] ss:$2 sm:$0xff] %v1045_v54 }
 0xc08   :  { %v1575_v36 = vld.sshfl [vmem:[#allocation1] sm:$0xff pattern:$0x75316420] }
 0xc09   :  { %1579 = vst [vmem:[#allocation1] ss:$2 sm:$0xff] %v1190_v34 }
 0xc0f   :  { %v1364_v37 = vpop.f32.mrf.mxu2 }
 0xc3f   :  { %v1538_v40 = vpop.f32.mrf.mxu2 }
 0xc4d   :  { %v1219_v30 = vpop.f32.mrf.mxu3 }
 0xc4e   :  { %1581 = vst [vmem:[#allocation1 + $0x1] ss:$2 sm:$0xff] %v1219_v30  ;;  %v1697_v30 = vld [vmem:[%s4151_s15 + $0x8] sm:$0xff] }
 0xc55   :  { %v1582_v38 = vld.sshfl [vmem:[#allocation1] sm:$0xff pattern:$0x75316420]  ;;  %v1393_v39 = vpop.f32.mrf.mxu3 }
 0xc56   :  { %1588 = vst [vmem:[#allocation1] ss:$2 sm:$0xff] %v1364_v37  ;;  %1583 = vrot.lane.b32.xlu2 %v1582_v38, %s4160_s29  ;;  %v1696_v37 = vld [vmem:[%s4151_s15] sm:$0xff] }
 0xc57   :  { %1590 = vst [vmem:[#allocation1 + $0x1] ss:$2 sm:$0xff] %v1393_v39  ;;  %v2952_v38 = vld [vmem:[%s4150_s14] ss:$0 sm:$0xff] }
 0xc5d   :  { %v1567_v13 = vpop.f32.mrf.mxu3 }
 0xc5e   :  { %v1591_v41 = vld.sshfl [vmem:[#allocation1] sm:$0xff pattern:$0x75316420] }
 0xc5f   :  { %1597 = vst [vmem:[#allocation1] ss:$2 sm:$0xff] %v1538_v40  ;;  %1592 = vrot.lane.b32.xlu0 %v1591_v41, %s4156_s0  ;;  %v2953_v41 = vld [vmem:[%s4145_s9 + $0x8] ss:$0 sm:$0xff]  ;;  %s3099_s0 = smov 12  }
 0xc60   :  { %1599 = vst [vmem:[#allocation1 + $0x1] ss:$2 sm:$0xff] %v1567_v13 }
 0xc67   :  { %v1600_v44 = vld.sshfl [vmem:[#allocation1] sm:$0xff pattern:$0x75316420] }
 0xc68   :  { %1601 = vrot.lane.b32.xlu1 %v1600_v44, %s4158_s30 }
 0xcb0   :  { %v1584_v48 = vpop.permute.xlu2 %1583 }
 0xcb1   :  { %v1604_v50 = vsel %vm876_vm3, %v1575_v36, %v1584_v48  ;;  %v1698_v36 = vld [vmem:[%s4151_s15 + $0x10] sm:$0xff] }
 0xcb2   :  { %1722 = vmatpush.msra.mxu2 %v1698_v36 }
 0xcb4   :  { %1723 = vmatpush.msra.mxu2 %v1697_v30 }
 0xcb6   :  { %1724 = vmatpush.msra.mxu2 %v1696_v37 }
 0xcd1   :  { %v1593_v49 = vpop.permute.xlu0 %1592 }
 0xcd2   :  { %v1605_v51 = vsel %vm64_vm0, %v1604_v50, %v1593_v49 }
 0xcda   :  { %v1602_v53 = vpop.permute.xlu1 %1601 }
 0xcdb   :  { %v1607_v55 = vsel %vm1606_vm14, %v1605_v51, %v1602_v53  ;;  %v2856_v53 = vld [vmem:[%s4146_s10 + $0x38] sm:$0xff] }
 0xcdc   :  { %2850 = vmatmul.msk.f32.vlgmr.msrb.gmra.mxu0 %vm430_vm9, %v1607_v55  ;;  %1780 = vmatpush.msrb.mxu3 %v2856_v53  ;;  %v2855_v55 = vld [vmem:[%s4146_s10 + $0x30] sm:$0xff] }
 0xcde   :  { %1781 = vmatpush.msrb.mxu3 %v2855_v55 }
 0xd59   :  { %v1634_v57 = vpop.f32.mrf.mxu0 }
 0xd5a   :  { %v1635_v58 = vadd.f32 %v2949_v56, %v1634_v57  ;;  %v2854_v56 = vld [vmem:[%s4146_s10 + $0x28] sm:$0xff]  ;;  %v2853_v57 = vld [vmem:[%s4146_s10 + $0x20] sm:$0xff] }
 0xd5b   :  { %1782 = vmatpush.msrb.mxu3 %v2854_v56 }
 0xd5c   :  { %v1637_v61 = vadd.f32 %v1635_v58, %v3503_v46  ;;  %v1668_v46 = vld [vmem:[%s4149_s13 + $0x10] sm:$0xff] }
 0xd5d   :  { %1688 = vmatpush.msra.mxu1 %v1668_v46  ;;  %1783 = vmatpush.msrb.mxu3 %v2853_v57  ;;  %v2954_v46 = vld [vmem:[%s4145_s9 + $0xa] ss:$0 sm:$0xff] }
 0xd5e   :  { %v1640_v63 = vsel %vm430_vm9, %v1637_v61, 0.0 }
 0xd5f   :  { %1641 = vadd.xlane.f32.xlu2 %v1640_v63  ;;  %1689 = vmatpush.msra.mxu1 %v1667_v8 }
 0xd61   :  { %1690 = vmatpush.msra.mxu1 %v1666_v9 }
 0xdd2   :  { %v1642_v0 = vpop.xlane.xlu2 %1641 }
 0xdd3   :  { %v1643_v1 = vmul.f32 %v1642_v0, %v3359_v42 }
 0xdd5   :  { %v1644_v4 = vsub.f32 %v1637_v61, %v1643_v1 }
 0xdd7   :  { %v1645_v5 = vmul.f32 %v1644_v4, %v1644_v4 }
 0xdd9   :  { %v1646_v6 = vsel %vm430_vm9, %v1645_v5, 0.0 }
 0xdda   :  { %1647 = vadd.xlane.f32.xlu0 %v1646_v6 }
 0xe4d   :  { %v1648_v15 = vpop.xlane.xlu0 %1647 }
 0xe4e   :  { %v1649_v60 = vmul.f32 %v1648_v15, %v3359_v42  ;;  %v2956_v15 = vld [vmem:[%s4147_s11 + $0x1] ss:$0 sm:$0xff] }
 0xe50   :  { %v1650_v18 = vadd.f32 1e-12, %v1649_v60 }
 0xe52   :  { %3014 = vrsqrt.f32 %v1650_v18  ;;  %vm1657_vm1 = vweird.f32 %v1650_v18 }
 0xe58   :  { %v3015_v10 = vpop.eup %3014 }
 0xe59   :  { %v1652_v23 = vmul.f32 %v3015_v10, %v1650_v18  ;;  %vm1658_vm15 = vweird.f32 %v3015_v10 }
 0xe5a   :  { %vm1659_vm2 = vmor %vm1657_vm1, %vm1658_vm15 }
 0xe5b   :  { %v1653_v24 = vmul.f32 %v3015_v10, %v1652_v23 }
 0xe5d   :  { %v1654_v26 = vmul.f32 0.5, %v1653_v24 }
 0xe5f   :  { %v1655_v3 = vsub.f32 1.5, %v1654_v26 }
 0xe61   :  { %v1656_v12 = vmul.f32 %v3015_v10, %v1655_v3 }
 0xe63   :  { %v1660_v29 = vsel %vm1659_vm2, %v3015_v10, %v1656_v12 }
 0xe64   :  { %v1661_v31 = vmul.f32 %v1660_v29, %v1644_v4 }
 0xe66   :  { %v1663_v54 = vmul.f32 %v2950_v27, %v1661_v31 }
 0xe68   :  { %v1665_v34 = vadd.f32 %v2951_v32, %v1663_v54 }
 0xe6a   :  { %2851 = vmatmul.msk.f32.vlgmr.msra.gmra.mxu1 %vm430_vm9, %v1665_v34 }
 0xee7   :  { %v1692_v39 = vpop.f32.mrf.mxu1 }
 0xee8   :  { %v1693_v13 = vadd.f32 %v2952_v38, %v1692_v39 }
 0xeea   :  { %v1695_v40 = vmax.f32 %v1693_v13, 0.0 }
 0xeec   :  { %2852 = vmatmul.msk.f32.vlgmr.msra.gmra.mxu2 %vm662_vm7, %v1695_v40 }
 0xf6f   :  { %v1726_v44 = vpop.f32.mrf.mxu2 }
 0xf70   :  { %v1727_v2 = vadd.f32 %v2953_v41, %v1726_v44 }
 0xf72   :  { %v1729_v45 = vadd.f32 %v1727_v2, %v1665_v34 }
 0xf74   :  { %v1732_v21 = vsel %vm430_vm9, %v1729_v45, 0.0 }
 0xf75   :  { %1733 = vadd.xlane.f32.xlu1 %v1732_v21 }
 0xfe8   :  { %v1734_v47 = vpop.xlane.xlu1 %1733 }
 0xfe9   :  { %v1735_v48 = vmul.f32 %v1734_v47, %v3359_v42 }
 0xfeb   :  { %v1736_v49 = vsub.f32 %v1729_v45, %v1735_v48 }
 0xfed   :  { %v1737_v50 = vmul.f32 %v1736_v49, %v1736_v49 }
 0xfef   :  { %v1738_v51 = vsel %vm430_vm9, %v1737_v50, 0.0 }
 0xff0   :  { %1739 = vadd.xlane.f32.xlu2 %v1738_v51 }
0x1063   :  { %v1740_v58 = vpop.xlane.xlu2 %1739 }
0x1064   :  { %v1741_v61 = vmul.f32 %v1740_v58, %v3359_v42 }
0x1066   :  { %v1742_v63 = vadd.f32 1e-12, %v1741_v61 }
0x1068   :  { %3016 = vrsqrt.f32 %v1742_v63  ;;  %vm1749_vm8 = vweird.f32 %v1742_v63 }
0x106e   :  { %v3017_v0 = vpop.eup %3016 }
0x106f   :  { %v1744_v1 = vmul.f32 %v3017_v0, %v1742_v63  ;;  %vm1750_vm6 = vweird.f32 %v3017_v0 }
0x1070   :  { %vm1751_vm10 = vmor %vm1749_vm8, %vm1750_vm6 }
0x1071   :  { %v1745_v4 = vmul.f32 %v3017_v0, %v1744_v1 }
0x1073   :  { %v1746_v5 = vmul.f32 0.5, %v1745_v4 }
0x1075   :  { %v1747_v6 = vsub.f32 1.5, %v1746_v5 }
0x1077   :  { %v1748_v59 = vmul.f32 %v3017_v0, %v1747_v6 }
0x1079   :  { %v1752_v8 = vsel %vm1751_vm10, %v3017_v0, %v1748_v59 }
0x107a   :  { %v1753_v9 = vmul.f32 %v1752_v8, %v1736_v49  ;;  %v3054_v8 = vld [vmem:[%s4144_s8] ss:$0 sm:$0xff] }
0x107c   :  { %v1755_v14 = vmul.f32 %v2954_v46, %v1753_v9 }
0x107e   :  { %v3822_v52 = vadd.f32 %v2955_v11, %v1755_v14 }
0x1080   :  { %2857 = vmatmul.msk.f32.vlgmr.msrb.gmra.mxu3 %vm430_vm9, %v3822_v52 }
0x1103   :  { %v1785_v60 = vpop.f32.mrf.mxu3 }
0x1104   :  { %v3829_v16 = vadd.f32 %v2956_v15, %v1785_v60  ;;  %v3055_v15 = vld [vmem:[%s4144_s8 + $0x1] ss:$0 sm:$0xff]  ;;  %s4166_s8 = smov 8  }
0x1106   :  { %1790 = vst [vmem:[#allocation1] ss:$2 sm:$0xff] %v3829_v16  ;;  %v3833_v18 = vrot.slane %v3829_v16, 4 }
0x110d   :  { %v1791_v20 = vld.sshfl [vmem:[#allocation1] sm:$0xff pattern:$0x75316420] }
0x110e   :  { %1792 = vrot.lane.b32.xlu0 %v1791_v20, %s3083_s4  ;;  %1818 = vst [vmem:[#allocation1] ss:$2 sm:$0xff] %v3833_v18 }
0x1115   :  { %v1819_v10 = vld.sshfl [vmem:[#allocation1] sm:$0xff pattern:$0x75316420] }
0x1116   :  { %1820 = vrot.lane.b32.xlu1 %v1819_v10, %s3083_s4  ;;  %1898 = vst [vmem:[#allocation1] ss:$2 sm:$0xff] %v3829_v16 }
0x111d   :  { %v3839_v23 = vld.sshfl [vmem:[#allocation1] sm:$0xff pattern:$0x75316420] }
0x111e   :  { %1927 = vst [vmem:[#allocation1] ss:$2 sm:$0xff] %v3833_v18 }
0x1125   :  { %v3842_v24 = vld.sshfl [vmem:[#allocation1] sm:$0xff pattern:$0x75316420] }
0x1126   :  { %1956 = vst [vmem:[#allocation1] ss:$2 sm:$0xff] %v3829_v16 }
0x112d   :  { %v1957_v26 = vld.sshfl [vmem:[#allocation1] sm:$0xff pattern:$0x75316420] }
0x112e   :  { %1958 = vrot.lane.b32.xlu1 %v1957_v26, %s3084_s5  ;;  %1960 = vst [vmem:[#allocation1] ss:$2 sm:$0xff] %v3829_v16 }
0x1135   :  { %v1961_v3 = vld.sshfl [vmem:[#allocation1] sm:$0xff pattern:$0x75316420] }
0x1136   :  { %1962 = vrot.lane.b32.xlu2 %v1961_v3, %s3085_s6  ;;  %1988 = vst [vmem:[#allocation1] ss:$2 sm:$0xff] %v3833_v18 }
0x113d   :  { %v1989_v12 = vld.sshfl [vmem:[#allocation1] sm:$0xff pattern:$0x75316420] }
0x113e   :  { %1990 = vrot.lane.b32.xlu0 %v1989_v12, %s3084_s5  ;;  %1992 = vst [vmem:[#allocation1] ss:$2 sm:$0xff] %v3833_v18 }
0x1145   :  { %v1993_v27 = vld.sshfl [vmem:[#allocation1] sm:$0xff pattern:$0x75316420] }
0x1146   :  { %1994 = vrot.lane.b32.xlu0 %v1993_v27, %s3085_s6  ;;  %2072 = vst [vmem:[#allocation1] ss:$2 sm:$0xff] %v3829_v16 }
0x114d   :  { %v3853_v29 = vld.sshfl [vmem:[#allocation1] sm:$0xff pattern:$0x75316420] }
0x114e   :  { %2101 = vst [vmem:[#allocation1] ss:$2 sm:$0xff] %v3833_v18 }
0x1155   :  { %v3856_v31 = vld.sshfl [vmem:[#allocation1] sm:$0xff pattern:$0x75316420] }
0x1156   :  { %2130 = vst [vmem:[#allocation1] ss:$2 sm:$0xff] %v3829_v16 }
0x115d   :  { %v2131_v32 = vld.sshfl [vmem:[#allocation1] sm:$0xff pattern:$0x75316420] }
0x115e   :  { %2132 = vrot.lane.b32.xlu0 %v2131_v32, %s3086_s26  ;;  %2134 = vst [vmem:[#allocation1] ss:$2 sm:$0xff] %v3829_v16 }
0x1165   :  { %v2135_v54 = vld.sshfl [vmem:[#allocation1] sm:$0xff pattern:$0x75316420] }
0x1166   :  { %2136 = vrot.lane.b32.xlu2 %v2135_v54, %s3087_s20  ;;  %2162 = vst [vmem:[#allocation1] ss:$2 sm:$0xff] %v3833_v18 }
0x116d   :  { %v2163_v34 = vld.sshfl [vmem:[#allocation1] sm:$0xff pattern:$0x75316420] }
0x116e   :  { %2164 = vrot.lane.b32.xlu2 %v2163_v34, %s3086_s26  ;;  %2166 = vst [vmem:[#allocation1] ss:$2 sm:$0xff] %v3833_v18  ;;  %s4167_s26 = smov 16  }
0x1175   :  { %v2167_v36 = vld.sshfl [vmem:[#allocation1] sm:$0xff pattern:$0x75316420] }
0x1176   :  { %2168 = vrot.lane.b32.xlu1 %v2167_v36, %s3087_s20  ;;  %2246 = vst [vmem:[#allocation1] ss:$2 sm:$0xff] %v3829_v16  ;;  %s4168_s20 = smov 24  }
0x117d   :  { %v3867_v30 = vld.sshfl [vmem:[#allocation1] sm:$0xff pattern:$0x75316420] }
0x117e   :  { %2275 = vst [vmem:[#allocation1] ss:$2 sm:$0xff] %v3833_v18 }
0x1180   :  { %v1793_v37 = vpop.permute.xlu0 %1792 }
0x1181   :  { %2858 = vmatpush.xpose.msk.msra.mxu0 %vm876_vm3, %v1793_v37 }
0x1184   :  { %2859 = vmatmul.msk.f32.vlgmr.msra.gmra.mxu0 %vm876_vm3, %v3829_v16 }
0x1185   :  { %v3873_v38 = vld.sshfl [vmem:[#allocation1] sm:$0xff pattern:$0x75316420] }
0x1186   :  { %2304 = vst [vmem:[#allocation1] ss:$2 sm:$0xff] %v3829_v16 }
0x1188   :  { %v1821_v39 = vpop.permute.xlu1 %1820 }
0x1189   :  { %2860 = vmatpush.xpose.msk.msrb.mxu1 %vm876_vm3, %v1821_v39 }
0x118c   :  { %2861 = vmatmul.msk.f32.vlgmr.msrb.gmra.mxu1 %vm876_vm3, %v3833_v18 }
0x118d   :  { %v2305_v13 = vld.sshfl [vmem:[#allocation1] sm:$0xff pattern:$0x75316420] }
0x118e   :  { %2306 = vrot.lane.b32.xlu2 %v2305_v13, %s3088_s21  ;;  %2308 = vst [vmem:[#allocation1] ss:$2 sm:$0xff] %v3829_v16 }
0x1190   :  { %v1963_v40 = vpop.permute.xlu2 %1962 }
0x1191   :  { %2866 = vmatpush.xpose.msk.msra.mxu1 %vm876_vm3, %v1963_v40 }
0x1195   :  { %v2309_v41 = vld.sshfl [vmem:[#allocation1] sm:$0xff pattern:$0x75316420] }
0x1196   :  { %2310 = vrot.lane.b32.xlu1 %v2309_v41, %s3089_s22  ;;  %2336 = vst [vmem:[#allocation1] ss:$2 sm:$0xff] %v3833_v18 }
0x119d   :  { %v2337_v44 = vld.sshfl [vmem:[#allocation1] sm:$0xff pattern:$0x75316420] }
0x119e   :  { %2338 = vrot.lane.b32.xlu1 %v2337_v44, %s3088_s21  ;;  %2340 = vst [vmem:[#allocation1] ss:$2 sm:$0xff] %v3833_v18 }
0x11a0   :  { %v1959_v2 = vpop.permute.xlu1 %1958 }
0x11a1   :  { %2867 = vmatmul.msk.f32.vlgmr.msra.gmra.mxu1 %vm876_vm3, %v1959_v2 }
0x11a5   :  { %v2341_v45 = vld.sshfl [vmem:[#allocation1] sm:$0xff pattern:$0x75316420] }
0x11a6   :  { %2342 = vrot.lane.b32.xlu0 %v2341_v45, %s3089_s22  ;;  %2420 = vst [vmem:[#allocation1] ss:$2 sm:$0xff] %v3829_v16  ;;  %s3101_s22 = smov [#allocation2]  }
0x11ad   :  { %v3889_v21 = vld.sshfl [vmem:[#allocation1] sm:$0xff pattern:$0x75316420] }
0x11ae   :  { %2449 = vst [vmem:[#allocation1] ss:$2 sm:$0xff] %v3833_v18 }
0x11b0   :  { %v1991_v47 = vpop.permute.xlu0 %1990 }
0x11b8   :  { %v1995_v48 = vpop.permute.xlu0 %1994 }
0x11b9   :  { %2868 = vmatpush.xpose.msk.msrb.mxu2 %vm876_vm3, %v1995_v48 }
0x11bc   :  { %2869 = vmatmul.msk.f32.vlgmr.msrb.gmra.mxu2 %vm876_vm3, %v1991_v47 }
0x11c0   :  { %v2137_v49 = vpop.permute.xlu2 %2136 }
0x11c1   :  { %2874 = vmatpush.xpose.msk.msrb.mxu1 %vm876_vm3, %v2137_v49 }
0x11c8   :  { %v2165_v53 = vpop.permute.xlu2 %2164 }
0x11d0   :  { %v2133_v50 = vpop.permute.xlu0 %2132 }
0x11d1   :  { %2875 = vmatmul.msk.f32.vlgmr.msrb.gmra.mxu1 %vm876_vm3, %v2133_v50 }
0x11e8   :  { %v2169_v51 = vpop.permute.xlu1 %2168  ;;  %v2307_v1 = vpop.permute.xlu2 %2306 }
0x11e9   :  { %2876 = vmatpush.xpose.msk.msra.mxu2 %vm876_vm3, %v2169_v51 }
0x11ec   :  { %2877 = vmatmul.msk.f32.vlgmr.msra.gmra.mxu2 %vm876_vm3, %v2165_v53 }
0x1201   :  { %v1815_v55 = vpop.f32.mrf.mxu0 }
0x1202   :  { %v1846_v56 = vmul.f32 0.35355338, %v1815_v55 }
0x1204   :  { %v1848_v57 = vadd.f32 %v3582_v17, %v1846_v56 }
0x1206   :  { %v1850_v58 = vsel %vm939_vm4, %v1848_v57, -inf }
0x1207   :  { %1851 = vmax.xlane.f32.xlu0 %v1850_v58 }
0x1208   :  { %v2311_v61 = vpop.permute.xlu1 %2310 }
0x1209   :  { %v1843_v63 = vpop.f32.mrf.mxu1  ;;  %2882 = vmatpush.xpose.msk.msra.mxu1 %vm876_vm3, %v2311_v61 }
0x120a   :  { %v1847_v0 = vmul.f32 0.35355338, %v1843_v63 }
0x120c   :  { %2883 = vmatmul.msk.f32.vlgmr.msra.gmra.mxu1 %vm876_vm3, %v2307_v1  ;;  %v1849_v4 = vadd.f32 %v3592_v25, %v1847_v0 }
0x120e   :  { %v1853_v5 = vsel %vm939_vm4, %v1849_v4, -inf }
0x120f   :  { %1854 = vmax.xlane.f32.xlu2 %v1853_v5 }
0x1210   :  { %v2339_v17 = vpop.permute.xlu1 %2338 }
0x1218   :  { %v2343_v6 = vpop.permute.xlu0 %2342 }
0x1219   :  { %2884 = vmatpush.xpose.msk.msrb.mxu2 %vm876_vm3, %v2343_v6 }
0x121c   :  { %2885 = vmatmul.msk.f32.vlgmr.msrb.gmra.mxu2 %vm876_vm3, %v2339_v17 }
0x121e   :  { %v1985_v59 = vpop.f32.mrf.mxu1 }
0x121f   :  { %v2020_v46 = vmul.f32 0.35355338, %v1985_v59 }
0x1221   :  { %v2022_v9 = vadd.f32 %v3054_v8, %v2020_v46 }
0x1223   :  { %v2024_v11 = vsel %vm939_vm4, %v2022_v9, -inf }
0x1224   :  { %2025 = vmax.xlane.f32.xlu1 %v2024_v11 }
0x123f   :  { %v2017_v25 = vpop.f32.mrf.mxu2 }
0x1240   :  { %v2021_v14 = vmul.f32 0.35355338, %v2017_v25 }
0x1242   :  { %v2023_v60 = vadd.f32 %v3055_v15, %v2021_v14 }
0x1244   :  { %v2027_v16 = vsel %vm939_vm4, %v2023_v60, -inf }
0x1245   :  { %2028 = vmax.xlane.f32.xlu0 %v2027_v16 }
0x124e   :  { %v2159_v18 = vpop.f32.mrf.mxu1 }
0x124f   :  { %v2194_v20 = vmul.f32 0.35355338, %v2159_v18 }
0x1251   :  { %v2196_v10 = vadd.f32 %v3054_v8, %v2194_v20 }
0x1253   :  { %v2198_v26 = vsel %vm939_vm4, %v2196_v10, -inf }
0x1254   :  { %2199 = vmax.xlane.f32.xlu2 %v2198_v26 }
0x126f   :  { %v2191_v3 = vpop.f32.mrf.mxu2 }
0x1270   :  { %v2195_v12 = vmul.f32 0.35355338, %v2191_v3 }
0x1272   :  { %v2197_v27 = vadd.f32 %v3055_v15, %v2195_v12 }
0x1274   :  { %v2201_v32 = vsel %vm939_vm4, %v2197_v27, -inf }
0x1275   :  { %2202 = vmax.xlane.f32.xlu1 %v2201_v32 }
0x127a   :  { %v1852_v54 = vpop.xlane.xlu0 %1851 }
0x127b   :  { %v1856_v34 = vsub.f32 %v1848_v57, %v1852_v54 }
0x127d   :  { %v1858_v36 = vmul.f32 1.442695, %v1856_v34 }
0x127f   :  { %3018 = vpow2.f32 %v1858_v36 }
0x1282   :  { %v1855_v37 = vpop.xlane.xlu2 %1854 }
0x1283   :  { %v1857_v13 = vsub.f32 %v1849_v4, %v1855_v37 }
0x1285   :  { %v3916_v39 = vpop.eup %3018  ;;  %v1860_v41 = vmul.f32 1.442695, %v1857_v13 }
0x1286   :  { %v1862_v40 = vsel %vm939_vm4, %v3916_v39, 0.0 }
0x1287   :  { %1863 = vadd.xlane.f32.xlu1 %v1862_v40  ;;  %3020 = vpow2.f32 %v1860_v41 }
0x1289   :  { %v2333_v44 = vpop.f32.mrf.mxu1 }
0x128a   :  { %v2368_v2 = vmul.f32 0.35355338, %v2333_v44 }
0x128c   :  { %v2370_v45 = vadd.f32 %v3054_v8, %v2368_v2 }
0x128d   :  { %v3921_v48 = vpop.eup %3020 }
0x128e   :  { %v2372_v47 = vsel %vm939_vm4, %v2370_v45, -inf  ;;  %v1865_v49 = vsel %vm939_vm4, %v3921_v48, 0.0 }
0x128f   :  { %2373 = vmax.xlane.f32.xlu0 %v2372_v47 }
0x1297   :  { %1866 = vadd.xlane.f32.xlu0 %v1865_v49  ;;  %v2026_v50 = vpop.xlane.xlu1 %2025 }
0x1298   :  { %v2030_v51 = vsub.f32 %v2022_v9, %v2026_v50 }
0x129a   :  { %v2032_v53 = vmul.f32 1.442695, %v2030_v51 }
0x129c   :  { %3022 = vpow2.f32 %v2032_v53 }
0x129f   :  { %v2365_v55 = vpop.f32.mrf.mxu2 }
0x12a0   :  { %v2369_v56 = vmul.f32 0.35355338, %v2365_v55  ;;  %1929 = vrot.lane.b32.xlu1 %v3842_v24, %s3090_s23 }
0x12a2   :  { %v3927_v57 = vadd.f32 %v3055_v15, %v2369_v56  ;;  %v3931_v61 = vpop.eup %3022 }
0x12a3   :  { %v2036_v63 = vsel %vm939_vm4, %v3931_v61, 0.0 }
0x12a4   :  { %v2375_v58 = vsel %vm939_vm4, %v3927_v57, -inf }
0x12a5   :  { %2376 = vmax.xlane.f32.xlu2 %v2375_v58 }
0x12ab   :  { %2074 = vrot.lane.b32.xlu0 %v3853_v29, %s3091_s27 }
0x12ad   :  { %2037 = vadd.xlane.f32.xlu2 %v2036_v63 }
0x12b8   :  { %v2029_v0 = vpop.xlane.xlu0 %2028 }
0x12b9   :  { %v2031_v1 = vsub.f32 %v2023_v60, %v2029_v0 }
0x12bb   :  { %v2034_v4 = vmul.f32 1.442695, %v2031_v1 }
0x12bd   :  { %3024 = vpow2.f32 %v2034_v4 }
0x12c3   :  { %v3939_v24 = vpop.eup %3024 }
0x12c4   :  { %v2039_v17 = vsel %vm939_vm4, %v3939_v24, 0.0 }
0x12c5   :  { %1900 = vrot.lane.b32.xlu2 %v3839_v23, %s3090_s23 }
0x12c7   :  { %v2200_v5 = vpop.xlane.xlu2 %2199 }
0x12c8   :  { %v2204_v6 = vsub.f32 %v2196_v10, %v2200_v5 }
0x12ca   :  { %v2206_v59 = vmul.f32 1.442695, %v2204_v6  ;;  %2040 = vadd.xlane.f32.xlu1 %v2039_v17 }
0x12cc   :  { %3026 = vpow2.f32 %v2206_v59 }
0x12d2   :  { %v3943_v29 = vpop.eup %3026 }
0x12d3   :  { %v2210_v46 = vsel %vm939_vm4, %v3943_v29, 0.0 }
0x12d5   :  { %2211 = vadd.xlane.f32.xlu0 %v2210_v46 }
0x12e8   :  { %v2203_v8 = vpop.xlane.xlu1 %2202 }
0x12e9   :  { %v2205_v9 = vsub.f32 %v2197_v27, %v2203_v8 }
0x12eb   :  { %v2208_v11 = vmul.f32 1.442695, %v2205_v9 }
0x12ed   :  { %3028 = vpow2.f32 %v2208_v11 }
0x12f3   :  { %v3947_v23 = vpop.eup %3028 }
0x12f4   :  { %v2213_v25 = vsel %vm939_vm4, %v3947_v23, 0.0 }
0x12f5   :  { %2214 = vadd.xlane.f32.xlu1 %v2213_v25  ;;  %v2450_v25 = vld.sshfl [vmem:[#allocation1] sm:$0xff pattern:$0x75316420] }
0x12fa   :  { %v1864_v16 = vpop.xlane.xlu1 %1863 }
0x12fb   :  { %vm1873_vm6 = vweird.f32 %v1864_v16  ;;  %v1877_v53 = vand.u32 2147483647, %v1864_v16 }
0x12fd   :  { %vm1878_vm10 = vcmp.eq.f32.partialorder %v1877_v53, 8.507059e+37 }
0x1302   :  { %v2374_v14 = vpop.xlane.xlu0 %2373 }
0x1303   :  { %v2378_v15 = vsub.f32 %v2370_v45, %v2374_v14 }
0x1305   :  { %v2380_v60 = vmul.f32 1.442695, %v2378_v15 }
0x1307   :  { %3030 = vpow2.f32 %v2380_v60 }
0x1308   :  { %3032 = vrcp.f32 %v1864_v16 }
0x130a   :  { %v1867_v18 = vpop.xlane.xlu0 %1866 }
0x130b   :  { %3034 = vrcp.f32 %v1867_v18  ;;  %v1894_v34 = vand.u32 2147483648, %v1867_v18  ;;  %v1892_v13 = vand.u32 2147483647, %v1867_v18  ;;  %vm1888_vm13 = vweird.f32 %v1867_v18 }
0x130d   :  { %v3951_v20 = vpop.eup %3030  ;;  %v1895_v41 = vor.u32 1.1754944e-38, %v1894_v34  ;;  %vm1893_vm1 = vcmp.eq.f32.partialorder %v1892_v13, 8.507059e+37 }
0x130e   :  { %2248 = vrot.lane.b32.xlu1 %v3867_v30, %s3092_s19  ;;  %v2384_v10 = vsel %vm939_vm4, %v3951_v20, 0.0  ;;  %v3033_v26 = vpop.eup %3032 }
0x130f   :  { %2385 = vadd.xlane.f32.xlu0 %v2384_v10  ;;  %v1869_v12 = vmul.f32 %v3033_v26, %v1864_v16  ;;  %vm1874_vm2 = vweird.f32 %v3033_v26 }
0x1310   :  { %vm1875_vm8 = vmor %vm1873_vm6, %vm1874_vm2 }
0x1311   :  { %v3035_v3 = vpop.eup %3034  ;;  %v1870_v36 = vsub.f32 1.0, %v1869_v12 }
0x1312   :  { %v1884_v27 = vmul.f32 %v3035_v3, %v1867_v18  ;;  %v1930_v32 = vpop.permute.xlu1 %1929  ;;  %vm1889_vm11 = vweird.f32 %v3035_v3 }
0x1313   :  { %2864 = vmatpush.msk.msrb.mxu0 %vm996_vm5, %v1930_v32  ;;  %vm1890_vm15 = vmor %vm1888_vm13, %vm1889_vm11  ;;  %v1871_v2 = vmul.f32 %v3033_v26, %v1870_v36 }
0x1314   :  { %v1885_v54 = vsub.f32 1.0, %v1884_v27 }
0x1315   :  { %v1872_v51 = vadd.f32 %v3033_v26, %v1871_v2 }
0x1316   :  { %v1886_v37 = vmul.f32 %v3035_v3, %v1885_v54  ;;  %2422 = vrot.lane.b32.xlu1 %v3889_v21, %s3093_s28  ;;  %v1879_v21 = vand.u32 2147483648, %v1864_v16 }
0x1317   :  { %v1876_v56 = vsel %vm1875_vm8, %v3033_v26, %v1872_v51 }
0x1318   :  { %v1887_v30 = vadd.f32 %v3035_v3, %v1886_v37  ;;  %v2377_v40 = vpop.xlane.xlu2 %2376  ;;  %v1880_v58 = vor.u32 1.1754944e-38, %v1879_v21 }
0x1319   :  { %v2379_v44 = vsub.f32 %v3927_v57, %v2377_v40 }
0x131a   :  { %v1891_v45 = vsel %vm1890_vm15, %v3035_v3, %v1887_v30  ;;  %v1881_v63 = vsel %vm1878_vm10, %v1880_v58, %v1876_v56 }
0x131b   :  { %v1896_v47 = vsel %vm1893_vm1, %v1895_v41, %v1891_v45  ;;  %v2382_v49 = vmul.f32 1.442695, %v2379_v44  ;;  %v3973_v5 = vmul.f32 %v3916_v39, %v1881_v63 }
0x131c   :  { %v3962_v50 = vmul.f32 %v3921_v48, %v1896_v47 }
0x131d   :  { %3036 = vpow2.f32 %v2382_v49  ;;  %v2075_v6 = vpop.permute.xlu0 %2074 }
0x131e   :  { %2865 = vmatmul.msk.f32.vlgmr.msrb.gmra.mxu0 %vm992_vm12, %v3962_v50 }
0x1320   :  { %v2038_v55 = vpop.xlane.xlu2 %2037 }
0x1321   :  { %3038 = vrcp.f32 %v2038_v55  ;;  %v2051_v46 = vand.u32 2147483647, %v2038_v55  ;;  %vm2047_vm11 = vweird.f32 %v2038_v55 }
0x1323   :  { %v3966_v57 = vpop.eup %3036  ;;  %2103 = vrot.lane.b32.xlu0 %v3856_v31, %s3091_s27  ;;  %v2053_v31 = vand.u32 2147483648, %v2038_v55  ;;  %vm2052_vm15 = vcmp.eq.f32.partialorder %v2051_v46, 8.507059e+37 }
0x1324   :  { %v2387_v48 = vsel %vm939_vm4, %v3966_v57, 0.0 }
0x1325   :  { %2388 = vadd.xlane.f32.xlu2 %v2387_v48  ;;  %v2054_v39 = vor.u32 1.1754944e-38, %v2053_v31 }
0x1327   :  { %v3039_v0 = vpop.eup %3038 }
0x1328   :  { %v2043_v1 = vmul.f32 %v3039_v0, %v2038_v55  ;;  %v1901_v4 = vpop.permute.xlu2 %1900  ;;  %vm2048_vm4 = vweird.f32 %v3039_v0 }
0x1329   :  { %2862 = vmatpush.msk.msra.mxu3 %vm996_vm5, %v1901_v4  ;;  %vm2049_vm13 = vmor %vm2047_vm11, %vm2048_vm4 }
0x132a   :  { %v2044_v17 = vsub.f32 1.0, %v2043_v1  ;;  %2863 = vmatmul.msk.f32.vlgmr.msra.gmra.mxu3 %vm992_vm12, %v3973_v5 }
0x132b   :  { %2870 = vmatpush.msk.msrb.mxu3 %vm996_vm5, %v2075_v6  ;;  %2277 = vrot.lane.b32.xlu0 %v3873_v38, %s3092_s19  ;;  %s2741_s19 = sshll.u32 %s4152_s16, 4  ;;  %s2742_s19 = int_to_ptr.hbm [resolvable:$true] %s2741_s19 }
0x132c   :  { %v2045_v59 = vmul.f32 %v3039_v0, %v2044_v17 }
0x132e   :  { %v2046_v8 = vadd.f32 %v3039_v0, %v2045_v59 }
0x1330   :  { %v2050_v9 = vsel %vm2049_vm13, %v3039_v0, %v2046_v8 }
0x1331   :  { %v2055_v11 = vsel %vm2052_vm15, %v2054_v39, %v2050_v9 }
0x1332   :  { %v3982_v14 = vmul.f32 %v3931_v61, %v2055_v11 }
0x1333   :  { %2451 = vrot.lane.b32.xlu0 %v2450_v25, %s3093_s28 }
0x1334   :  { %2871 = vmatmul.msk.f32.vlgmr.msrb.gmra.mxu3 %vm992_vm12, %v3982_v14 }
0x133d   :  { %v2041_v18 = vpop.xlane.xlu1 %2040 }
0x133e   :  { %v2068_v21 = vand.u32 2147483648, %v2041_v18  ;;  %vm2062_vm4 = vweird.f32 %v2041_v18  ;;  %v2066_v55 = vand.u32 2147483647, %v2041_v18 }
0x1340   :  { %v2069_v1 = vor.u32 1.1754944e-38, %v2068_v21 }
0x1348   :  { %v2212_v38 = vpop.xlane.xlu0 %2211 }
0x1349   :  { %3040 = vrcp.f32 %v2212_v38  ;;  %v2227_v3 = vand.u32 2147483648, %v2212_v38  ;;  %vm2221_vm2 = vweird.f32 %v2212_v38  ;;  %v2225_v12 = vand.u32 2147483647, %v2212_v38 }
0x134a   :  { %3042 = vrcp.f32 %v2041_v18 }
0x134b   :  { %v2228_v32 = vor.u32 1.1754944e-38, %v2227_v3  ;;  %vm2226_vm8 = vcmp.eq.f32.partialorder %v2225_v12, 8.507059e+37 }
0x134f   :  { %v3041_v15 = vpop.eup %3040 }
0x1350   :  { %v2217_v60 = vmul.f32 %v3041_v15, %v2212_v38  ;;  %vm2222_vm1 = vweird.f32 %v3041_v15  ;;  %v3043_v54 = vpop.eup %3042 }
0x1351   :  { %vm2223_vm6 = vmor %vm2221_vm2, %vm2222_vm1  ;;  %v2058_v36 = vmul.f32 %v3043_v54, %v2041_v18  ;;  %vm2063_vm10 = vweird.f32 %v3043_v54  ;;  %vm2067_vm1 = vcmp.eq.f32.partialorder %v2066_v55, 8.507059e+37 }
0x1352   :  { %v2218_v16 = vsub.f32 1.0, %v2217_v60  ;;  %vm2064_vm11 = vmor %vm2062_vm4, %vm2063_vm10 }
0x1353   :  { %v2059_v40 = vsub.f32 1.0, %v2058_v36 }
0x1354   :  { %v2219_v10 = vmul.f32 %v3041_v15, %v2218_v16 }
0x1355   :  { %v2060_v44 = vmul.f32 %v3043_v54, %v2059_v40 }
0x1356   :  { %v2220_v26 = vadd.f32 %v3041_v15, %v2219_v10 }
0x1357   :  { %v2061_v51 = vadd.f32 %v3043_v54, %v2060_v44 }
0x1358   :  { %v2224_v27 = vsel %vm2223_vm6, %v3041_v15, %v2220_v26 }
0x1359   :  { %v2229_v34 = vsel %vm2226_vm8, %v2228_v32, %v2224_v27  ;;  %v2065_v63 = vsel %vm2064_vm11, %v3043_v54, %v2061_v51 }
0x135a   :  { %v3988_v13 = vmul.f32 %v3943_v29, %v2229_v34  ;;  %v2070_v17 = vsel %vm2067_vm1, %v2069_v1, %v2065_v63 }
0x135b   :  { %v3998_v25 = vmul.f32 %v3939_v24, %v2070_v17 }
0x1368   :  { %v2215_v61 = vpop.xlane.xlu1 %2214 }
0x1369   :  { %3044 = vrcp.f32 %v2215_v61  ;;  %v2242_v8 = vand.u32 2147483648, %v2215_v61  ;;  %vm2236_vm10 = vweird.f32 %v2215_v61  ;;  %v2240_v9 = vand.u32 2147483647, %v2215_v61 }
0x136b   :  { %v2243_v15 = vor.u32 1.1754944e-38, %v2242_v8  ;;  %vm2241_vm11 = vcmp.eq.f32.partialorder %v2240_v9, 8.507059e+37  ;;  %v2898_v8 = vld [vmem:[%s4149_s13 + $0x38] sm:$0xff]  ;;  %v2896_v9 = vld [vmem:[%s4149_s13 + $0x28] sm:$0xff] }
0x136c   :  { %2596 = vmatpush.msra.mxu2 %v2898_v8  ;;  %v2962_v8 = vld [vmem:[%s4145_s9 + $0xb] ss:$0 sm:$0xff] }
0x136f   :  { %v3045_v41 = vpop.eup %3044 }
0x1370   :  { %v2232_v2 = vmul.f32 %v3045_v41, %v2215_v61  ;;  %vm2237_vm8 = vweird.f32 %v3045_v41 }
0x1371   :  { %vm2238_vm4 = vmor %vm2236_vm10, %vm2237_vm8  ;;  %vm2728_vm10 = vcmask 162816  }
0x1372   :  { %v2233_v29 = vsub.f32 1.0, %v2232_v2 }
0x1374   :  { %v2234_v0 = vmul.f32 %v3045_v41, %v2233_v29 }
0x1376   :  { %v2235_v59 = vadd.f32 %v3045_v41, %v2234_v0 }
0x1378   :  { %v2239_v38 = vsel %vm2238_vm4, %v3045_v41, %v2235_v59  ;;  %vm2731_vm4 = vcmask 228352  }
0x1380   :  { %v2249_v37 = vpop.permute.xlu1 %2248 }
0x1381   :  { %2878 = vmatpush.msk.msra.mxu3 %vm996_vm5, %v2249_v37 }
0x1382   :  { %2879 = vmatmul.msk.f32.vlgmr.msra.gmra.mxu3 %vm992_vm12, %v3988_v13  ;;  %v2386_v30 = vpop.xlane.xlu0 %2385 }
0x1383   :  { %3046 = vrcp.f32 %v2386_v30  ;;  %v2401_v56 = vand.u32 2147483648, %v2386_v30  ;;  %v2399_v48 = vand.u32 2147483647, %v2386_v30  ;;  %vm2395_vm15 = vweird.f32 %v2386_v30 }
0x1385   :  { %v2402_v6 = vor.u32 1.1754944e-38, %v2401_v56  ;;  %vm2400_vm6 = vcmp.eq.f32.partialorder %v2399_v48, 8.507059e+37  ;;  %v2957_v48 = vld [vmem:[%s4145_s9 + $0x3] ss:$0 sm:$0xff] }
0x1388   :  { %v2423_v45 = vpop.permute.xlu1 %2422 }
0x1389   :  { %v3047_v47 = vpop.eup %3046  ;;  %2886 = vmatpush.msk.msrb.mxu3 %vm996_vm5, %v2423_v45 }
0x138a   :  { %v2391_v49 = vmul.f32 %v3047_v47, %v2386_v30  ;;  %vm2396_vm13 = vweird.f32 %v3047_v47 }
0x138b   :  { %vm2397_vm2 = vmor %vm2395_vm15, %vm2396_vm13 }
0x138c   :  { %v2392_v53 = vsub.f32 1.0, %v2391_v49 }
0x138e   :  { %v2393_v58 = vmul.f32 %v3047_v47, %v2392_v53 }
0x1390   :  { %v2394_v4 = vadd.f32 %v3047_v47, %v2393_v58 }
0x1392   :  { %v2398_v31 = vsel %vm2397_vm2, %v3047_v47, %v2394_v4 }
0x1393   :  { %v2403_v46 = vsel %vm2400_vm6, %v2402_v6, %v2398_v31 }
0x1394   :  { %v3995_v39 = vmul.f32 %v3951_v20, %v2403_v46  ;;  %v2244_v20 = vsel %vm2241_vm11, %v2243_v15, %v2239_v38  ;;  %v2906_v38 = vld [vmem:[%s4151_s15 + $0x70] sm:$0xff]  ;;  %v2905_v15 = vld [vmem:[%s4151_s15 + $0x68] sm:$0xff] }
0x1395   :  { %v2104_v11 = vpop.permute.xlu0 %2103  ;;  %v2245_v24 = vmul.f32 %v3947_v23, %v2244_v20 }
0x1396   :  { %2872 = vmatpush.msk.msra.mxu0 %vm996_vm5, %v2104_v11  ;;  %2887 = vmatmul.msk.f32.vlgmr.msrb.gmra.mxu3 %vm992_vm12, %v3995_v39  ;;  %v2895_v11 = vld [vmem:[%s4149_s13 + $0x20] sm:$0xff] }
0x1397   :  { %2873 = vmatmul.msk.f32.vlgmr.msra.gmra.mxu0 %vm992_vm12, %v3998_v25 }
0x1398   :  { %v2389_v60 = vpop.xlane.xlu2 %2388 }
0x1399   :  { %3048 = vrcp.f32 %v2389_v60  ;;  %v2416_v12 = vand.u32 2147483648, %v2389_v60  ;;  %v2414_v27 = vand.u32 2147483647, %v2389_v60  ;;  %vm2410_vm15 = vweird.f32 %v2389_v60 }
0x139b   :  { %v1953_v16 = vpop.f32.mrf.mxu0  ;;  %v2417_v34 = vor.u32 1.1754944e-38, %v2416_v12  ;;  %vm2415_vm2 = vcmp.eq.f32.partialorder %v2414_v27, 8.507059e+37 }
0x139c   :  { %2482 = vst [vmem:[#allocation1 + $0x1] ss:$2 sm:$0xff] %v1953_v16  ;;  %v2904_v16 = vld [vmem:[%s4151_s15 + $0x60] sm:$0xff] }
0x139d   :  { %v2278_v18 = vpop.permute.xlu0 %2277 }
0x139e   :  { %2880 = vmatpush.msk.msrb.mxu0 %vm996_vm5, %v2278_v18 }
0x139f   :  { %v3049_v10 = vpop.eup %3048  ;;  %2881 = vmatmul.msk.f32.vlgmr.msrb.gmra.mxu0 %vm992_vm12, %v2245_v24 }
0x13a0   :  { %v2406_v26 = vmul.f32 %v3049_v10, %v2389_v60  ;;  %vm2411_vm13 = vweird.f32 %v3049_v10 }
0x13a1   :  { %vm2412_vm1 = vmor %vm2410_vm15, %vm2411_vm13 }
0x13a2   :  { %v2407_v3 = vsub.f32 1.0, %v2406_v26 }
0x13a4   :  { %v2408_v61 = vmul.f32 %v3049_v10, %v2407_v3 }
0x13a5   :  { %v2452_v32 = vpop.permute.xlu0 %2451 }
0x13a6   :  { %v2409_v54 = vadd.f32 %v3049_v10, %v2408_v61  ;;  %2888 = vmatpush.msk.msra.mxu0 %vm996_vm5, %v2452_v32  ;;  %v2958_v32 = vld [vmem:[%s4145_s9 + $0x5] ss:$0 sm:$0xff] }
0x13a8   :  { %v2413_v36 = vsel %vm2412_vm1, %v3049_v10, %v2409_v54 }
0x13a9   :  { %v2418_v23 = vsel %vm2415_vm2, %v2417_v34, %v2413_v36  ;;  %v2959_v36 = vld [vmem:[%s4145_s9 + $0x7] ss:$0 sm:$0xff] }
0x13aa   :  { %v2419_v37 = vmul.f32 %v3966_v57, %v2418_v23 }
0x13ac   :  { %2889 = vmatmul.msk.f32.vlgmr.msra.gmra.mxu0 %vm992_vm12, %v2419_v37 }
0x13ad   :  { %v1924_v30 = vpop.f32.mrf.mxu3 }
0x13ae   :  { %2480 = vst [vmem:[#allocation1] ss:$2 sm:$0xff] %v1924_v30  ;;  %v2902_v30 = vld [vmem:[%s4151_s15 + $0x50] sm:$0xff] }
0x13b5   :  { %v2483_v40 = vld.sshfl [vmem:[#allocation1] sm:$0xff pattern:$0x75316420] }
0x13b7   :  { %v2098_v41 = vpop.f32.mrf.mxu3 }
0x13b8   :  { %2487 = vst [vmem:[#allocation1] ss:$2 sm:$0xff] %v2098_v41  ;;  %v2900_v41 = vld [vmem:[%s4151_s15 + $0x40] sm:$0xff] }
0x1405   :  { %v2272_v2 = vpop.f32.mrf.mxu3 }
0x1414   :  { %v2127_v44 = vpop.f32.mrf.mxu0 }
0x1415   :  { %2489 = vst [vmem:[#allocation1 + $0x1] ss:$2 sm:$0xff] %v2127_v44  ;;  %v2960_v44 = vld [vmem:[%s4150_s14 + $0x1] ss:$0 sm:$0xff] }
0x1419   :  { %v2446_v49 = vpop.f32.mrf.mxu3 }
0x141c   :  { %v2301_v45 = vpop.f32.mrf.mxu0  ;;  %v2490_v47 = vld.sshfl [vmem:[#allocation1] sm:$0xff pattern:$0x75316420] }
0x141d   :  { %2491 = vrot.lane.b32.xlu1 %v2490_v47, %s4166_s8  ;;  %2496 = vst [vmem:[#allocation1] ss:$2 sm:$0xff] %v2272_v2 }
0x141e   :  { %2498 = vst [vmem:[#allocation1 + $0x1] ss:$2 sm:$0xff] %v2301_v45 }
0x1425   :  { %v2499_v51 = vld.sshfl [vmem:[#allocation1] sm:$0xff pattern:$0x75316420] }
0x1426   :  { %2500 = vrot.lane.b32.xlu0 %v2499_v51, %s4167_s26  ;;  %2505 = vst [vmem:[#allocation1] ss:$2 sm:$0xff] %v2446_v49  ;;  %v2961_v49 = vld [vmem:[%s4145_s9 + $0x9] ss:$0 sm:$0xff] }
0x1429   :  { %v2475_v57 = vpop.f32.mrf.mxu0 }
0x142a   :  { %2507 = vst [vmem:[#allocation1 + $0x1] ss:$2 sm:$0xff] %v2475_v57 }
0x1431   :  { %v2508_v29 = vld.sshfl [vmem:[#allocation1] sm:$0xff pattern:$0x75316420] }
0x1432   :  { %2509 = vrot.lane.b32.xlu1 %v2508_v29, %s4168_s20  ;;  %2669 = vst [vmem:[#allocation1] ss:$2 sm:$0xff] %v3656_v43 }
0x1433   :  { %2671 = vst [vmem:[#allocation1 + $0x1] ss:$2 sm:$0xff] %v3682_v22 }
0x143a   :  { %v4016_v21 = vld.sshfl [vmem:[#allocation1] sm:$0xff pattern:$0x75316420] }
0x143b   :  { %2674 = vst [vmem:[#allocation1] ss:$2 sm:$0xff] %v3677_v7 }
0x143c   :  { %2676 = vst [vmem:[#allocation1 + $0x1] ss:$2 sm:$0xff] %v3706_v19  ;;  %v2891_v19 = vld [vmem:[%s4148_s12 + $0x28] sm:$0xff] }
0x1443   :  { %v2677_v53 = vld.sshfl [vmem:[#allocation1] sm:$0xff pattern:$0x75316420] }
0x1444   :  { %2681 = vst [vmem:[#allocation1] ss:$2 sm:$0xff] %v3689_v35  ;;  %v2893_v35 = vld [vmem:[%s4148_s12 + $0x38] sm:$0xff] }
0x1445   :  { %2683 = vst [vmem:[#allocation1 + $0x1] ss:$2 sm:$0xff] %v3714_v28  ;;  %2537 = vmatpush.msrb.mxu1 %v2893_v35  ;;  %v2890_v28 = vld [vmem:[%s4148_s12 + $0x20] sm:$0xff] }
0x144c   :  { %v2684_v55 = vld.sshfl [vmem:[#allocation1] sm:$0xff pattern:$0x75316420] }
0x144d   :  { %2688 = vst [vmem:[#allocation1] ss:$2 sm:$0xff] %v3698_v62  ;;  %v2892_v62 = vld [vmem:[%s4148_s12 + $0x30] sm:$0xff]  ;;  %s3097_s12 = smov 4  }
0x144e   :  { %2690 = vst [vmem:[#allocation1 + $0x1] ss:$2 sm:$0xff] %v3719_v33  ;;  %2538 = vmatpush.msrb.mxu1 %v2892_v62 }
0x1450   :  { %2539 = vmatpush.msrb.mxu1 %v2891_v19 }
0x1452   :  { %2540 = vmatpush.msrb.mxu1 %v2890_v28 }
0x1455   :  { %v2691_v56 = vld.sshfl [vmem:[#allocation1] sm:$0xff pattern:$0x75316420] }
0x1456   :  { %2695 = vst [vmem:[#allocation1] ss:$2 sm:$0xff] %v3973_v5 }
0x1457   :  { %2697 = vst [vmem:[#allocation1 + $0x1] ss:$2 sm:$0xff] %v3962_v50 }
0x145e   :  { %v4026_v43 = vld.sshfl [vmem:[#allocation1] sm:$0xff pattern:$0x75316420] }
0x145f   :  { %2702 = vst [vmem:[#allocation1] ss:$2 sm:$0xff] %v3982_v14 }
0x1460   :  { %2704 = vst [vmem:[#allocation1 + $0x1] ss:$2 sm:$0xff] %v3998_v25  ;;  %v2907_v25 = vld [vmem:[%s4151_s15 + $0x78] sm:$0xff] }
0x1461   :  { %2627 = vmatpush.msra.mxu3 %v2907_v25 }
0x1463   :  { %2628 = vmatpush.msra.mxu3 %v2906_v38 }
0x1465   :  { %2629 = vmatpush.msra.mxu3 %v2905_v15 }
0x1467   :  { %v2705_v7 = vld.sshfl [vmem:[#allocation1] sm:$0xff pattern:$0x75316420]  ;;  %2630 = vmatpush.msra.mxu3 %v2904_v16 }
0x1468   :  { %2709 = vst [vmem:[#allocation1] ss:$2 sm:$0xff] %v3988_v13 }
0x1469   :  { %2711 = vst [vmem:[#allocation1 + $0x1] ss:$2 sm:$0xff] %v2245_v24  ;;  %v2903_v24 = vld [vmem:[%s4151_s15 + $0x58] sm:$0xff] }
0x146a   :  { %2631 = vmatpush.msra.mxu3 %v2903_v24 }
0x146c   :  { %2632 = vmatpush.msra.mxu3 %v2902_v30 }
0x1470   :  { %v4031_v22 = vld.sshfl [vmem:[#allocation1] sm:$0xff pattern:$0x75316420] }
0x1471   :  { %2716 = vst [vmem:[#allocation1] ss:$2 sm:$0xff] %v3995_v39  ;;  %v2897_v39 = vld [vmem:[%s4149_s13 + $0x30] sm:$0xff] }
0x1472   :  { %2718 = vst [vmem:[#allocation1 + $0x1] ss:$2 sm:$0xff] %v2419_v37  ;;  %2597 = vmatpush.msra.mxu2 %v2897_v39 }
0x1474   :  { %2598 = vmatpush.msra.mxu2 %v2896_v9 }
0x1476   :  { %2599 = vmatpush.msra.mxu2 %v2895_v11  ;;  %v2963_v11 = vld [vmem:[%s4145_s9 + $0xd] ss:$0 sm:$0xff] }
0x148f   :  { %v2492_v33 = vpop.permute.xlu1 %2491 }
0x1490   :  { %v2512_v5 = vsel %vm876_vm3, %v2483_v40, %v2492_v33  ;;  %v2901_v40 = vld [vmem:[%s4151_s15 + $0x48] sm:$0xff] }
0x1491   :  { %2633 = vmatpush.msra.mxu3 %v2901_v40 }
0x1493   :  { %2634 = vmatpush.msra.mxu3 %v2900_v41 }
0x1498   :  { %v2501_v50 = vpop.permute.xlu0 %2500 }
0x1499   :  { %v2513_v14 = vsel %vm64_vm0, %v2512_v5, %v2501_v50 }
0x14a4   :  { %v2510_v13 = vpop.permute.xlu1 %2509 }
0x14a5   :  { %v2514_v58 = vsel %vm1606_vm14, %v2513_v14, %v2510_v13 }
0x14a6   :  { %2894 = vmatmul.msk.f32.vlgmr.msrb.gmra.mxu1 %vm430_vm9, %v2514_v58 }
0x1523   :  { %v2542_v63 = vpop.f32.mrf.mxu1 }
0x1524   :  { %v2543_v0 = vadd.f32 %v2957_v48, %v2542_v63 }
0x1526   :  { %v2545_v1 = vadd.f32 %v2543_v0, %v3822_v52  ;;  %v2719_v52 = vld.sshfl [vmem:[#allocation1] sm:$0xff pattern:$0x75316420] }
0x1528   :  { %v2548_v4 = vsel %vm430_vm9, %v2545_v1, 0.0 }
0x1529   :  { %2549 = vadd.xlane.f32.xlu2 %v2548_v4 }
0x1541   :  { %2678 = vrot.lane.b32.xlu2 %v2677_v53, %s3097_s12 }
0x1549   :  { %2685 = vrot.lane.b32.xlu2 %v2684_v55, %s4166_s8 }
0x1551   :  { %2706 = vrot.lane.b32.xlu2 %v2705_v7, %s3098_s3 }
0x159c   :  { %v2550_v6 = vpop.xlane.xlu2 %2549 }
0x159d   :  { %v2551_v17 = vmul.f32 %v2550_v6, %v3359_v42 }
0x159f   :  { %v2552_v31 = vsub.f32 %v2545_v1, %v2551_v17 }
0x15a1   :  { %v2553_v59 = vmul.f32 %v2552_v31, %v2552_v31 }
0x15a3   :  { %v2554_v46 = vsel %vm430_vm9, %v2553_v59, 0.0 }
0x15a4   :  { %2555 = vadd.xlane.f32.xlu0 %v2554_v46  ;;  %v2679_v19 = vpop.permute.xlu2 %2678 }
0x15ac   :  { %v2686_v28 = vpop.permute.xlu2 %2685 }
0x15b4   :  { %v2707_v33 = vpop.permute.xlu2 %2706 }
0x15b8   :  { %2692 = vrot.lane.b32.xlu0 %v2691_v56, %s3099_s0 }
0x15c0   :  { %2720 = vrot.lane.b32.xlu0 %v2719_v52, %s3100_s1 }
0x1617   :  { %v2556_v60 = vpop.xlane.xlu0 %2555 }
0x1618   :  { %v2557_v20 = vmul.f32 %v2556_v60, %v3359_v42 }
0x161a   :  { %v2558_v18 = vadd.f32 1e-12, %v2557_v20 }
0x161c   :  { %3050 = vrsqrt.f32 %v2558_v18  ;;  %vm2565_vm6 = vweird.f32 %v2558_v18 }
0x1622   :  { %v3051_v10 = vpop.eup %3050 }
0x1623   :  { %v2560_v26 = vmul.f32 %v3051_v10, %v2558_v18  ;;  %vm2566_vm5 = vweird.f32 %v3051_v10 }
0x1624   :  { %vm2567_vm8 = vmor %vm2565_vm6, %vm2566_vm5 }
0x1625   :  { %v2561_v3 = vmul.f32 %v3051_v10, %v2560_v26 }
0x1627   :  { %v2562_v12 = vmul.f32 0.5, %v2561_v3 }
0x1629   :  { %v2563_v61 = vsub.f32 1.5, %v2562_v12 }
0x162a   :  { %v2693_v50 = vpop.permute.xlu0 %2692 }
0x162b   :  { %v2564_v27 = vmul.f32 %v3051_v10, %v2563_v61 }
0x162d   :  { %v2568_v54 = vsel %vm2567_vm8, %v3051_v10, %v2564_v27 }
0x162e   :  { %v2569_v34 = vmul.f32 %v2568_v54, %v2552_v31 }
0x1630   :  { %v2571_v23 = vmul.f32 %v2958_v32, %v2569_v34 }
0x1632   :  { %v2573_v37 = vadd.f32 %v2959_v36, %v2571_v23  ;;  %v2721_v4 = vpop.permute.xlu0 %2720 }
0x1634   :  { %2899 = vmatmul.msk.f32.vlgmr.msra.gmra.mxu2 %vm430_vm9, %v2573_v37 }
0x16b7   :  { %v2601_v2 = vpop.f32.mrf.mxu2 }
0x16b8   :  { %v2602_v45 = vadd.f32 %v2960_v44, %v2601_v2 }
0x16ba   :  { %v2604_v47 = vmax.f32 %v2602_v45, 0.0 }
0x16bc   :  { %2908 = vmatmul.msk.f32.vlgmr.msra.gmra.mxu3 %vm662_vm7, %v2604_v47  ;;  %vm2725_vm7 = vcmask 97280  }
0x173f   :  { %v2636_v51 = vpop.f32.mrf.mxu3 }
0x1740   :  { %v2637_v57 = vadd.f32 %v2961_v49, %v2636_v51 }
0x1742   :  { %v2639_v29 = vadd.f32 %v2637_v57, %v2573_v37 }
0x1744   :  { %v2642_v53 = vsel %vm430_vm9, %v2639_v29, 0.0 }
0x1745   :  { %2643 = vadd.xlane.f32.xlu1 %v2642_v53 }
0x175e   :  { %2699 = vrot.lane.b32.xlu1 %v4026_v43, %s4167_s26  ;;  %v2723_v43 = vsel %vm992_vm12, %v4016_v21, %v2679_v19 }
0x175f   :  { %v2724_v58 = vsel %vm876_vm3, %v2723_v43, %v2686_v28 }
0x1760   :  { %v2726_v63 = vsel %vm2725_vm7, %v2724_v58, %v2693_v50 }
0x17b8   :  { %v2644_v55 = vpop.xlane.xlu1 %2643 }
0x17b9   :  { %v2645_v56 = vmul.f32 %v2644_v55, %v3359_v42 }
0x17bb   :  { %v2646_v7 = vsub.f32 %v2639_v29, %v2645_v56 }
0x17bd   :  { %v2647_v35 = vmul.f32 %v2646_v7, %v2646_v7 }
0x17bf   :  { %v2648_v62 = vsel %vm430_vm9, %v2647_v35, 0.0 }
0x17c0   :  { %2649 = vadd.xlane.f32.xlu2 %v2648_v62 }
0x17d0   :  { %v2700_v13 = vpop.permute.xlu1 %2699 }
0x17d1   :  { %v2727_v0 = vsel %vm64_vm0, %v2726_v63, %v2700_v13 }
0x17d8   :  { %2713 = vrot.lane.b32.xlu2 %v4031_v22, %s4168_s20  ;;  %v2729_v22 = vsel %vm2728_vm10, %v2727_v0, %v2707_v33 }
0x1833   :  { %v2650_v5 = vpop.xlane.xlu2 %2649 }
0x1834   :  { %v2651_v14 = vmul.f32 %v2650_v5, %v3359_v42 }
0x1836   :  { %v2652_v48 = vadd.f32 1e-12, %v2651_v14 }
0x1838   :  { %3052 = vrsqrt.f32 %v2652_v48  ;;  %vm2659_vm3 = vweird.f32 %v2652_v48 }
0x183b   :  { %v2714_v1 = vpop.permute.xlu2 %2713 }
0x183c   :  { %v2730_v6 = vsel %vm1606_vm14, %v2729_v22, %v2714_v1 }
0x183d   :  { %v2732_v17 = vsel %vm2731_vm4, %v2730_v6, %v2721_v4 }
0x183e   :  { %v3053_v42 = vpop.eup %3052  ;;  %2733 = vst.msk [vmem:[%s4153_s17] sm:$0xff] %vm430_vm9, %v2732_v17  ;;  %s2739_s17 = sshll.u32 %s3101_s22, 4  ;;  %s2740_s17 = int_to_ptr.vmem [resolvable:$true] %s2739_s17 }
0x183f   :  { %v2654_v21 = vmul.f32 %v3053_v42, %v2652_v48  ;;  %vm2660_vm0 = vweird.f32 %v3053_v42 }
0x1840   :  { %vm2661_vm12 = vmor %vm2659_vm3, %vm2660_vm0 }
0x1841   :  { %v2655_v31 = vmul.f32 %v3053_v42, %v2654_v21 }
0x1843   :  { %v2656_v59 = vmul.f32 0.5, %v2655_v31 }
0x1845   :  { %v2657_v46 = vsub.f32 1.5, %v2656_v59 }
0x1847   :  { %v2658_v52 = vmul.f32 %v3053_v42, %v2657_v46 }
0x1849   :  { %v2662_v39 = vsel %vm2661_vm12, %v3053_v42, %v2658_v52 }
0x184a   :  { %v2663_v9 = vmul.f32 %v2662_v39, %v2646_v7 }
0x184c   :  { %v2665_v25 = vmul.f32 %v2962_v8, %v2663_v9 }
0x184e   :  { %v2667_v38 = vadd.f32 %v2963_v11, %v2665_v25 }
0x1850   :  { %2668 = vst.msk [vmem:[#allocation2] sm:$0xff] %vm430_vm9, %v2667_v38 }
0x1851   :  { %2744 = dma.vmem_to_hbm [thread:$0]  %s2740_s17, 128, %s2742_s19, [#allocation3]  }
0x1852   :  { %3080 = dma.done.wait [#allocation3], 128  }
0x1853   :  { %3081 = vsyncadd [#allocation3], 4294967168 }
0x1854   :  { %2753 = vsyncpa [#allocation3], 1 }

</bundles_post_ra>
